<compile_context>
chip_gen: v7x
topology: tpu7x:2x2x1
jax: 0.10.0
libtpu: 0.0.40
codegen_flags: <defaults>
</compile_context>

<pallas_src>
import math
import jax
import jax.numpy as jnp
from jax.experimental import pallas as pl
from jax.experimental.pallas import tpu as pltpu


# ----------------------------- Pallas kernels ------------------------------

def _matmul_bias_kernel(x_ref, w_ref, b_ref, o_ref):
    # fused q/k/v embedding: (bm, K)bf16 @ (K, 3C)bf16 -> f32, + bias
    o_ref[...] = (
        jnp.dot(x_ref[...], w_ref[...], preferred_element_type=jnp.float32)
        + b_ref[...]
    ).astype(o_ref.dtype)


def _attention_kernel(q_ref, k_ref, v_ref, o_ref):
    # q is pre-scaled by 1/sqrt(D) on the host.  (bt, L, D) blocks.
    q = q_ref[...]
    k = k_ref[...]
    v = v_ref[...]
    s = jnp.einsum('bqd,bkd->bqk', q, k, preferred_element_type=jnp.float32)
    s = s - jnp.max(s, axis=-1, keepdims=True)
    p = jnp.exp(s)
    denom = jnp.sum(p, axis=-1, keepdims=True)
    p = (p * pl.reciprocal(denom, approx=True)).astype(v.dtype)
    o_ref[...] = jnp.einsum('bqk,bkd->bqd', p, v,
                            preferred_element_type=jnp.float32
                            ).astype(o_ref.dtype)


def _make_conv3x3_kernel(H, W, dil, has_res):
    """3x3 conv (stride 1, padding == dilation) + folded-BN shift + LeakyReLU
    (+ optional residual), one padded image per grid step."""

    def kernel(xp_ref, w_ref, shift_ref, *rest):
        if has_res:
            res_ref, o_ref = rest
        else:
            (o_ref,) = rest
        cin = xp_ref.shape[-1]
        cout = o_ref.shape[-1]
        acc = jnp.zeros((H * W, cout), dtype=jnp.float32)
        for ky in range(3):
            for kx in range(3):
                tap = xp_ref[0, ky * dil:ky * dil + H, kx * dil:kx * dil + W, :]
                acc = acc + jnp.dot(tap.reshape(H * W, cin), w_ref[ky, kx],
                                    preferred_element_type=jnp.float32)
        y = acc + shift_ref[...]              # folded conv-bias + BN shift
        y = jnp.where(y >= 0.0, y, 0.2 * y)   # LeakyReLU(0.2)
        if has_res:
            y = y + res_ref[0]
        o_ref[0] = y.astype(o_ref.dtype)

    return kernel


# ----------------------------- kernel wrappers ------------------------------

def _pick_bm(M, cap=512):
    bm = min(cap, M)
    if M > 16 and M // bm < 2:      # keep >=2 grid steps for megacore sharding
        bm = max(8, M // 2)
    if bm != M:
        bm = max(8, (bm // 8) * 8)
    return bm


def _pick_bt(B):
    for bt in (8, 4, 2):
        if B % bt == 0 and B // bt >= 2:
            return bt
    return 1


def matmul_bias(x, w, b, *, block_m=512):
    M, K = x.shape
    N = w.shape[1]
    bm = _pick_bm(M, block_m)
    return pl.pallas_call(
        _matmul_bias_kernel,
        out_shape=jax.ShapeDtypeStruct((M, N), jnp.float32),
        grid=(pl.cdiv(M, bm),),
        in_specs=[
            pl.BlockSpec((bm, K), lambda i: (i, 0)),
            pl.BlockSpec((K, N), lambda i: (0, 0)),
            pl.BlockSpec((1, N), lambda i: (0, 0)),
        ],
        out_specs=pl.BlockSpec((bm, N), lambda i: (i, 0)),
        compiler_params=pltpu.CompilerParams(
            dimension_semantics=("parallel",)),
    )(x, w, b.reshape(1, N))


def patch_attention(q, k, v):
    B, L, D = q.shape
    scale = 1.0 / math.sqrt(D)
    qs = (q * scale).astype(jnp.bfloat16)     # fold 1/sqrt(D) into q (f32 mul)
    kb = k.astype(jnp.bfloat16)
    vb = v.astype(jnp.bfloat16)
    bt = _pick_bt(B)
    return pl.pallas_call(
        _attention_kernel,
        out_shape=jax.ShapeDtypeStruct((B, L, D), jnp.float32),
        grid=(B // bt,),
        in_specs=[pl.BlockSpec((bt, L, D), lambda b: (b, 0, 0))] * 3,
        out_specs=pl.BlockSpec((bt, L, D), lambda b: (b, 0, 0)),
        compiler_params=pltpu.CompilerParams(
            dimension_semantics=("parallel",)),
    )(qs, kb, vb)


def conv3x3_bn_lrelu(x_nhwc, w_folded, shift, *, dilation=1, res=None):
    """x_nhwc (B,H,W,Cin) f32 -> LeakyReLU(BN(conv3x3(x))) [+ res], f32 NHWC."""
    B, H, W, Cin = x_nhwc.shape
    Cout = w_folded.shape[-1]
    pad = dilation
    xp = jnp.pad(x_nhwc.astype(jnp.bfloat16),
                 ((0, 0), (pad, pad), (pad, pad), (0, 0)))
    Hp, Wp = H + 2 * pad, W + 2 * pad

    kernel = _make_conv3x3_kernel(H, W, dilation, res is not None)
    in_specs = [
        pl.BlockSpec((1, Hp, Wp, Cin), lambda b: (b, 0, 0, 0)),
        pl.BlockSpec((3, 3, Cin, Cout), lambda b: (0, 0, 0, 0)),
        pl.BlockSpec((1, Cout), lambda b: (0, 0)),
    ]
    args = [xp, w_folded, shift.reshape(1, Cout)]
    if res is not None:
        in_specs.append(pl.BlockSpec((1, H * W, Cout), lambda b: (b, 0, 0)))
        args.append(res.reshape(B, H * W, Cout))

    out = pl.pallas_call(
        kernel,
        out_shape=jax.ShapeDtypeStruct((B, H * W, Cout), jnp.float32),
        grid=(B,),
        in_specs=in_specs,
        out_specs=pl.BlockSpec((1, H * W, Cout), lambda b: (b, 0, 0)),
        compiler_params=pltpu.CompilerParams(
            dimension_semantics=("parallel",)),
    )(*args)
    return out.reshape(B, H, W, Cout)


# ------------------------------- JAX glue -----------------------------------

def to_patches_nhwc(x, height, width):
    B, H, W, dk = x.shape
    oh, ow = H // height, W // width
    y = x.reshape(B, oh, height, ow, width, dk)
    y = y.transpose(0, 1, 3, 5, 2, 4)          # (B, oh, ow, dk, height, width)
    return y.reshape(B, oh * ow, dk * height * width)


def from_patches_nhwc(y, dk, H, W, height, width):
    B = y.shape[0]
    oh, ow = H // height, W // width
    y = y.reshape(B, oh, ow, dk, height, width)
    y = y.transpose(0, 1, 4, 2, 5, 3)          # (B, oh, height, ow, width, dk)
    return y.reshape(B, H, W, dk)


def prepare_params(p, eps=1e-5):
    """Host-side fusion: concat q/k/v weights, fold conv bias + eval-BN into
    (bf16 weight, f32 shift)."""
    w_qkv = jnp.concatenate([p['wq'].T, p['wk'].T, p['wv'].T],
                            axis=1).astype(jnp.bfloat16)        # (C, 3C)
    b_qkv = jnp.concatenate([p['bq'], p['bk'], p['bv']]).astype(jnp.float32)

    def fold_conv(w, b, bn):
        scale = bn['gamma'] / jnp.sqrt(bn['var'] + eps)
        shift = bn['beta'] - bn['mean'] * scale + b * scale
        w_mat = w.transpose(2, 3, 1, 0) * scale     # (3,3,Cin,Cout) * scale[Cout]
        return w_mat.astype(jnp.bfloat16), shift.astype(jnp.float32)

    w_ol, s_ol = fold_conv(p['w_ol'], p['b_ol'], p['bn_ol'])
    w_f1, s_f1 = fold_conv(p['w_ff1'], p['b_ff1'], p['bn_ff1'])
    w_f2, s_f2 = fold_conv(p['w_ff2'], p['b_ff2'], p['bn_ff2'])
    return dict(w_qkv=w_qkv, b_qkv=b_qkv, w_ol=w_ol, s_ol=s_ol,
                w_ff1=w_f1, s_ff1=s_f1, w_ff2=w_f2, s_ff2=s_f2)


# --------------------------- TransformerBlock -------------------------------

def init_params(key, C):
    ks = jax.random.split(key, 32)
    n = lambda k, shape, s=0.1: (jax.random.normal(k, shape) * s).astype(
        jnp.float32)

    def bn(k):
        k1, k2, k3, k4 = jax.random.split(k, 4)
        return dict(gamma=1.0 + n(k1, (C,)), beta=n(k2, (C,)),
                    mean=n(k3, (C,)), var=jnp.abs(n(k4, (C,))) + 1.0)

    return {
        # q/k/v 1x1 convs: torch weight layout (C_out, C_in)
        'wq': n(ks[0], (C, C)), 'bq': n(ks[1], (C,)),
        'wk': n(ks[2], (C, C)), 'bk': n(ks[3], (C,)),
        'wv': n(ks[4], (C, C)), 'bv': n(ks[5], (C,)),
        # output_linear: 3x3 conv + BN + LeakyReLU
        'w_ol': n(ks[6], (C, C, 3, 3)), 'b_ol': n(ks[7], (C,)),
        'bn_ol': bn(ks[8]),
        # FeedForward2D: conv3x3 d=2 p=2 + BN + LReLU, conv3x3 p=1 + BN + LReLU
        'w_ff1': n(ks[9], (C, C, 3, 3)), 'b_ff1': n(ks[10], (C,)),
        'bn_ff1': bn(ks[11]),
        'w_ff2': n(ks[12], (C, C, 3, 3)), 'b_ff2': n(ks[13], (C,)),
        'bn_ff2': bn(ks[14]),
    }


def transformer_block(rgb, params, patchsize):
    B, C, H, W = rgb.shape
    dk = C // len(patchsize)
    pp = prepare_params(params)

    x_nhwc = jnp.transpose(rgb, (0, 2, 3, 1))              # (B,H,W,C) f32
    x_rows = x_nhwc.reshape(B * H * W, C)

    # --- fused q/k/v 1x1 conv embedding (one Pallas matmul) ---
    qkv = matmul_bias(x_rows.astype(jnp.bfloat16), pp['w_qkv'], pp['b_qkv'])
    qkv = qkv.reshape(B, H, W, 3 * C)
    q, k, v = qkv[..., :C], qkv[..., C:2 * C], qkv[..., 2 * C:]

    # --- multi-scale patch attention (Pallas attention kernel per scale) ---
    outs = []
    for i, (width, height) in enumerate(patchsize):
        sl = slice(i * dk, (i + 1) * dk)
        qp = to_patches_nhwc(q[..., sl], height, width)
        kp = to_patches_nhwc(k[..., sl], height, width)
        vp = to_patches_nhwc(v[..., sl], height, width)
        yp = patch_attention(qp, kp, vp)
        outs.append(from_patches_nhwc(yp, dk, H, W, height, width))
    att = jnp.concatenate(outs, axis=-1)                   # (B,H,W,C)

    # --- output_linear: conv3x3(pad=1)+BN+LReLU, fused with rgb residual ---
    out = conv3x3_bn_lrelu(att, pp['w_ol'], pp['s_ol'],
                           dilation=1, res=x_nhwc)         # rgb + self_attention

    # --- FeedForward2D ---
    h1 = conv3x3_bn_lrelu(out, pp['w_ff1'], pp['s_ff1'],
                          dilation=2, res=None)            # no zeros residual
    y = conv3x3_bn_lrelu(h1, pp['w_ff2'], pp['s_ff2'],
                         dilation=1, res=out)              # output + ff(output)

    return jnp.transpose(y, (0, 3, 1, 2))                  # back to NCHW


# --------------------------------- main --------------------------------------

if __name__ == "__main__":
    B, C, H, W = 2, 16, 8, 8
    patchsize = [(4, 4), (2, 2)]        # d_k = C // len(patchsize) = 8

    key = jax.random.PRNGKey(0)
    k_in, k_par = jax.random.split(key)
    rgb = jax.random.normal(k_in, (B, C, H, W), dtype=jnp.float32)
    params = init_params(k_par, C)

    fwd = jax.jit(lambda x: transformer_block(x, params, patchsize))
    out = jax.block_until_ready(fwd(rgb))

    assert out.shape == (B, C, H, W), out.shape
    assert bool(jnp.all(jnp.isfinite(out)))
    print("KERNEL_OK")
</pallas_src>

<mosaic_0001>
module attributes {stable_mosaic.version = 11 : i64} {
  func.func @_matmul_bias_kernel(%arg0: i32, %arg1: memref<64x16xbf16, #tpu.memory_space<vmem>>, %arg2: memref<16x48xbf16, #tpu.memory_space<vmem>>, %arg3: memref<1x48xf32, #tpu.memory_space<vmem>>, %arg4: memref<64x48xf32, #tpu.memory_space<vmem>>) attributes {dimension_semantics = [#tpu.dimension_semantics<parallel>], iteration_bounds = array<i64: 2>, scalar_prefetch = 0 : i64, scratch_operands = 0 : i64, tpu.core_type = #tpu.core_type<tc>, window_params = [{transform_indices = @transform_0, window_bounds = array<i64: 64, 16>}, {pipeline_mode = #tpu.pipeline_mode<synchronous>, transform_indices = @transform_1, window_bounds = array<i64: 16, 48>}, {pipeline_mode = #tpu.pipeline_mode<synchronous>, transform_indices = @transform_2, window_bounds = array<i64: 1, 48>}, {transform_indices = @transform_3, window_bounds = array<i64: 64, 48>}]} {
    %c0 = arith.constant 0 : index
    %c0_0 = arith.constant 0 : index
    %0 = vector.load %arg1[%c0, %c0_0] : memref<64x16xbf16, #tpu.memory_space<vmem>>, vector<64x16xbf16>
    %c0_1 = arith.constant 0 : index
    %c0_2 = arith.constant 0 : index
    %1 = vector.load %arg2[%c0_1, %c0_2] : memref<16x48xbf16, #tpu.memory_space<vmem>>, vector<16x48xbf16>
    %cst = arith.constant dense<0.000000e+00> : vector<64x48xf32>
    %2 = tpu.matmul %0, %1, %cst {dimension_numbers = #tpu.dot_dimension_numbers<[1], [0], [0], [1], [0, 0, 1, 1], [], []>} : vector<64x16xbf16>, vector<16x48xbf16>, vector<64x48xf32> -> vector<64x48xf32>
    %c0_3 = arith.constant 0 : index
    %c0_4 = arith.constant 0 : index
    %3 = vector.load %arg3[%c0_3, %c0_4] : memref<1x48xf32, #tpu.memory_space<vmem>>, vector<1x48xf32>
    %4 = vector.broadcast %3 : vector<1x48xf32> to vector<64x48xf32>
    %5 = arith.addf %2, %4 : vector<64x48xf32>
    %c0_5 = arith.constant 0 : index
    %c0_6 = arith.constant 0 : index
    %6 = vector.load %arg4[%c0_5, %c0_6] : memref<64x48xf32, #tpu.memory_space<vmem>>, vector<64x48xf32>
    tpu.vector_store %arg4[%c0_5, %c0_6], %5 {strides = array<i32>} : memref<64x48xf32, #tpu.memory_space<vmem>>, vector<64x48xf32>,
    return
  }
  func.func @transform_0(%arg0: i32) -> (i32, i32) {
    %c0_i32 = arith.constant 0 : i32
    %c0_i32_0 = arith.constant 0 : i32
    return %arg0, %c0_i32 : i32, i32
  }
  func.func @transform_1(%arg0: i32) -> (i32, i32) {
    %c0_i32 = arith.constant 0 : i32
    %c0_i32_0 = arith.constant 0 : i32
    %c0_i32_1 = arith.constant 0 : i32
    return %c0_i32, %c0_i32_0 : i32, i32
  }
  func.func @transform_2(%arg0: i32) -> (i32, i32) {
    %c0_i32 = arith.constant 0 : i32
    %c0_i32_0 = arith.constant 0 : i32
    %c0_i32_1 = arith.constant 0 : i32
    return %c0_i32, %c0_i32_0 : i32, i32
  }
  func.func @transform_3(%arg0: i32) -> (i32, i32) {
    %c0_i32 = arith.constant 0 : i32
    %c0_i32_0 = arith.constant 0 : i32
    return %arg0, %c0_i32 : i32, i32
  }
}

module attributes {stable_mosaic.version = 11 : i64} {
  func.func @_attention_kernel(%arg0: i32, %arg1: memref<1x16x32xbf16, #tpu.memory_space<vmem>>, %arg2: memref<1x16x32xbf16, #tpu.memory_space<vmem>>, %arg3: memref<1x16x32xbf16, #tpu.memory_space<vmem>>, %arg4: memref<1x16x32xf32, #tpu.memory_space<vmem>>) attributes {dimension_semantics = [#tpu.dimension_semantics<parallel>], iteration_bounds = array<i64: 2>, scalar_prefetch = 0 : i64, scratch_operands = 0 : i64, tpu.core_type = #tpu.core_type<tc>, window_params = [{transform_indices = @transform_0, window_bounds = array<i64: 1, 16, 32>}, {transform_indices = @transform_1, window_bounds = array<i64: 1, 16, 32>}, {transform_indices = @transform_2, window_bounds = array<i64: 1, 16, 32>}, {transform_indices = @transform_3, window_bounds = array<i64: 1, 16, 32>}]} {
    %c0 = arith.constant 0 : index
    %c0_0 = arith.constant 0 : index
    %c0_1 = arith.constant 0 : index
    %0 = vector.load %arg1[%c0, %c0_0, %c0_1] : memref<1x16x32xbf16, #tpu.memory_space<vmem>>, vector<1x16x32xbf16>
    %c0_2 = arith.constant 0 : index
    %c0_3 = arith.constant 0 : index
    %c0_4 = arith.constant 0 : index
    %1 = vector.load %arg2[%c0_2, %c0_3, %c0_4] : memref<1x16x32xbf16, #tpu.memory_space<vmem>>, vector<1x16x32xbf16>
    %c0_5 = arith.constant 0 : index
    %c0_6 = arith.constant 0 : index
    %c0_7 = arith.constant 0 : index
    %2 = vector.load %arg3[%c0_5, %c0_6, %c0_7] : memref<1x16x32xbf16, #tpu.memory_space<vmem>>, vector<1x16x32xbf16>
    "tpu.trace_start"() <{level = 10 : i32, message = "bqd,bkd->bqk"}> : () -> ()
    %cst = arith.constant dense<0.000000e+00> : vector<1x16x16xf32>
    %3 = tpu.matmul %0, %1, %cst {dimension_numbers = #tpu.dot_dimension_numbers<[2], [2], [1], [1], [0, 0, 0, 1, 1, 1], [0], [0]>} : vector<1x16x32xbf16>, vector<1x16x32xbf16>, vector<1x16x16xf32> -> vector<1x16x16xf32>
    "tpu.trace_stop"() : () -> ()
    %cst_8 = arith.constant dense<0xFF800000> : vector<1x16xf32>
    %4 = vector.multi_reduction <maximumf>, %3, %cst_8 [2] : vector<1x16x16xf32> to vector<1x16xf32>
    %5 = vector.shape_cast %4 : vector<1x16xf32> to vector<1x16x1xf32>
    %6 = vector.broadcast %5 : vector<1x16x1xf32> to vector<1x16x16xf32>
    %7 = arith.subf %3, %6 : vector<1x16x16xf32>
    %8 = math.exp %7 : vector<1x16x16xf32>
    %cst_9 = arith.constant dense<0.000000e+00> : vector<1x16xf32>
    %9 = vector.multi_reduction <add>, %8, %cst_9 [2] : vector<1x16x16xf32> to vector<1x16xf32>
    %10 = vector.shape_cast %9 : vector<1x16xf32> to vector<1x16x1xf32>
    %11 = tpu.reciprocal %10 {approx = true} : vector<1x16x1xf32> -> vector<1x16x1xf32>
    %12 = vector.broadcast %11 : vector<1x16x1xf32> to vector<1x16x16xf32>
    %13 = arith.mulf %8, %12 : vector<1x16x16xf32>
    %14 = arith.truncf %13 : vector<1x16x16xf32> to vector<1x16x16xbf16>
    "tpu.trace_start"() <{level = 10 : i32, message = "bqk,bkd->bqd"}> : () -> ()
    %cst_10 = arith.constant dense<0.000000e+00> : vector<1x16x32xf32>
    %15 = tpu.matmul %14, %2, %cst_10 {dimension_numbers = #tpu.dot_dimension_numbers<[2], [1], [1], [2], [0, 0, 0, 1, 1, 2], [0], [0]>} : vector<1x16x16xbf16>, vector<1x16x32xbf16>, vector<1x16x32xf32> -> vector<1x16x32xf32>
    "tpu.trace_stop"() : () -> ()
    %c0_11 = arith.constant 0 : index
    %c0_12 = arith.constant 0 : index
    %c0_13 = arith.constant 0 : index
    %16 = vector.load %arg4[%c0_11, %c0_12, %c0_13] : memref<1x16x32xf32, #tpu.memory_space<vmem>>, vector<1x16x32xf32>
    tpu.vector_store %arg4[%c0_11, %c0_12, %c0_13], %15 {strides = array<i32>} : memref<1x16x32xf32, #tpu.memory_space<vmem>>, vector<1x16x32xf32>,
    return
  }
  func.func @transform_0(%arg0: i32) -> (i32, i32, i32) {
    %c0_i32 = arith.constant 0 : i32
    %c0_i32_0 = arith.constant 0 : i32
    %c0_i32_1 = arith.constant 0 : i32
    return %arg0, %c0_i32, %c0_i32_0 : i32, i32, i32
  }
  func.func @transform_1(%arg0: i32) -> (i32, i32, i32) {
    %c0_i32 = arith.constant 0 : i32
    %c0_i32_0 = arith.constant 0 : i32
    %c0_i32_1 = arith.constant 0 : i32
    return %arg0, %c0_i32, %c0_i32_0 : i32, i32, i32
  }
  func.func @transform_2(%arg0: i32) -> (i32, i32, i32) {
    %c0_i32 = arith.constant 0 : i32
    %c0_i32_0 = arith.constant 0 : i32
    %c0_i32_1 = arith.constant 0 : i32
    return %arg0, %c0_i32, %c0_i32_0 : i32, i32, i32
  }
  func.func @transform_3(%arg0: i32) -> (i32, i32, i32) {
    %c0_i32 = arith.constant 0 : i32
    %c0_i32_0 = arith.constant 0 : i32
    %c0_i32_1 = arith.constant 0 : i32
    return %arg0, %c0_i32, %c0_i32_0 : i32, i32, i32
  }
}

module attributes {stable_mosaic.version = 11 : i64} {
  func.func @_attention_kernel(%arg0: i32, %arg1: memref<1x4x128xbf16, #tpu.memory_space<vmem>>, %arg2: memref<1x4x128xbf16, #tpu.memory_space<vmem>>, %arg3: memref<1x4x128xbf16, #tpu.memory_space<vmem>>, %arg4: memref<1x4x128xf32, #tpu.memory_space<vmem>>) attributes {dimension_semantics = [#tpu.dimension_semantics<parallel>], iteration_bounds = array<i64: 2>, scalar_prefetch = 0 : i64, scratch_operands = 0 : i64, tpu.core_type = #tpu.core_type<tc>, window_params = [{transform_indices = @transform_0, window_bounds = array<i64: 1, 4, 128>}, {transform_indices = @transform_1, window_bounds = array<i64: 1, 4, 128>}, {transform_indices = @transform_2, window_bounds = array<i64: 1, 4, 128>}, {transform_indices = @transform_3, window_bounds = array<i64: 1, 4, 128>}]} {
    %c0 = arith.constant 0 : index
    %c0_0 = arith.constant 0 : index
    %c0_1 = arith.constant 0 : index
    %0 = vector.load %arg1[%c0, %c0_0, %c0_1] : memref<1x4x128xbf16, #tpu.memory_space<vmem>>, vector<1x4x128xbf16>
    %c0_2 = arith.constant 0 : index
    %c0_3 = arith.constant 0 : index
    %c0_4 = arith.constant 0 : index
    %1 = vector.load %arg2[%c0_2, %c0_3, %c0_4] : memref<1x4x128xbf16, #tpu.memory_space<vmem>>, vector<1x4x128xbf16>
    %c0_5 = arith.constant 0 : index
    %c0_6 = arith.constant 0 : index
    %c0_7 = arith.constant 0 : index
    %2 = vector.load %arg3[%c0_5, %c0_6, %c0_7] : memref<1x4x128xbf16, #tpu.memory_space<vmem>>, vector<1x4x128xbf16>
    "tpu.trace_start"() <{level = 10 : i32, message = "bqd,bkd->bqk"}> : () -> ()
    %cst = arith.constant dense<0.000000e+00> : vector<1x4x4xf32>
    %3 = tpu.matmul %0, %1, %cst {dimension_numbers = #tpu.dot_dimension_numbers<[2], [2], [1], [1], [0, 0, 0, 1, 1, 1], [0], [0]>} : vector<1x4x128xbf16>, vector<1x4x128xbf16>, vector<1x4x4xf32> -> vector<1x4x4xf32>
    "tpu.trace_stop"() : () -> ()
    %cst_8 = arith.constant dense<0xFF800000> : vector<1x4xf32>
    %4 = vector.multi_reduction <maximumf>, %3, %cst_8 [2] : vector<1x4x4xf32> to vector<1x4xf32>
    %5 = vector.shape_cast %4 : vector<1x4xf32> to vector<1x4x1xf32>
    %6 = vector.broadcast %5 : vector<1x4x1xf32> to vector<1x4x4xf32>
    %7 = arith.subf %3, %6 : vector<1x4x4xf32>
    %8 = math.exp %7 : vector<1x4x4xf32>
    %cst_9 = arith.constant dense<0.000000e+00> : vector<1x4xf32>
    %9 = vector.multi_reduction <add>, %8, %cst_9 [2] : vector<1x4x4xf32> to vector<1x4xf32>
    %10 = vector.shape_cast %9 : vector<1x4xf32> to vector<1x4x1xf32>
    %11 = tpu.reciprocal %10 {approx = true} : vector<1x4x1xf32> -> vector<1x4x1xf32>
    %12 = vector.broadcast %11 : vector<1x4x1xf32> to vector<1x4x4xf32>
    %13 = arith.mulf %8, %12 : vector<1x4x4xf32>
    %14 = arith.truncf %13 : vector<1x4x4xf32> to vector<1x4x4xbf16>
    "tpu.trace_start"() <{level = 10 : i32, message = "bqk,bkd->bqd"}> : () -> ()
    %cst_10 = arith.constant dense<0.000000e+00> : vector<1x4x128xf32>
    %15 = tpu.matmul %14, %2, %cst_10 {dimension_numbers = #tpu.dot_dimension_numbers<[2], [1], [1], [2], [0, 0, 0, 1, 1, 2], [0], [0]>} : vector<1x4x4xbf16>, vector<1x4x128xbf16>, vector<1x4x128xf32> -> vector<1x4x128xf32>
    "tpu.trace_stop"() : () -> ()
    %c0_11 = arith.constant 0 : index
    %c0_12 = arith.constant 0 : index
    %c0_13 = arith.constant 0 : index
    %16 = vector.load %arg4[%c0_11, %c0_12, %c0_13] : memref<1x4x128xf32, #tpu.memory_space<vmem>>, vector<1x4x128xf32>
    tpu.vector_store %arg4[%c0_11, %c0_12, %c0_13], %15 {strides = array<i32>} : memref<1x4x128xf32, #tpu.memory_space<vmem>>, vector<1x4x128xf32>,
    return
  }
  func.func @transform_0(%arg0: i32) -> (i32, i32, i32) {
    %c0_i32 = arith.constant 0 : i32
    %c0_i32_0 = arith.constant 0 : i32
    %c0_i32_1 = arith.constant 0 : i32
    return %arg0, %c0_i32, %c0_i32_0 : i32, i32, i32
  }
  func.func @transform_1(%arg0: i32) -> (i32, i32, i32) {
    %c0_i32 = arith.constant 0 : i32
    %c0_i32_0 = arith.constant 0 : i32
    %c0_i32_1 = arith.constant 0 : i32
    return %arg0, %c0_i32, %c0_i32_0 : i32, i32, i32
  }
  func.func @transform_2(%arg0: i32) -> (i32, i32, i32) {
    %c0_i32 = arith.constant 0 : i32
    %c0_i32_0 = arith.constant 0 : i32
    %c0_i32_1 = arith.constant 0 : i32
    return %arg0, %c0_i32, %c0_i32_0 : i32, i32, i32
  }
  func.func @transform_3(%arg0: i32) -> (i32, i32, i32) {
    %c0_i32 = arith.constant 0 : i32
    %c0_i32_0 = arith.constant 0 : i32
    %c0_i32_1 = arith.constant 0 : i32
    return %arg0, %c0_i32, %c0_i32_0 : i32, i32, i32
  }
}

module attributes {stable_mosaic.version = 11 : i64} {
  func.func @kernel(%arg0: i32, %arg1: memref<1x12x12x16xbf16, #tpu.memory_space<vmem>>, %arg2: memref<3x3x16x16xbf16, #tpu.memory_space<vmem>>, %arg3: memref<1x16xf32, #tpu.memory_space<vmem>>, %arg4: memref<1x64x16xf32, #tpu.memory_space<vmem>>) attributes {dimension_semantics = [#tpu.dimension_semantics<parallel>], iteration_bounds = array<i64: 2>, scalar_prefetch = 0 : i64, scratch_operands = 0 : i64, tpu.core_type = #tpu.core_type<tc>, window_params = [{transform_indices = @transform_0, window_bounds = array<i64: 1, 12, 12, 16>}, {pipeline_mode = #tpu.pipeline_mode<synchronous>, transform_indices = @transform_1, window_bounds = array<i64: 3, 3, 16, 16>}, {pipeline_mode = #tpu.pipeline_mode<synchronous>, transform_indices = @transform_2, window_bounds = array<i64: 1, 16>}, {transform_indices = @transform_3, window_bounds = array<i64: 1, 64, 16>}]} {
    %cst = arith.constant 0.000000e+00 : f32
    %0 = vector.broadcast %cst : f32 to vector<64x16xf32>
    %c0 = arith.constant 0 : index
    %c0_0 = arith.constant 0 : index
    %c0_1 = arith.constant 0 : index
    %c0_2 = arith.constant 0 : index
    %1 = vector.load %arg1[%c0, %c0_0, %c0_1, %c0_2] : memref<1x12x12x16xbf16, #tpu.memory_space<vmem>>, vector<1x8x8x16xbf16>
    %2 = vector.shape_cast %1 : vector<1x8x8x16xbf16> to vector<8x8x16xbf16>
    %3 = vector.shape_cast %2 : vector<8x8x16xbf16> to vector<64x16xbf16>
    %c0_3 = arith.constant 0 : index
    %c0_4 = arith.constant 0 : index
    %c0_5 = arith.constant 0 : index
    %c0_6 = arith.constant 0 : index
    %4 = vector.load %arg2[%c0_3, %c0_4, %c0_5, %c0_6] : memref<3x3x16x16xbf16, #tpu.memory_space<vmem>>, vector<1x1x16x16xbf16>
    %5 = vector.shape_cast %4 : vector<1x1x16x16xbf16> to vector<16x16xbf16>
    %cst_7 = arith.constant dense<0.000000e+00> : vector<64x16xf32>
    %6 = tpu.matmul %3, %5, %cst_7 {dimension_numbers = #tpu.dot_dimension_numbers<[1], [0], [0], [1], [0, 0, 1, 1], [], []>} : vector<64x16xbf16>, vector<16x16xbf16>, vector<64x16xf32> -> vector<64x16xf32>
    %7 = arith.addf %0, %6 : vector<64x16xf32>
    %c0_8 = arith.constant 0 : index
    %c0_9 = arith.constant 0 : index
    %c2 = arith.constant 2 : index
    %c0_10 = arith.constant 0 : index
    %8 = vector.load %arg1[%c0_8, %c0_9, %c2, %c0_10] : memref<1x12x12x16xbf16, #tpu.memory_space<vmem>>, vector<1x8x8x16xbf16>
    %9 = vector.shape_cast %8 : vector<1x8x8x16xbf16> to vector<8x8x16xbf16>
    %10 = vector.shape_cast %9 : vector<8x8x16xbf16> to vector<64x16xbf16>
    %c0_11 = arith.constant 0 : index
    %c1 = arith.constant 1 : index
    %c0_12 = arith.constant 0 : index
    %c0_13 = arith.constant 0 : index
    %11 = vector.load %arg2[%c0_11, %c1, %c0_12, %c0_13] : memref<3x3x16x16xbf16, #tpu.memory_space<vmem>>, vector<1x1x16x16xbf16>
    %12 = vector.shape_cast %11 : vector<1x1x16x16xbf16> to vector<16x16xbf16>
    %cst_14 = arith.constant dense<0.000000e+00> : vector<64x16xf32>
    %13 = tpu.matmul %10, %12, %cst_14 {dimension_numbers = #tpu.dot_dimension_numbers<[1], [0], [0], [1], [0, 0, 1, 1], [], []>} : vector<64x16xbf16>, vector<16x16xbf16>, vector<64x16xf32> -> vector<64x16xf32>
    %14 = arith.addf %7, %13 : vector<64x16xf32>
    %c0_15 = arith.constant 0 : index
    %c0_16 = arith.constant 0 : index
    %c4 = arith.constant 4 : index
    %c0_17 = arith.constant 0 : index
    %15 = vector.load %arg1[%c0_15, %c0_16, %c4, %c0_17] : memref<1x12x12x16xbf16, #tpu.memory_space<vmem>>, vector<1x8x8x16xbf16>
    %16 = vector.shape_cast %15 : vector<1x8x8x16xbf16> to vector<8x8x16xbf16>
    %17 = vector.shape_cast %16 : vector<8x8x16xbf16> to vector<64x16xbf16>
    %c0_18 = arith.constant 0 : index
    %c2_19 = arith.constant 2 : index
    %c0_20 = arith.constant 0 : index
    %c0_21 = arith.constant 0 : index
    %18 = vector.load %arg2[%c0_18, %c2_19, %c0_20, %c0_21] : memref<3x3x16x16xbf16, #tpu.memory_space<vmem>>, vector<1x1x16x16xbf16>
    %19 = vector.shape_cast %18 : vector<1x1x16x16xbf16> to vector<16x16xbf16>
    %cst_22 = arith.constant dense<0.000000e+00> : vector<64x16xf32>
    %20 = tpu.matmul %17, %19, %cst_22 {dimension_numbers = #tpu.dot_dimension_numbers<[1], [0], [0], [1], [0, 0, 1, 1], [], []>} : vector<64x16xbf16>, vector<16x16xbf16>, vector<64x16xf32> -> vector<64x16xf32>
    %21 = arith.addf %14, %20 : vector<64x16xf32>
    %c0_23 = arith.constant 0 : index
    %c2_24 = arith.constant 2 : index
    %c0_25 = arith.constant 0 : index
    %c0_26 = arith.constant 0 : index
    %22 = vector.load %arg1[%c0_23, %c2_24, %c0_25, %c0_26] : memref<1x12x12x16xbf16, #tpu.memory_space<vmem>>, vector<1x8x8x16xbf16>
    %23 = vector.shape_cast %22 : vector<1x8x8x16xbf16> to vector<8x8x16xbf16>
    %24 = vector.shape_cast %23 : vector<8x8x16xbf16> to vector<64x16xbf16>
    %c1_27 = arith.constant 1 : index
    %c0_28 = arith.constant 0 : index
    %c0_29 = arith.constant 0 : index
    %c0_30 = arith.constant 0 : index
    %25 = vector.load %arg2[%c1_27, %c0_28, %c0_29, %c0_30] : memref<3x3x16x16xbf16, #tpu.memory_space<vmem>>, vector<1x1x16x16xbf16>
    %26 = vector.shape_cast %25 : vector<1x1x16x16xbf16> to vector<16x16xbf16>
    %cst_31 = arith.constant dense<0.000000e+00> : vector<64x16xf32>
    %27 = tpu.matmul %24, %26, %cst_31 {dimension_numbers = #tpu.dot_dimension_numbers<[1], [0], [0], [1], [0, 0, 1, 1], [], []>} : vector<64x16xbf16>, vector<16x16xbf16>, vector<64x16xf32> -> vector<64x16xf32>
    %28 = arith.addf %21, %27 : vector<64x16xf32>
    %c0_32 = arith.constant 0 : index
    %c2_33 = arith.constant 2 : index
    %c2_34 = arith.constant 2 : index
    %c0_35 = arith.constant 0 : index
    %29 = vector.load %arg1[%c0_32, %c2_33, %c2_34, %c0_35] : memref<1x12x12x16xbf16, #tpu.memory_space<vmem>>, vector<1x8x8x16xbf16>
    %30 = vector.shape_cast %29 : vector<1x8x8x16xbf16> to vector<8x8x16xbf16>
    %31 = vector.shape_cast %30 : vector<8x8x16xbf16> to vector<64x16xbf16>
    %c1_36 = arith.constant 1 : index
    %c1_37 = arith.constant 1 : index
    %c0_38 = arith.constant 0 : index
    %c0_39 = arith.constant 0 : index
    %32 = vector.load %arg2[%c1_36, %c1_37, %c0_38, %c0_39] : memref<3x3x16x16xbf16, #tpu.memory_space<vmem>>, vector<1x1x16x16xbf16>
    %33 = vector.shape_cast %32 : vector<1x1x16x16xbf16> to vector<16x16xbf16>
    %cst_40 = arith.constant dense<0.000000e+00> : vector<64x16xf32>
    %34 = tpu.matmul %31, %33, %cst_40 {dimension_numbers = #tpu.dot_dimension_numbers<[1], [0], [0], [1], [0, 0, 1, 1], [], []>} : vector<64x16xbf16>, vector<16x16xbf16>, vector<64x16xf32> -> vector<64x16xf32>
    %35 = arith.addf %28, %34 : vector<64x16xf32>
    %c0_41 = arith.constant 0 : index
    %c2_42 = arith.constant 2 : index
    %c4_43 = arith.constant 4 : index
    %c0_44 = arith.constant 0 : index
    %36 = vector.load %arg1[%c0_41, %c2_42, %c4_43, %c0_44] : memref<1x12x12x16xbf16, #tpu.memory_space<vmem>>, vector<1x8x8x16xbf16>
    %37 = vector.shape_cast %36 : vector<1x8x8x16xbf16> to vector<8x8x16xbf16>
    %38 = vector.shape_cast %37 : vector<8x8x16xbf16> to vector<64x16xbf16>
    %c1_45 = arith.constant 1 : index
    %c2_46 = arith.constant 2 : index
    %c0_47 = arith.constant 0 : index
    %c0_48 = arith.constant 0 : index
    %39 = vector.load %arg2[%c1_45, %c2_46, %c0_47, %c0_48] : memref<3x3x16x16xbf16, #tpu.memory_space<vmem>>, vector<1x1x16x16xbf16>
    %40 = vector.shape_cast %39 : vector<1x1x16x16xbf16> to vector<16x16xbf16>
    %cst_49 = arith.constant dense<0.000000e+00> : vector<64x16xf32>
    %41 = tpu.matmul %38, %40, %cst_49 {dimension_numbers = #tpu.dot_dimension_numbers<[1], [0], [0], [1], [0, 0, 1, 1], [], []>} : vector<64x16xbf16>, vector<16x16xbf16>, vector<64x16xf32> -> vector<64x16xf32>
    %42 = arith.addf %35, %41 : vector<64x16xf32>
    %c0_50 = arith.constant 0 : index
    %c4_51 = arith.constant 4 : index
    %c0_52 = arith.constant 0 : index
    %c0_53 = arith.constant 0 : index
    %43 = vector.load %arg1[%c0_50, %c4_51, %c0_52, %c0_53] : memref<1x12x12x16xbf16, #tpu.memory_space<vmem>>, vector<1x8x8x16xbf16>
    %44 = vector.shape_cast %43 : vector<1x8x8x16xbf16> to vector<8x8x16xbf16>
    %45 = vector.shape_cast %44 : vector<8x8x16xbf16> to vector<64x16xbf16>
    %c2_54 = arith.constant 2 : index
    %c0_55 = arith.constant 0 : index
    %c0_56 = arith.constant 0 : index
    %c0_57 = arith.constant 0 : index
    %46 = vector.load %arg2[%c2_54, %c0_55, %c0_56, %c0_57] : memref<3x3x16x16xbf16, #tpu.memory_space<vmem>>, vector<1x1x16x16xbf16>
    %47 = vector.shape_cast %46 : vector<1x1x16x16xbf16> to vector<16x16xbf16>
    %cst_58 = arith.constant dense<0.000000e+00> : vector<64x16xf32>
    %48 = tpu.matmul %45, %47, %cst_58 {dimension_numbers = #tpu.dot_dimension_numbers<[1], [0], [0], [1], [0, 0, 1, 1], [], []>} : vector<64x16xbf16>, vector<16x16xbf16>, vector<64x16xf32> -> vector<64x16xf32>
    %49 = arith.addf %42, %48 : vector<64x16xf32>
    %c0_59 = arith.constant 0 : index
    %c4_60 = arith.constant 4 : index
    %c2_61 = arith.constant 2 : index
    %c0_62 = arith.constant 0 : index
    %50 = vector.load %arg1[%c0_59, %c4_60, %c2_61, %c0_62] : memref<1x12x12x16xbf16, #tpu.memory_space<vmem>>, vector<1x8x8x16xbf16>
    %51 = vector.shape_cast %50 : vector<1x8x8x16xbf16> to vector<8x8x16xbf16>
    %52 = vector.shape_cast %51 : vector<8x8x16xbf16> to vector<64x16xbf16>
    %c2_63 = arith.constant 2 : index
    %c1_64 = arith.constant 1 : index
    %c0_65 = arith.constant 0 : index
    %c0_66 = arith.constant 0 : index
    %53 = vector.load %arg2[%c2_63, %c1_64, %c0_65, %c0_66] : memref<3x3x16x16xbf16, #tpu.memory_space<vmem>>, vector<1x1x16x16xbf16>
    %54 = vector.shape_cast %53 : vector<1x1x16x16xbf16> to vector<16x16xbf16>
    %cst_67 = arith.constant dense<0.000000e+00> : vector<64x16xf32>
    %55 = tpu.matmul %52, %54, %cst_67 {dimension_numbers = #tpu.dot_dimension_numbers<[1], [0], [0], [1], [0, 0, 1, 1], [], []>} : vector<64x16xbf16>, vector<16x16xbf16>, vector<64x16xf32> -> vector<64x16xf32>
    %56 = arith.addf %49, %55 : vector<64x16xf32>
    %c0_68 = arith.constant 0 : index
    %c4_69 = arith.constant 4 : index
    %c4_70 = arith.constant 4 : index
    %c0_71 = arith.constant 0 : index
    %57 = vector.load %arg1[%c0_68, %c4_69, %c4_70, %c0_71] : memref<1x12x12x16xbf16, #tpu.memory_space<vmem>>, vector<1x8x8x16xbf16>
    %58 = vector.shape_cast %57 : vector<1x8x8x16xbf16> to vector<8x8x16xbf16>
    %59 = vector.shape_cast %58 : vector<8x8x16xbf16> to vector<64x16xbf16>
    %c2_72 = arith.constant 2 : index
    %c2_73 = arith.constant 2 : index
    %c0_74 = arith.constant 0 : index
    %c0_75 = arith.constant 0 : index
    %60 = vector.load %arg2[%c2_72, %c2_73, %c0_74, %c0_75] : memref<3x3x16x16xbf16, #tpu.memory_space<vmem>>, vector<1x1x16x16xbf16>
    %61 = vector.shape_cast %60 : vector<1x1x16x16xbf16> to vector<16x16xbf16>
    %cst_76 = arith.constant dense<0.000000e+00> : vector<64x16xf32>
    %62 = tpu.matmul %59, %61, %cst_76 {dimension_numbers = #tpu.dot_dimension_numbers<[1], [0], [0], [1], [0, 0, 1, 1], [], []>} : vector<64x16xbf16>, vector<16x16xbf16>, vector<64x16xf32> -> vector<64x16xf32>
    %63 = arith.addf %56, %62 : vector<64x16xf32>
    %c0_77 = arith.constant 0 : index
    %c0_78 = arith.constant 0 : index
    %64 = vector.load %arg3[%c0_77, %c0_78] : memref<1x16xf32, #tpu.memory_space<vmem>>, vector<1x16xf32>
    %65 = vector.broadcast %64 : vector<1x16xf32> to vector<64x16xf32>
    %66 = arith.addf %63, %65 : vector<64x16xf32>
    %cst_79 = arith.constant 0.000000e+00 : f32
    %67 = vector.broadcast %cst_79 : f32 to vector<64x16xf32>
    %68 = arith.cmpf oge, %66, %67 : vector<64x16xf32>
    %cst_80 = arith.constant 2.000000e-01 : f32
    %69 = vector.broadcast %cst_80 : f32 to vector<64x16xf32>
    %70 = arith.mulf %69, %66 : vector<64x16xf32>
    %71 = arith.select %68, %66, %70 : vector<64x16xi1>, vector<64x16xf32>
    %c0_81 = arith.constant 0 : index
    %c0_82 = arith.constant 0 : index
    %c0_83 = arith.constant 0 : index
    %72 = vector.load %arg4[%c0_81, %c0_82, %c0_83] : memref<1x64x16xf32, #tpu.memory_space<vmem>>, vector<1x64x16xf32>
    %73 = vector.shape_cast %72 : vector<1x64x16xf32> to vector<64x16xf32>
    %74 = vector.shape_cast %71 : vector<64x16xf32> to vector<1x64x16xf32>
    tpu.vector_store %arg4[%c0_81, %c0_82, %c0_83], %74 {strides = array<i32>} : memref<1x64x16xf32, #tpu.memory_space<vmem>>, vector<1x64x16xf32>,
    return
  }
  func.func @transform_0(%arg0: i32) -> (i32, i32, i32, i32) {
    %c0_i32 = arith.constant 0 : i32
    %c0_i32_0 = arith.constant 0 : i32
    %c0_i32_1 = arith.constant 0 : i32
    %c0_i32_2 = arith.constant 0 : i32
    return %arg0, %c0_i32, %c0_i32_0, %c0_i32_1 : i32, i32, i32, i32
  }
  func.func @transform_1(%arg0: i32) -> (i32, i32, i32, i32) {
    %c0_i32 = arith.constant 0 : i32
    %c0_i32_0 = arith.constant 0 : i32
    %c0_i32_1 = arith.constant 0 : i32
    %c0_i32_2 = arith.constant 0 : i32
    %c0_i32_3 = arith.constant 0 : i32
    return %c0_i32, %c0_i32_0, %c0_i32_1, %c0_i32_2 : i32, i32, i32, i32
  }
  func.func @transform_2(%arg0: i32) -> (i32, i32) {
    %c0_i32 = arith.constant 0 : i32
    %c0_i32_0 = arith.constant 0 : i32
    %c0_i32_1 = arith.constant 0 : i32
    return %c0_i32, %c0_i32_0 : i32, i32
  }
  func.func @transform_3(%arg0: i32) -> (i32, i32, i32) {
    %c0_i32 = arith.constant 0 : i32
    %c0_i32_0 = arith.constant 0 : i32
    %c0_i32_1 = arith.constant 0 : i32
    return %arg0, %c0_i32, %c0_i32_0 : i32, i32, i32
  }
}

module attributes {stable_mosaic.version = 11 : i64} {
  func.func @kernel(%arg0: i32, %arg1: memref<1x10x10x16xbf16, #tpu.memory_space<vmem>>, %arg2: memref<3x3x16x16xbf16, #tpu.memory_space<vmem>>, %arg3: memref<1x16xf32, #tpu.memory_space<vmem>>, %arg4: memref<1x64x16xf32, #tpu.memory_space<vmem>>, %arg5: memref<1x64x16xf32, #tpu.memory_space<vmem>>) attributes {dimension_semantics = [#tpu.dimension_semantics<parallel>], iteration_bounds = array<i64: 2>, scalar_prefetch = 0 : i64, scratch_operands = 0 : i64, tpu.core_type = #tpu.core_type<tc>, window_params = [{transform_indices = @transform_0, window_bounds = array<i64: 1, 10, 10, 16>}, {pipeline_mode = #tpu.pipeline_mode<synchronous>, transform_indices = @transform_1, window_bounds = array<i64: 3, 3, 16, 16>}, {pipeline_mode = #tpu.pipeline_mode<synchronous>, transform_indices = @transform_2, window_bounds = array<i64: 1, 16>}, {transform_indices = @transform_3, window_bounds = array<i64: 1, 64, 16>}, {transform_indices = @transform_4, window_bounds = array<i64: 1, 64, 16>}]} {
    %cst = arith.constant 0.000000e+00 : f32
    %0 = vector.broadcast %cst : f32 to vector<64x16xf32>
    %c0 = arith.constant 0 : index
    %c0_0 = arith.constant 0 : index
    %c0_1 = arith.constant 0 : index
    %c0_2 = arith.constant 0 : index
    %1 = vector.load %arg1[%c0, %c0_0, %c0_1, %c0_2] : memref<1x10x10x16xbf16, #tpu.memory_space<vmem>>, vector<1x8x8x16xbf16>
    %2 = vector.shape_cast %1 : vector<1x8x8x16xbf16> to vector<8x8x16xbf16>
    %3 = vector.shape_cast %2 : vector<8x8x16xbf16> to vector<64x16xbf16>
    %c0_3 = arith.constant 0 : index
    %c0_4 = arith.constant 0 : index
    %c0_5 = arith.constant 0 : index
    %c0_6 = arith.constant 0 : index
    %4 = vector.load %arg2[%c0_3, %c0_4, %c0_5, %c0_6] : memref<3x3x16x16xbf16, #tpu.memory_space<vmem>>, vector<1x1x16x16xbf16>
    %5 = vector.shape_cast %4 : vector<1x1x16x16xbf16> to vector<16x16xbf16>
    %cst_7 = arith.constant dense<0.000000e+00> : vector<64x16xf32>
    %6 = tpu.matmul %3, %5, %cst_7 {dimension_numbers = #tpu.dot_dimension_numbers<[1], [0], [0], [1], [0, 0, 1, 1], [], []>} : vector<64x16xbf16>, vector<16x16xbf16>, vector<64x16xf32> -> vector<64x16xf32>
    %7 = arith.addf %0, %6 : vector<64x16xf32>
    %c0_8 = arith.constant 0 : index
    %c0_9 = arith.constant 0 : index
    %c1 = arith.constant 1 : index
    %c0_10 = arith.constant 0 : index
    %8 = vector.load %arg1[%c0_8, %c0_9, %c1, %c0_10] : memref<1x10x10x16xbf16, #tpu.memory_space<vmem>>, vector<1x8x8x16xbf16>
    %9 = vector.shape_cast %8 : vector<1x8x8x16xbf16> to vector<8x8x16xbf16>
    %10 = vector.shape_cast %9 : vector<8x8x16xbf16> to vector<64x16xbf16>
    %c0_11 = arith.constant 0 : index
    %c1_12 = arith.constant 1 : index
    %c0_13 = arith.constant 0 : index
    %c0_14 = arith.constant 0 : index
    %11 = vector.load %arg2[%c0_11, %c1_12, %c0_13, %c0_14] : memref<3x3x16x16xbf16, #tpu.memory_space<vmem>>, vector<1x1x16x16xbf16>
    %12 = vector.shape_cast %11 : vector<1x1x16x16xbf16> to vector<16x16xbf16>
    %cst_15 = arith.constant dense<0.000000e+00> : vector<64x16xf32>
    %13 = tpu.matmul %10, %12, %cst_15 {dimension_numbers = #tpu.dot_dimension_numbers<[1], [0], [0], [1], [0, 0, 1, 1], [], []>} : vector<64x16xbf16>, vector<16x16xbf16>, vector<64x16xf32> -> vector<64x16xf32>
    %14 = arith.addf %7, %13 : vector<64x16xf32>
    %c0_16 = arith.constant 0 : index
    %c0_17 = arith.constant 0 : index
    %c2 = arith.constant 2 : index
    %c0_18 = arith.constant 0 : index
    %15 = vector.load %arg1[%c0_16, %c0_17, %c2, %c0_18] : memref<1x10x10x16xbf16, #tpu.memory_space<vmem>>, vector<1x8x8x16xbf16>
    %16 = vector.shape_cast %15 : vector<1x8x8x16xbf16> to vector<8x8x16xbf16>
    %17 = vector.shape_cast %16 : vector<8x8x16xbf16> to vector<64x16xbf16>
    %c0_19 = arith.constant 0 : index
    %c2_20 = arith.constant 2 : index
    %c0_21 = arith.constant 0 : index
    %c0_22 = arith.constant 0 : index
    %18 = vector.load %arg2[%c0_19, %c2_20, %c0_21, %c0_22] : memref<3x3x16x16xbf16, #tpu.memory_space<vmem>>, vector<1x1x16x16xbf16>
    %19 = vector.shape_cast %18 : vector<1x1x16x16xbf16> to vector<16x16xbf16>
    %cst_23 = arith.constant dense<0.000000e+00> : vector<64x16xf32>
    %20 = tpu.matmul %17, %19, %cst_23 {dimension_numbers = #tpu.dot_dimension_numbers<[1], [0], [0], [1], [0, 0, 1, 1], [], []>} : vector<64x16xbf16>, vector<16x16xbf16>, vector<64x16xf32> -> vector<64x16xf32>
    %21 = arith.addf %14, %20 : vector<64x16xf32>
    %c0_24 = arith.constant 0 : index
    %c1_25 = arith.constant 1 : index
    %c0_26 = arith.constant 0 : index
    %c0_27 = arith.constant 0 : index
    %22 = vector.load %arg1[%c0_24, %c1_25, %c0_26, %c0_27] : memref<1x10x10x16xbf16, #tpu.memory_space<vmem>>, vector<1x8x8x16xbf16>
    %23 = vector.shape_cast %22 : vector<1x8x8x16xbf16> to vector<8x8x16xbf16>
    %24 = vector.shape_cast %23 : vector<8x8x16xbf16> to vector<64x16xbf16>
    %c1_28 = arith.constant 1 : index
    %c0_29 = arith.constant 0 : index
    %c0_30 = arith.constant 0 : index
    %c0_31 = arith.constant 0 : index
    %25 = vector.load %arg2[%c1_28, %c0_29, %c0_30, %c0_31] : memref<3x3x16x16xbf16, #tpu.memory_space<vmem>>, vector<1x1x16x16xbf16>
    %26 = vector.shape_cast %25 : vector<1x1x16x16xbf16> to vector<16x16xbf16>
    %cst_32 = arith.constant dense<0.000000e+00> : vector<64x16xf32>
    %27 = tpu.matmul %24, %26, %cst_32 {dimension_numbers = #tpu.dot_dimension_numbers<[1], [0], [0], [1], [0, 0, 1, 1], [], []>} : vector<64x16xbf16>, vector<16x16xbf16>, vector<64x16xf32> -> vector<64x16xf32>
    %28 = arith.addf %21, %27 : vector<64x16xf32>
    %c0_33 = arith.constant 0 : index
    %c1_34 = arith.constant 1 : index
    %c1_35 = arith.constant 1 : index
    %c0_36 = arith.constant 0 : index
    %29 = vector.load %arg1[%c0_33, %c1_34, %c1_35, %c0_36] : memref<1x10x10x16xbf16, #tpu.memory_space<vmem>>, vector<1x8x8x16xbf16>
    %30 = vector.shape_cast %29 : vector<1x8x8x16xbf16> to vector<8x8x16xbf16>
    %31 = vector.shape_cast %30 : vector<8x8x16xbf16> to vector<64x16xbf16>
    %c1_37 = arith.constant 1 : index
    %c1_38 = arith.constant 1 : index
    %c0_39 = arith.constant 0 : index
    %c0_40 = arith.constant 0 : index
    %32 = vector.load %arg2[%c1_37, %c1_38, %c0_39, %c0_40] : memref<3x3x16x16xbf16, #tpu.memory_space<vmem>>, vector<1x1x16x16xbf16>
    %33 = vector.shape_cast %32 : vector<1x1x16x16xbf16> to vector<16x16xbf16>
    %cst_41 = arith.constant dense<0.000000e+00> : vector<64x16xf32>
    %34 = tpu.matmul %31, %33, %cst_41 {dimension_numbers = #tpu.dot_dimension_numbers<[1], [0], [0], [1], [0, 0, 1, 1], [], []>} : vector<64x16xbf16>, vector<16x16xbf16>, vector<64x16xf32> -> vector<64x16xf32>
    %35 = arith.addf %28, %34 : vector<64x16xf32>
    %c0_42 = arith.constant 0 : index
    %c1_43 = arith.constant 1 : index
    %c2_44 = arith.constant 2 : index
    %c0_45 = arith.constant 0 : index
    %36 = vector.load %arg1[%c0_42, %c1_43, %c2_44, %c0_45] : memref<1x10x10x16xbf16, #tpu.memory_space<vmem>>, vector<1x8x8x16xbf16>
    %37 = vector.shape_cast %36 : vector<1x8x8x16xbf16> to vector<8x8x16xbf16>
    %38 = vector.shape_cast %37 : vector<8x8x16xbf16> to vector<64x16xbf16>
    %c1_46 = arith.constant 1 : index
    %c2_47 = arith.constant 2 : index
    %c0_48 = arith.constant 0 : index
    %c0_49 = arith.constant 0 : index
    %39 = vector.load %arg2[%c1_46, %c2_47, %c0_48, %c0_49] : memref<3x3x16x16xbf16, #tpu.memory_space<vmem>>, vector<1x1x16x16xbf16>
    %40 = vector.shape_cast %39 : vector<1x1x16x16xbf16> to vector<16x16xbf16>
    %cst_50 = arith.constant dense<0.000000e+00> : vector<64x16xf32>
    %41 = tpu.matmul %38, %40, %cst_50 {dimension_numbers = #tpu.dot_dimension_numbers<[1], [0], [0], [1], [0, 0, 1, 1], [], []>} : vector<64x16xbf16>, vector<16x16xbf16>, vector<64x16xf32> -> vector<64x16xf32>
    %42 = arith.addf %35, %41 : vector<64x16xf32>
    %c0_51 = arith.constant 0 : index
    %c2_52 = arith.constant 2 : index
    %c0_53 = arith.constant 0 : index
    %c0_54 = arith.constant 0 : index
    %43 = vector.load %arg1[%c0_51, %c2_52, %c0_53, %c0_54] : memref<1x10x10x16xbf16, #tpu.memory_space<vmem>>, vector<1x8x8x16xbf16>
    %44 = vector.shape_cast %43 : vector<1x8x8x16xbf16> to vector<8x8x16xbf16>
    %45 = vector.shape_cast %44 : vector<8x8x16xbf16> to vector<64x16xbf16>
    %c2_55 = arith.constant 2 : index
    %c0_56 = arith.constant 0 : index
    %c0_57 = arith.constant 0 : index
    %c0_58 = arith.constant 0 : index
    %46 = vector.load %arg2[%c2_55, %c0_56, %c0_57, %c0_58] : memref<3x3x16x16xbf16, #tpu.memory_space<vmem>>, vector<1x1x16x16xbf16>
    %47 = vector.shape_cast %46 : vector<1x1x16x16xbf16> to vector<16x16xbf16>
    %cst_59 = arith.constant dense<0.000000e+00> : vector<64x16xf32>
    %48 = tpu.matmul %45, %47, %cst_59 {dimension_numbers = #tpu.dot_dimension_numbers<[1], [0], [0], [1], [0, 0, 1, 1], [], []>} : vector<64x16xbf16>, vector<16x16xbf16>, vector<64x16xf32> -> vector<64x16xf32>
    %49 = arith.addf %42, %48 : vector<64x16xf32>
    %c0_60 = arith.constant 0 : index
    %c2_61 = arith.constant 2 : index
    %c1_62 = arith.constant 1 : index
    %c0_63 = arith.constant 0 : index
    %50 = vector.load %arg1[%c0_60, %c2_61, %c1_62, %c0_63] : memref<1x10x10x16xbf16, #tpu.memory_space<vmem>>, vector<1x8x8x16xbf16>
    %51 = vector.shape_cast %50 : vector<1x8x8x16xbf16> to vector<8x8x16xbf16>
    %52 = vector.shape_cast %51 : vector<8x8x16xbf16> to vector<64x16xbf16>
    %c2_64 = arith.constant 2 : index
    %c1_65 = arith.constant 1 : index
    %c0_66 = arith.constant 0 : index
    %c0_67 = arith.constant 0 : index
    %53 = vector.load %arg2[%c2_64, %c1_65, %c0_66, %c0_67] : memref<3x3x16x16xbf16, #tpu.memory_space<vmem>>, vector<1x1x16x16xbf16>
    %54 = vector.shape_cast %53 : vector<1x1x16x16xbf16> to vector<16x16xbf16>
    %cst_68 = arith.constant dense<0.000000e+00> : vector<64x16xf32>
    %55 = tpu.matmul %52, %54, %cst_68 {dimension_numbers = #tpu.dot_dimension_numbers<[1], [0], [0], [1], [0, 0, 1, 1], [], []>} : vector<64x16xbf16>, vector<16x16xbf16>, vector<64x16xf32> -> vector<64x16xf32>
    %56 = arith.addf %49, %55 : vector<64x16xf32>
    %c0_69 = arith.constant 0 : index
    %c2_70 = arith.constant 2 : index
    %c2_71 = arith.constant 2 : index
    %c0_72 = arith.constant 0 : index
    %57 = vector.load %arg1[%c0_69, %c2_70, %c2_71, %c0_72] : memref<1x10x10x16xbf16, #tpu.memory_space<vmem>>, vector<1x8x8x16xbf16>
    %58 = vector.shape_cast %57 : vector<1x8x8x16xbf16> to vector<8x8x16xbf16>
    %59 = vector.shape_cast %58 : vector<8x8x16xbf16> to vector<64x16xbf16>
    %c2_73 = arith.constant 2 : index
    %c2_74 = arith.constant 2 : index
    %c0_75 = arith.constant 0 : index
    %c0_76 = arith.constant 0 : index
    %60 = vector.load %arg2[%c2_73, %c2_74, %c0_75, %c0_76] : memref<3x3x16x16xbf16, #tpu.memory_space<vmem>>, vector<1x1x16x16xbf16>
    %61 = vector.shape_cast %60 : vector<1x1x16x16xbf16> to vector<16x16xbf16>
    %cst_77 = arith.constant dense<0.000000e+00> : vector<64x16xf32>
    %62 = tpu.matmul %59, %61, %cst_77 {dimension_numbers = #tpu.dot_dimension_numbers<[1], [0], [0], [1], [0, 0, 1, 1], [], []>} : vector<64x16xbf16>, vector<16x16xbf16>, vector<64x16xf32> -> vector<64x16xf32>
    %63 = arith.addf %56, %62 : vector<64x16xf32>
    %c0_78 = arith.constant 0 : index
    %c0_79 = arith.constant 0 : index
    %64 = vector.load %arg3[%c0_78, %c0_79] : memref<1x16xf32, #tpu.memory_space<vmem>>, vector<1x16xf32>
    %65 = vector.broadcast %64 : vector<1x16xf32> to vector<64x16xf32>
    %66 = arith.addf %63, %65 : vector<64x16xf32>
    %cst_80 = arith.constant 0.000000e+00 : f32
    %67 = vector.broadcast %cst_80 : f32 to vector<64x16xf32>
    %68 = arith.cmpf oge, %66, %67 : vector<64x16xf32>
    %cst_81 = arith.constant 2.000000e-01 : f32
    %69 = vector.broadcast %cst_81 : f32 to vector<64x16xf32>
    %70 = arith.mulf %69, %66 : vector<64x16xf32>
    %71 = arith.select %68, %66, %70 : vector<64x16xi1>, vector<64x16xf32>
    %c0_82 = arith.constant 0 : index
    %c0_83 = arith.constant 0 : index
    %c0_84 = arith.constant 0 : index
    %72 = vector.load %arg4[%c0_82, %c0_83, %c0_84] : memref<1x64x16xf32, #tpu.memory_space<vmem>>, vector<1x64x16xf32>
    %73 = vector.shape_cast %72 : vector<1x64x16xf32> to vector<64x16xf32>
    %74 = arith.addf %71, %73 : vector<64x16xf32>
    %c0_85 = arith.constant 0 : index
    %c0_86 = arith.constant 0 : index
    %c0_87 = arith.constant 0 : index
    %75 = vector.load %arg5[%c0_85, %c0_86, %c0_87] : memref<1x64x16xf32, #tpu.memory_space<vmem>>, vector<1x64x16xf32>
    %76 = vector.shape_cast %75 : vector<1x64x16xf32> to vector<64x16xf32>
    %77 = vector.shape_cast %74 : vector<64x16xf32> to vector<1x64x16xf32>
    tpu.vector_store %arg5[%c0_85, %c0_86, %c0_87], %77 {strides = array<i32>} : memref<1x64x16xf32, #tpu.memory_space<vmem>>, vector<1x64x16xf32>,
    return
  }
  func.func @transform_0(%arg0: i32) -> (i32, i32, i32, i32) {
    %c0_i32 = arith.constant 0 : i32
    %c0_i32_0 = arith.constant 0 : i32
    %c0_i32_1 = arith.constant 0 : i32
    %c0_i32_2 = arith.constant 0 : i32
    return %arg0, %c0_i32, %c0_i32_0, %c0_i32_1 : i32, i32, i32, i32
  }
  func.func @transform_1(%arg0: i32) -> (i32, i32, i32, i32) {
    %c0_i32 = arith.constant 0 : i32
    %c0_i32_0 = arith.constant 0 : i32
    %c0_i32_1 = arith.constant 0 : i32
    %c0_i32_2 = arith.constant 0 : i32
    %c0_i32_3 = arith.constant 0 : i32
    return %c0_i32, %c0_i32_0, %c0_i32_1, %c0_i32_2 : i32, i32, i32, i32
  }
  func.func @transform_2(%arg0: i32) -> (i32, i32) {
    %c0_i32 = arith.constant 0 : i32
    %c0_i32_0 = arith.constant 0 : i32
    %c0_i32_1 = arith.constant 0 : i32
    return %c0_i32, %c0_i32_0 : i32, i32
  }
  func.func @transform_3(%arg0: i32) -> (i32, i32, i32) {
    %c0_i32 = arith.constant 0 : i32
    %c0_i32_0 = arith.constant 0 : i32
    %c0_i32_1 = arith.constant 0 : i32
    return %arg0, %c0_i32, %c0_i32_0 : i32, i32, i32
  }
  func.func @transform_4(%arg0: i32) -> (i32, i32, i32) {
    %c0_i32 = arith.constant 0 : i32
    %c0_i32_0 = arith.constant 0 : i32
    %c0_i32_1 = arith.constant 0 : i32
    return %arg0, %c0_i32, %c0_i32_0 : i32, i32, i32
  }
}

module attributes {stable_mosaic.version = 11 : i64} {
  func.func @kernel(%arg0: i32, %arg1: memref<1x10x10x16xbf16, #tpu.memory_space<vmem>>, %arg2: memref<3x3x16x16xbf16, #tpu.memory_space<vmem>>, %arg3: memref<1x16xf32, #tpu.memory_space<vmem>>, %arg4: memref<1x64x16xf32, #tpu.memory_space<vmem>>, %arg5: memref<1x64x16xf32, #tpu.memory_space<vmem>>) attributes {dimension_semantics = [#tpu.dimension_semantics<parallel>], iteration_bounds = array<i64: 2>, scalar_prefetch = 0 : i64, scratch_operands = 0 : i64, tpu.core_type = #tpu.core_type<tc>, window_params = [{transform_indices = @transform_0, window_bounds = array<i64: 1, 10, 10, 16>}, {pipeline_mode = #tpu.pipeline_mode<synchronous>, transform_indices = @transform_1, window_bounds = array<i64: 3, 3, 16, 16>}, {pipeline_mode = #tpu.pipeline_mode<synchronous>, transform_indices = @transform_2, window_bounds = array<i64: 1, 16>}, {transform_indices = @transform_3, window_bounds = array<i64: 1, 64, 16>}, {transform_indices = @transform_4, window_bounds = array<i64: 1, 64, 16>}]} {
    %cst = arith.constant 0.000000e+00 : f32
    %0 = vector.broadcast %cst : f32 to vector<64x16xf32>
    %c0 = arith.constant 0 : index
    %c0_0 = arith.constant 0 : index
    %c0_1 = arith.constant 0 : index
    %c0_2 = arith.constant 0 : index
    %1 = vector.load %arg1[%c0, %c0_0, %c0_1, %c0_2] : memref<1x10x10x16xbf16, #tpu.memory_space<vmem>>, vector<1x8x8x16xbf16>
    %2 = vector.shape_cast %1 : vector<1x8x8x16xbf16> to vector<8x8x16xbf16>
    %3 = vector.shape_cast %2 : vector<8x8x16xbf16> to vector<64x16xbf16>
    %c0_3 = arith.constant 0 : index
    %c0_4 = arith.constant 0 : index
    %c0_5 = arith.constant 0 : index
    %c0_6 = arith.constant 0 : index
    %4 = vector.load %arg2[%c0_3, %c0_4, %c0_5, %c0_6] : memref<3x3x16x16xbf16, #tpu.memory_space<vmem>>, vector<1x1x16x16xbf16>
    %5 = vector.shape_cast %4 : vector<1x1x16x16xbf16> to vector<16x16xbf16>
    %cst_7 = arith.constant dense<0.000000e+00> : vector<64x16xf32>
    %6 = tpu.matmul %3, %5, %cst_7 {dimension_numbers = #tpu.dot_dimension_numbers<[1], [0], [0], [1], [0, 0, 1, 1], [], []>} : vector<64x16xbf16>, vector<16x16xbf16>, vector<64x16xf32> -> vector<64x16xf32>
    %7 = arith.addf %0, %6 : vector<64x16xf32>
    %c0_8 = arith.constant 0 : index
    %c0_9 = arith.constant 0 : index
    %c1 = arith.constant 1 : index
    %c0_10 = arith.constant 0 : index
    %8 = vector.load %arg1[%c0_8, %c0_9, %c1, %c0_10] : memref<1x10x10x16xbf16, #tpu.memory_space<vmem>>, vector<1x8x8x16xbf16>
    %9 = vector.shape_cast %8 : vector<1x8x8x16xbf16> to vector<8x8x16xbf16>
    %10 = vector.shape_cast %9 : vector<8x8x16xbf16> to vector<64x16xbf16>
    %c0_11 = arith.constant 0 : index
    %c1_12 = arith.constant 1 : index
    %c0_13 = arith.constant 0 : index
    %c0_14 = arith.constant 0 : index
    %11 = vector.load %arg2[%c0_11, %c1_12, %c0_13, %c0_14] : memref<3x3x16x16xbf16, #tpu.memory_space<vmem>>, vector<1x1x16x16xbf16>
    %12 = vector.shape_cast %11 : vector<1x1x16x16xbf16> to vector<16x16xbf16>
    %cst_15 = arith.constant dense<0.000000e+00> : vector<64x16xf32>
    %13 = tpu.matmul %10, %12, %cst_15 {dimension_numbers = #tpu.dot_dimension_numbers<[1], [0], [0], [1], [0, 0, 1, 1], [], []>} : vector<64x16xbf16>, vector<16x16xbf16>, vector<64x16xf32> -> vector<64x16xf32>
    %14 = arith.addf %7, %13 : vector<64x16xf32>
    %c0_16 = arith.constant 0 : index
    %c0_17 = arith.constant 0 : index
    %c2 = arith.constant 2 : index
    %c0_18 = arith.constant 0 : index
    %15 = vector.load %arg1[%c0_16, %c0_17, %c2, %c0_18] : memref<1x10x10x16xbf16, #tpu.memory_space<vmem>>, vector<1x8x8x16xbf16>
    %16 = vector.shape_cast %15 : vector<1x8x8x16xbf16> to vector<8x8x16xbf16>
    %17 = vector.shape_cast %16 : vector<8x8x16xbf16> to vector<64x16xbf16>
    %c0_19 = arith.constant 0 : index
    %c2_20 = arith.constant 2 : index
    %c0_21 = arith.constant 0 : index
    %c0_22 = arith.constant 0 : index
    %18 = vector.load %arg2[%c0_19, %c2_20, %c0_21, %c0_22] : memref<3x3x16x16xbf16, #tpu.memory_space<vmem>>, vector<1x1x16x16xbf16>
    %19 = vector.shape_cast %18 : vector<1x1x16x16xbf16> to vector<16x16xbf16>
    %cst_23 = arith.constant dense<0.000000e+00> : vector<64x16xf32>
    %20 = tpu.matmul %17, %19, %cst_23 {dimension_numbers = #tpu.dot_dimension_numbers<[1], [0], [0], [1], [0, 0, 1, 1], [], []>} : vector<64x16xbf16>, vector<16x16xbf16>, vector<64x16xf32> -> vector<64x16xf32>
    %21 = arith.addf %14, %20 : vector<64x16xf32>
    %c0_24 = arith.constant 0 : index
    %c1_25 = arith.constant 1 : index
    %c0_26 = arith.constant 0 : index
    %c0_27 = arith.constant 0 : index
    %22 = vector.load %arg1[%c0_24, %c1_25, %c0_26, %c0_27] : memref<1x10x10x16xbf16, #tpu.memory_space<vmem>>, vector<1x8x8x16xbf16>
    %23 = vector.shape_cast %22 : vector<1x8x8x16xbf16> to vector<8x8x16xbf16>
    %24 = vector.shape_cast %23 : vector<8x8x16xbf16> to vector<64x16xbf16>
    %c1_28 = arith.constant 1 : index
    %c0_29 = arith.constant 0 : index
    %c0_30 = arith.constant 0 : index
    %c0_31 = arith.constant 0 : index
    %25 = vector.load %arg2[%c1_28, %c0_29, %c0_30, %c0_31] : memref<3x3x16x16xbf16, #tpu.memory_space<vmem>>, vector<1x1x16x16xbf16>
    %26 = vector.shape_cast %25 : vector<1x1x16x16xbf16> to vector<16x16xbf16>
    %cst_32 = arith.constant dense<0.000000e+00> : vector<64x16xf32>
    %27 = tpu.matmul %24, %26, %cst_32 {dimension_numbers = #tpu.dot_dimension_numbers<[1], [0], [0], [1], [0, 0, 1, 1], [], []>} : vector<64x16xbf16>, vector<16x16xbf16>, vector<64x16xf32> -> vector<64x16xf32>
    %28 = arith.addf %21, %27 : vector<64x16xf32>
    %c0_33 = arith.constant 0 : index
    %c1_34 = arith.constant 1 : index
    %c1_35 = arith.constant 1 : index
    %c0_36 = arith.constant 0 : index
    %29 = vector.load %arg1[%c0_33, %c1_34, %c1_35, %c0_36] : memref<1x10x10x16xbf16, #tpu.memory_space<vmem>>, vector<1x8x8x16xbf16>
    %30 = vector.shape_cast %29 : vector<1x8x8x16xbf16> to vector<8x8x16xbf16>
    %31 = vector.shape_cast %30 : vector<8x8x16xbf16> to vector<64x16xbf16>
    %c1_37 = arith.constant 1 : index
    %c1_38 = arith.constant 1 : index
    %c0_39 = arith.constant 0 : index
    %c0_40 = arith.constant 0 : index
    %32 = vector.load %arg2[%c1_37, %c1_38, %c0_39, %c0_40] : memref<3x3x16x16xbf16, #tpu.memory_space<vmem>>, vector<1x1x16x16xbf16>
    %33 = vector.shape_cast %32 : vector<1x1x16x16xbf16> to vector<16x16xbf16>
    %cst_41 = arith.constant dense<0.000000e+00> : vector<64x16xf32>
    %34 = tpu.matmul %31, %33, %cst_41 {dimension_numbers = #tpu.dot_dimension_numbers<[1], [0], [0], [1], [0, 0, 1, 1], [], []>} : vector<64x16xbf16>, vector<16x16xbf16>, vector<64x16xf32> -> vector<64x16xf32>
    %35 = arith.addf %28, %34 : vector<64x16xf32>
    %c0_42 = arith.constant 0 : index
    %c1_43 = arith.constant 1 : index
    %c2_44 = arith.constant 2 : index
    %c0_45 = arith.constant 0 : index
    %36 = vector.load %arg1[%c0_42, %c1_43, %c2_44, %c0_45] : memref<1x10x10x16xbf16, #tpu.memory_space<vmem>>, vector<1x8x8x16xbf16>
    %37 = vector.shape_cast %36 : vector<1x8x8x16xbf16> to vector<8x8x16xbf16>
    %38 = vector.shape_cast %37 : vector<8x8x16xbf16> to vector<64x16xbf16>
    %c1_46 = arith.constant 1 : index
    %c2_47 = arith.constant 2 : index
    %c0_48 = arith.constant 0 : index
    %c0_49 = arith.constant 0 : index
    %39 = vector.load %arg2[%c1_46, %c2_47, %c0_48, %c0_49] : memref<3x3x16x16xbf16, #tpu.memory_space<vmem>>, vector<1x1x16x16xbf16>
    %40 = vector.shape_cast %39 : vector<1x1x16x16xbf16> to vector<16x16xbf16>
    %cst_50 = arith.constant dense<0.000000e+00> : vector<64x16xf32>
    %41 = tpu.matmul %38, %40, %cst_50 {dimension_numbers = #tpu.dot_dimension_numbers<[1], [0], [0], [1], [0, 0, 1, 1], [], []>} : vector<64x16xbf16>, vector<16x16xbf16>, vector<64x16xf32> -> vector<64x16xf32>
    %42 = arith.addf %35, %41 : vector<64x16xf32>
    %c0_51 = arith.constant 0 : index
    %c2_52 = arith.constant 2 : index
    %c0_53 = arith.constant 0 : index
    %c0_54 = arith.constant 0 : index
    %43 = vector.load %arg1[%c0_51, %c2_52, %c0_53, %c0_54] : memref<1x10x10x16xbf16, #tpu.memory_space<vmem>>, vector<1x8x8x16xbf16>
    %44 = vector.shape_cast %43 : vector<1x8x8x16xbf16> to vector<8x8x16xbf16>
    %45 = vector.shape_cast %44 : vector<8x8x16xbf16> to vector<64x16xbf16>
    %c2_55 = arith.constant 2 : index
    %c0_56 = arith.constant 0 : index
    %c0_57 = arith.constant 0 : index
    %c0_58 = arith.constant 0 : index
    %46 = vector.load %arg2[%c2_55, %c0_56, %c0_57, %c0_58] : memref<3x3x16x16xbf16, #tpu.memory_space<vmem>>, vector<1x1x16x16xbf16>
    %47 = vector.shape_cast %46 : vector<1x1x16x16xbf16> to vector<16x16xbf16>
    %cst_59 = arith.constant dense<0.000000e+00> : vector<64x16xf32>
    %48 = tpu.matmul %45, %47, %cst_59 {dimension_numbers = #tpu.dot_dimension_numbers<[1], [0], [0], [1], [0, 0, 1, 1], [], []>} : vector<64x16xbf16>, vector<16x16xbf16>, vector<64x16xf32> -> vector<64x16xf32>
    %49 = arith.addf %42, %48 : vector<64x16xf32>
    %c0_60 = arith.constant 0 : index
    %c2_61 = arith.constant 2 : index
    %c1_62 = arith.constant 1 : index
    %c0_63 = arith.constant 0 : index
    %50 = vector.load %arg1[%c0_60, %c2_61, %c1_62, %c0_63] : memref<1x10x10x16xbf16, #tpu.memory_space<vmem>>, vector<1x8x8x16xbf16>
    %51 = vector.shape_cast %50 : vector<1x8x8x16xbf16> to vector<8x8x16xbf16>
    %52 = vector.shape_cast %51 : vector<8x8x16xbf16> to vector<64x16xbf16>
    %c2_64 = arith.constant 2 : index
    %c1_65 = arith.constant 1 : index
    %c0_66 = arith.constant 0 : index
    %c0_67 = arith.constant 0 : index
    %53 = vector.load %arg2[%c2_64, %c1_65, %c0_66, %c0_67] : memref<3x3x16x16xbf16, #tpu.memory_space<vmem>>, vector<1x1x16x16xbf16>
    %54 = vector.shape_cast %53 : vector<1x1x16x16xbf16> to vector<16x16xbf16>
    %cst_68 = arith.constant dense<0.000000e+00> : vector<64x16xf32>
    %55 = tpu.matmul %52, %54, %cst_68 {dimension_numbers = #tpu.dot_dimension_numbers<[1], [0], [0], [1], [0, 0, 1, 1], [], []>} : vector<64x16xbf16>, vector<16x16xbf16>, vector<64x16xf32> -> vector<64x16xf32>
    %56 = arith.addf %49, %55 : vector<64x16xf32>
    %c0_69 = arith.constant 0 : index
    %c2_70 = arith.constant 2 : index
    %c2_71 = arith.constant 2 : index
    %c0_72 = arith.constant 0 : index
    %57 = vector.load %arg1[%c0_69, %c2_70, %c2_71, %c0_72] : memref<1x10x10x16xbf16, #tpu.memory_space<vmem>>, vector<1x8x8x16xbf16>
    %58 = vector.shape_cast %57 : vector<1x8x8x16xbf16> to vector<8x8x16xbf16>
    %59 = vector.shape_cast %58 : vector<8x8x16xbf16> to vector<64x16xbf16>
    %c2_73 = arith.constant 2 : index
    %c2_74 = arith.constant 2 : index
    %c0_75 = arith.constant 0 : index
    %c0_76 = arith.constant 0 : index
    %60 = vector.load %arg2[%c2_73, %c2_74, %c0_75, %c0_76] : memref<3x3x16x16xbf16, #tpu.memory_space<vmem>>, vector<1x1x16x16xbf16>
    %61 = vector.shape_cast %60 : vector<1x1x16x16xbf16> to vector<16x16xbf16>
    %cst_77 = arith.constant dense<0.000000e+00> : vector<64x16xf32>
    %62 = tpu.matmul %59, %61, %cst_77 {dimension_numbers = #tpu.dot_dimension_numbers<[1], [0], [0], [1], [0, 0, 1, 1], [], []>} : vector<64x16xbf16>, vector<16x16xbf16>, vector<64x16xf32> -> vector<64x16xf32>
    %63 = arith.addf %56, %62 : vector<64x16xf32>
    %c0_78 = arith.constant 0 : index
    %c0_79 = arith.constant 0 : index
    %64 = vector.load %arg3[%c0_78, %c0_79] : memref<1x16xf32, #tpu.memory_space<vmem>>, vector<1x16xf32>
    %65 = vector.broadcast %64 : vector<1x16xf32> to vector<64x16xf32>
    %66 = arith.addf %63, %65 : vector<64x16xf32>
    %cst_80 = arith.constant 0.000000e+00 : f32
    %67 = vector.broadcast %cst_80 : f32 to vector<64x16xf32>
    %68 = arith.cmpf oge, %66, %67 : vector<64x16xf32>
    %cst_81 = arith.constant 2.000000e-01 : f32
    %69 = vector.broadcast %cst_81 : f32 to vector<64x16xf32>
    %70 = arith.mulf %69, %66 : vector<64x16xf32>
    %71 = arith.select %68, %66, %70 : vector<64x16xi1>, vector<64x16xf32>
    %c0_82 = arith.constant 0 : index
    %c0_83 = arith.constant 0 : index
    %c0_84 = arith.constant 0 : index
    %72 = vector.load %arg4[%c0_82, %c0_83, %c0_84] : memref<1x64x16xf32, #tpu.memory_space<vmem>>, vector<1x64x16xf32>
    %73 = vector.shape_cast %72 : vector<1x64x16xf32> to vector<64x16xf32>
    %74 = arith.addf %71, %73 : vector<64x16xf32>
    %c0_85 = arith.constant 0 : index
    %c0_86 = arith.constant 0 : index
    %c0_87 = arith.constant 0 : index
    %75 = vector.load %arg5[%c0_85, %c0_86, %c0_87] : memref<1x64x16xf32, #tpu.memory_space<vmem>>, vector<1x64x16xf32>
    %76 = vector.shape_cast %75 : vector<1x64x16xf32> to vector<64x16xf32>
    %77 = vector.shape_cast %74 : vector<64x16xf32> to vector<1x64x16xf32>
    tpu.vector_store %arg5[%c0_85, %c0_86, %c0_87], %77 {strides = array<i32>} : memref<1x64x16xf32, #tpu.memory_space<vmem>>, vector<1x64x16xf32>,
    return
  }
  func.func @transform_0(%arg0: i32) -> (i32, i32, i32, i32) {
    %c0_i32 = arith.constant 0 : i32
    %c0_i32_0 = arith.constant 0 : i32
    %c0_i32_1 = arith.constant 0 : i32
    %c0_i32_2 = arith.constant 0 : i32
    return %arg0, %c0_i32, %c0_i32_0, %c0_i32_1 : i32, i32, i32, i32
  }
  func.func @transform_1(%arg0: i32) -> (i32, i32, i32, i32) {
    %c0_i32 = arith.constant 0 : i32
    %c0_i32_0 = arith.constant 0 : i32
    %c0_i32_1 = arith.constant 0 : i32
    %c0_i32_2 = arith.constant 0 : i32
    %c0_i32_3 = arith.constant 0 : i32
    return %c0_i32, %c0_i32_0, %c0_i32_1, %c0_i32_2 : i32, i32, i32, i32
  }
  func.func @transform_2(%arg0: i32) -> (i32, i32) {
    %c0_i32 = arith.constant 0 : i32
    %c0_i32_0 = arith.constant 0 : i32
    %c0_i32_1 = arith.constant 0 : i32
    return %c0_i32, %c0_i32_0 : i32, i32
  }
  func.func @transform_3(%arg0: i32) -> (i32, i32, i32) {
    %c0_i32 = arith.constant 0 : i32
    %c0_i32_0 = arith.constant 0 : i32
    %c0_i32_1 = arith.constant 0 : i32
    return %arg0, %c0_i32, %c0_i32_0 : i32, i32, i32
  }
  func.func @transform_4(%arg0: i32) -> (i32, i32, i32) {
    %c0_i32 = arith.constant 0 : i32
    %c0_i32_0 = arith.constant 0 : i32
    %c0_i32_1 = arith.constant 0 : i32
    return %arg0, %c0_i32, %c0_i32_0 : i32, i32, i32
  }
}

</mosaic_0001>

<bundles_post_ra>
// kernel: _lambda_.6
= control target key start
LH: loop header
LB: loop body
LE: loop exit
PB: predicated region body
PF: predicated region fallthrough
CT: control target
= control target key end

     0   :  { %s440_s12 = smov 0   ;;  %s471_s0 = inlined_call_operand.vmem [shape: bf16[128,16], index: 0, kind: input, shape index: {}]   ;;  %s472_s1 = inlined_call_operand.vmem [shape: bf16[16,48], index: 1, kind: input, shape index: {}]   ;;  %s473_s2 = inlined_call_operand.vmem [shape: f32[1,48], index: 2, kind: input, shape index: {}]   ;;  %s474_s3 = inlined_call_operand.vmem [shape: f32[128,48], index: 3, kind: output, shape index: {}]  }
   0x1 LB: > { %s361_s13 = sadd.s32 4294967295, %s418_s12   ;;  %p365_p0 = scmp.ge.s32.totalorder %s418_s12, 1  ;;  %s418_s12 = sphi %s440_s12, %s13_s12  }
   0x2   : > { %p138_p1 = scmp.lt.s32.totalorder %s418_s12, 3 }
   0x4   : > { %p139_p2 = pnand %p365_p0, %p138_p1 }
   0x5   : > { %v407_v0 = vld [vmem:[%s472_s1] sm:$0xff] (!%p139_p2)   ;;  %s366_s16 = sshll.u32 (!%p139_p2), %s361_s13, 3  ;;  %vm218_vm0 = vcmask (!%p139_p2), 130048   ;;  %vm296_vm1 = vcmask (!%p139_p2), 392192  }
   0x6   : > { %142 = sbr.rel (%p139_p2) target bundleno = 236 (0xec), region = 32  ;;  %p163_p3 = scmp.lt.s32.totalorder (!%p139_p2), %s366_s16, 15  ;;  %387 = vmatprep.subr.bf16.mxu0 (!%p139_p2), %v407_v0  ;;  %397 = vmatprep.subr.bf16.mxu1 (!%p139_p2), %v407_v0  ;;  %v370_v5 = vld [vmem:[%s473_s2] ss:$0 sm:$0xff] (!%p139_p2) }
   0x7   : > { %388 = vmatpush3.bf16.msra.mxu0 (!%p139_p2), %v407_v0  ;;  %398 = vmatpush3.bf16.msra.mxu1 (!%p139_p2), %v407_v0 }
   0xd   : > { %s476_s16 = smov (!%p163_p3, %s366_s16), 15 }
   0xe   : > { %s367_s17 = sshll.u32 %s476_s16, 2  ;;  %s369_s21 = sshll.u32 %s476_s16, 3 }
   0xf   : > { %s166_s20 = scalar_lea.vmem %s471_s0, %s367_s17  ;;  %s172_s26 = scalar_lea.vmem %s474_s3, %s369_s21 }
  0x10   : > { %v408_v1 = vld [vmem:[%s166_s20] sm:$0xff]   ;;  %v409_v2 = vld [vmem:[%s166_s20 + $0x10] sm:$0xff]   ;;  %v410_v3 = vld [vmem:[%s166_s20 + $0x8] sm:$0xff]  }
  0x11   : > { %389 = vmatprep.mubr.msk.bf16.mxu0 %vm218_vm0, %v408_v1  ;;  %393 = vmatprep.mubr.msk.bf16.mxu1 %vm218_vm0, %v409_v2  ;;  %v411_v4 = vld [vmem:[%s166_s20 + $0x18] sm:$0xff]  }
  0x12   : > { %390 = vmatmul.mubr.msk.bf16.vlgmr.msra.gmra.mrb[0].mxu0 %vm218_vm0, %v410_v3  ;;  %394 = vmatmul.mubr.msk.bf16.vlgmr.msra.gmra.mrb[0].mxu1 %vm218_vm0, %v411_v4 }
  0xe5   : > { %v391_v6 = vpop.f32.mrb[0].mxu0  ;;  %v395_v8 = vpop.f32.mrb[0].mxu1 }
  0xe6   : > { %v274_v7 = vadd.f32 %v391_v6, %v370_v5  ;;  %v265_v9 = vpop.f32.mrb[1].mxu0  ;;  %v290_v10 = vadd.f32 %v395_v8, %v370_v5  ;;  %v281_v12 = vpop.f32.mrb[1].mxu1 }
  0xe7   : > { %v266_v11 = vadd.f32 %v370_v5, %v265_v9  ;;  %v392_v13 = vpop.f32.mrb[2].mxu0  ;;  %v282_v14 = vadd.f32 %v370_v5, %v281_v12  ;;  %v396_v16 = vpop.f32.mrb[2].mxu1 }
  0xe8   : > { %299 = vst.msk [vmem:[%s172_s26 + $0x10] sm:$0xff] %vm296_vm1, %v274_v7  ;;  %v277_v15 = vadd.f32 %v392_v13, %v370_v5  ;;  %v268_v17 = vpop.f32.mrb[3].mxu0  ;;  %303 = vst.msk [vmem:[%s172_s26 + $0x30] sm:$0xff] %vm296_vm1, %v290_v10  ;;  %v293_v18 = vadd.f32 %v396_v16, %v370_v5  ;;  %v284_v20 = vpop.f32.mrb[3].mxu1 }
  0xe9   : > { %297 = vst.msk [vmem:[%s172_s26] sm:$0xff] %vm296_vm1, %v266_v11  ;;  %v269_v19 = vadd.f32 %v370_v5, %v268_v17  ;;  %301 = vst.msk [vmem:[%s172_s26 + $0x20] sm:$0xff] %vm296_vm1, %v282_v14  ;;  %v285_v21 = vadd.f32 %v370_v5, %v284_v20 }
  0xea   : > { %300 = vst.msk [vmem:[%s172_s26 + $0x18] sm:$0xff] %vm296_vm1, %v277_v15  ;;  %304 = vst.msk [vmem:[%s172_s26 + $0x38] sm:$0xff] %vm296_vm1, %v293_v18 }
  0xeb   : > { %298 = vst.msk [vmem:[%s172_s26 + $0x8] sm:$0xff] %vm296_vm1, %v269_v19  ;;  %302 = vst.msk [vmem:[%s172_s26 + $0x28] sm:$0xff] %vm296_vm1, %v285_v21 }
  0xec PF: > { %s13_s12 = sadd.s32 1, %s418_s12  }
  0xed   : > { %p10_p4 = scmp.ge.s32.totalorder %s13_s12, 4  }
  0xef   :  { %12 = sbr.rel (!%p10_p4) target bundleno = 1 (0x1), region = 62 }

// kernel: _lambda_.8
= control target key start
LH: loop header
LB: loop body
LE: loop exit
PB: predicated region body
PF: predicated region fallthrough
CT: control target
= control target key end

     0   :  { %s522_s12 = smov 0   ;;  %s563_s0 = inlined_call_operand.vmem [shape: bf16[2,16,32], index: 0, kind: input, shape index: {}]   ;;  %s564_s1 = inlined_call_operand.vmem [shape: bf16[2,16,32], index: 1, kind: input, shape index: {}]   ;;  %s565_s2 = inlined_call_operand.vmem [shape: bf16[2,16,32], index: 2, kind: input, shape index: {}]   ;;  %s566_s3 = inlined_call_operand.vmem [shape: f32[2,16,32], index: 3, kind: output, shape index: {}]  }
   0x1 LB: > { %s431_s13 = sadd.s32 4294967295, %s498_s12   ;;  %p435_p0 = scmp.ge.s32.totalorder %s498_s12, 1  ;;  %s498_s12 = sphi %s522_s12, %s13_s12  }
   0x2   : > { %p157_p1 = scmp.lt.s32.totalorder %s498_s12, 3 }
   0x4   : > { %p158_p2 = pnand %p435_p0, %p157_p1 }
   0x5   : > { %p191_p3 = scmp.lt.s32.totalorder (!%p158_p2), %s431_s13, 1  ;;  %v500_v0 = vmov (!%p158_p2), 0.0   ;;  %vm501_vm0 = vmmov (!%p158_p2), 0   ;;  %vm228_vm1 = vcmask (!%p158_p2), 261120   ;;  %vm276_vm2 = vcmask (!%p158_p2), 130048  }
   0x6   : > { %161 = sbr.rel (%p158_p2) target bundleno = 772 (0x304), region = 32  ;;  %459 = vmatprep.subr.bf16.mxu0 (!%p158_p2), %v500_v0  ;;  %461 = vmatprep.mubr.msk.bf16.mxu0 (!%p158_p2), %vm501_vm0, %v500_v0 }
   0x7   : > { %465 = vmatprep.subr.bf16.mxu1 (!%p158_p2), %v500_v0  ;;  %467 = vmatprep.mubr.msk.bf16.mxu1 (!%p158_p2), %vm501_vm0, %v500_v0 }
   0xd   : > { %s568_s13 = smov (!%p191_p3, %s431_s13), 1 }
   0xe   : > { %s533_s14 = sshll.u32 %s568_s13, 3  ;;  %s454_s24 = sshll.u32 %s568_s13, 4 }
   0xf   : > { %s200_s17 = scalar_lea.vmem %s564_s1, %s533_s14  ;;  %s195_s20 = scalar_lea.vmem %s563_s0, %s533_s14 }
  0x10   : > { %v481_v1 = vld [vmem:[%s200_s17] sm:$0xff]   ;;  %s205_s23 = scalar_lea.vmem %s565_s2, %s533_s14  ;;  %s210_s27 = scalar_lea.vmem %s566_s3, %s454_s24 }
  0x11   : > { %v233_v2 = vsel %vm228_vm1, %v481_v1, 0  ;;  %v482_v3 = vld [vmem:[%s195_s20] sm:$0xff]  }
  0x12   : > { %460 = vmatpush3.bf16.xpose.msra.mxu0 %v233_v2  ;;  %v483_v20 = vld [vmem:[%s205_s23] sm:$0xff]  }
  0x13   : > { %466 = vmatpush3.bf16.msra.mxu1 %v483_v20 }
  0x19   : > { %462 = vmatmul.mubr.msk.bf16.vlgmr.msra.gmra.mrb[0].mxu0 %vm228_vm1, %v482_v3 }
  0xec   : > { %v269_v4 = vpop.f32.mrb[0].mxu0 }
  0xed   : > { %v463_v5 = vpop.f32.mrb[1].mxu0  ;;  %v277_v6 = vsel %vm276_vm2, %v269_v4, -inf }
  0xee   : > { %278 = vmax.xlane.f32.xlu0 %v277_v6  ;;  %v272_v7 = vpop.f32.mrb[2].mxu0 }
  0xef   : > { %v464_v8 = vpop.f32.mrb[3].mxu0  ;;  %v280_v9 = vsel %vm276_vm2, %v272_v7, -inf }
  0xf2   : > { %281 = vmax.xlane.f32.xlu0 %v280_v9 }
 0x17b   : > { %v279_v10 = vpop.xlane.xlu0 %278 }
 0x17c   : > { %v283_v11 = vsub.f32 %v269_v4, %v279_v10 }
 0x17e   : > { %v285_v12 = vmul.f32 1.442695, %v283_v11 }
 0x17f   : > { %v282_v13 = vpop.xlane.xlu0 %281 }
 0x180   : > { %484 = vpow2.f32 %v285_v12  ;;  %v284_v14 = vsub.f32 %v272_v7, %v282_v13 }
 0x182   : > { %v287_v15 = vmul.f32 1.442695, %v284_v14 }
 0x184   : > { %486 = vpow2.f32 %v287_v15 }
 0x18a   : > { %v485_v16 = vpop.eup %484 }
 0x18b   : > { %v289_v17 = vsel %vm276_vm2, %v485_v16, 0.0 }
 0x18c   : > { %290 = vadd.xlane.f32.xlu1 %v289_v17 }
 0x18e   : > { %v487_v18 = vpop.eup %486 }
 0x18f   : > { %v292_v19 = vsel %vm276_vm2, %v487_v18, 0.0 }
 0x190   : > { %293 = vadd.xlane.f32.xlu1 %v292_v19 }
 0x219   : > { %v291_v21 = vpop.xlane.xlu1 %290 }
 0x21a   : > { %488 = vrcp.f32 %v291_v21 }
 0x21d   : > { %v294_v22 = vpop.xlane.xlu1 %293 }
 0x21e   : > { %490 = vrcp.f32 %v294_v22 }
 0x224   : > { %v489_v23 = vpop.eup %488 }
 0x225   : > { %v297_v25 = vmul.f32 %v489_v23, %v485_v16 }
 0x228   : > { %v491_v24 = vpop.eup %490 }
 0x229   : > { %v298_v26 = vmul.f32 %v491_v24, %v487_v18 }
 0x22b   : > { %v299_v27 = vpack.c.bf16 %v298_v26, %v297_v25 }
 0x22d   : > { %468 = vmatmul.mubr.msk.bf16.vlgmr.msra.gmra.mrb[0].mxu1 %vm276_vm2, %v299_v27 }
 0x300   : > { %v343_v28 = vpop.f32.mrb[0].mxu1 }
 0x301   : > { %350 = vst.msk [vmem:[%s210_s27] sm:$0xff] %vm228_vm1, %v343_v28  ;;  %v469_v29 = vpop.f32.mrb[1].mxu1 }
 0x302   : > { %v346_v30 = vpop.f32.mrb[2].mxu1 }
 0x303   : > { %351 = vst.msk [vmem:[%s210_s27 + $0x8] sm:$0xff] %vm228_vm1, %v346_v30  ;;  %v470_v31 = vpop.f32.mrb[3].mxu1 }
 0x304 PF: > { %s13_s12 = sadd.s32 1, %s498_s12  }
 0x305   : > { %p10_p4 = scmp.ge.s32.totalorder %s13_s12, 4  }
 0x307   :  { %12 = sbr.rel (!%p10_p4) target bundleno = 1 (0x1), region = 68 }

// kernel: _lambda_.7
= control target key start
LH: loop header
LB: loop body
LE: loop exit
PB: predicated region body
PF: predicated region fallthrough
CT: control target
= control target key end

     0   :  { %s455_s12 = smov 0   ;;  %s482_s0 = inlined_call_operand.vmem [shape: bf16[2,4,128], index: 0, kind: input, shape index: {}]   ;;  %s483_s1 = inlined_call_operand.vmem [shape: bf16[2,4,128], index: 1, kind: input, shape index: {}]   ;;  %s484_s2 = inlined_call_operand.vmem [shape: bf16[2,4,128], index: 2, kind: input, shape index: {}]   ;;  %s485_s3 = inlined_call_operand.vmem [shape: f32[2,4,128], index: 3, kind: output, shape index: {}]  }
   0x1 LB: > { %s383_s13 = sadd.s32 4294967295, %s431_s12   ;;  %p387_p0 = scmp.ge.s32.totalorder %s431_s12, 1  ;;  %s431_s12 = sphi %s455_s12, %s13_s12  }
   0x2   : > { %p154_p1 = scmp.lt.s32.totalorder %s431_s12, 3 }
   0x4   : > { %p155_p2 = pnand %p387_p0, %p154_p1 }
   0x5   : > { %p184_p3 = scmp.lt.s32.totalorder (!%p155_p2), %s383_s13, 1  ;;  %v433_v0 = vmov (!%p155_p2), 0.0   ;;  %vm434_vm0 = vmmov (!%p155_p2), 0   ;;  %vm244_vm1 = vcmask (!%p155_p2), 27648   ;;  %vm261_vm2 = vcmask (!%p155_p2), 1041408  }
   0x6   : > { %158 = sbr.rel (%p155_p2) target bundleno = 767 (0x2ff), region = 32  ;;  %399 = vmatprep.subr.bf16.mxu0 (!%p155_p2), %v433_v0  ;;  %401 = vmatprep.mubr.msk.bf16.mxu0 (!%p155_p2), %vm434_vm0, %v433_v0  ;;  %vm257_vm3 = vcmask (!%p155_p2), 31744  }
   0x7   : > { %405 = vmatprep.subr.bf16.mxu1 (!%p155_p2), %v433_v0  ;;  %407 = vmatprep.mubr.msk.bf16.mxu1 (!%p155_p2), %vm434_vm0, %v433_v0 }
   0xd   : > { %s487_s13 = smov (!%p184_p3, %s383_s13), 1 }
   0xe   : > { %s388_s14 = sshll.u32 %s487_s13, 1  ;;  %s391_s24 = sshll.u32 %s487_s13, 2 }
   0xf   : > { %s191_s17 = scalar_lea.vmem %s483_s1, %s388_s14  ;;  %s187_s20 = scalar_lea.vmem %s482_s0, %s388_s14 }
  0x10   : > { %v202_v1 = vld [vmem:[%s191_s17] sm:$0x3]  ;;  %s195_s23 = scalar_lea.vmem %s484_s2, %s388_s14  ;;  %s199_s27 = scalar_lea.vmem %s485_s3, %s391_s24 }
  0x11   : > { %400 = vmatpush3.bf16.xpose.msra.mxu0 %v202_v1  ;;  %v201_v2 = vld [vmem:[%s187_s20] sm:$0x3] }
  0x12   : > { %v203_v13 = vld [vmem:[%s195_s23] sm:$0x3] }
  0x13   : > { %v263_v14 = vsel %vm261_vm2, %v203_v13, 0 }
  0x14   : > { %406 = vmatpush3.bf16.msra.mxu1 %v263_v14 }
  0x18   : > { %402 = vmatmul.mubr.bf16.vlgmr.msra.gmra.mrb[0].mxu0 %v201_v2 }
  0xeb   : > { %v238_v3 = vpop.f32.mrb[0].mxu0 }
  0xec   : > { %v403_v4 = vpop.f32.mrb[1].mxu0  ;;  %v245_v5 = vsel %vm244_vm1, %v238_v3, -inf }
  0xed   : > { %246 = vmax.xlane.f32.xlu0 %v245_v5  ;;  %v241_v6 = vpop.f32.mrb[2].mxu0 }
  0xee   : > { %v404_v7 = vpop.f32.mrb[3].mxu0 }
 0x17a   : > { %v247_v8 = vpop.xlane.xlu0 %246 }
 0x17b   : > { %v248_v9 = vsub.f32 %v238_v3, %v247_v8 }
 0x17d   : > { %v249_v10 = vmul.f32 1.442695, %v248_v9 }
 0x17f   : > { %421 = vpow2.f32 %v249_v10 }
 0x189   : > { %v422_v11 = vpop.eup %421 }
 0x18a   : > { %v251_v12 = vsel %vm244_vm1, %v422_v11, 0.0 }
 0x18b   : > { %252 = vadd.xlane.f32.xlu0 %v251_v12 }
 0x218   : > { %v253_v15 = vpop.xlane.xlu0 %252 }
 0x219   : > { %423 = vrcp.f32 %v253_v15 }
 0x223   : > { %v424_v16 = vpop.eup %423 }
 0x224   : > { %v255_v17 = vmul.f32 %v424_v16, %v422_v11 }
 0x226   : > { %v256_v18 = vpack.c.bf16 %v255_v17, %v255_v17 }
 0x228   : > { %408 = vmatmul.mubr.msk.bf16.vlgmr.msra.gmra.mrb[0].mxu1 %vm257_vm3, %v256_v18 }
 0x2fb   : > { %v299_v19 = vpop.f32.mrb[0].mxu1 }
 0x2fc   : > { %305 = vst [vmem:[%s199_s27] sm:$0xf] %v299_v19  ;;  %v409_v20 = vpop.f32.mrb[1].mxu1 }
 0x2fd   : > { %v302_v21 = vpop.f32.mrb[2].mxu1 }
 0x2fe   : > { %v410_v22 = vpop.f32.mrb[3].mxu1 }
 0x2ff PF: > { %s13_s12 = sadd.s32 1, %s431_s12  }
 0x300   : > { %p10_p4 = scmp.ge.s32.totalorder %s13_s12, 4  }
 0x302   :  { %12 = sbr.rel (!%p10_p4) target bundleno = 1 (0x1), region = 68 }

// kernel: _lambda_.10
= control target key start
LH: loop header
LB: loop body
LE: loop exit
PB: predicated region body
PF: predicated region fallthrough
CT: control target
= control target key end

     0   :  { %s2148_s12 = smov 0   ;;  %s2503_s0 = inlined_call_operand.vmem [shape: bf16[2,12,12,16], index: 0, kind: input, shape index: {}]   ;;  %s2504_s1 = inlined_call_operand.vmem [shape: bf16[3,3,16,16], index: 1, kind: input, shape index: {}]   ;;  %s2505_s2 = inlined_call_operand.vmem [shape: f32[1,16], index: 2, kind: input, shape index: {}]   ;;  %s2506_s3 = inlined_call_operand.vmem [shape: f32[2,64,16], index: 3, kind: output, shape index: {}]  }
   0x1 LB: > { %s1652_s13 = sadd.s32 4294967295, %s2126_s12   ;;  %p1656_p0 = scmp.ge.s32.totalorder %s2126_s12, 1  ;;  %s2126_s12 = sphi %s2148_s12, %s13_s12  }
   0x2   : > { %p137_p1 = scmp.lt.s32.totalorder %s2126_s12, 3 }
   0x4   : > { %p138_p2 = pnand %p1656_p0, %p137_p1 }
   0x5   : > { %v2099_v0 = vld [vmem:[%s2504_s1 + $0x8] sm:$0xff] (!%p138_p2)   ;;  %p161_p3 = scmp.lt.s32.totalorder (!%p138_p2), %s1652_s13, 1  ;;  %v2162_v1 = vld [vmem:[%s2504_s1 + $0x20] sm:$0xff] (!%p138_p2)   ;;  %vm214_vm0 = vcmask (!%p138_p2), 1042432   ;;  %vm215_vm1 = vcmask (!%p138_p2), 1046532   ;;  %vm270_vm3 = vcmask (!%p138_p2), 130048  }
   0x6   : > { %141 = sbr.rel (%p138_p2) target bundleno = 321 (0x141), region = 32  ;;  %1934 = vmatprep.subr.bf16.mxu1 (!%p138_p2), %v2099_v0  ;;  %v2169_v2 = vld [vmem:[%s2504_s1] sm:$0xff] (!%p138_p2)   ;;  %1974 = vmatprep.subr.bf16.mxu0 (!%p138_p2), %v2162_v1  ;;  %v2178_v3 = vld [vmem:[%s2504_s1 + $0x28] sm:$0xff] (!%p138_p2)   ;;  %vm2185_vm2 = vmor (!%p138_p2), %vm214_vm0, %vm215_vm1  ;;  %vm483_vm4 = vcmask (!%p138_p2), 1041408   ;;  %vm484_vm5 = vcmask (!%p138_p2), 1045508  }
   0x7   : > { %1935 = vmatpush3.bf16.msra.mxu1 (!%p138_p2), %v2099_v0  ;;  %1975 = vmatpush3.bf16.msra.mxu0 (!%p138_p2), %v2162_v1  ;;  %v2220_v42 = vld [vmem:[%s2504_s1 + $0x10] sm:$0xff] (!%p138_p2)   ;;  %vm2250_vm6 = vmor (!%p138_p2), %vm483_vm4, %vm484_vm5 }
   0x8   : > { %1944 = vmatprep.subr.bf16.mxu1 (!%p138_p2), %v2169_v2  ;;  %1984 = vmatprep.subr.bf16.mxu0 (!%p138_p2), %v2178_v3  ;;  %v2234_v54 = vld [vmem:[%s2504_s1 + $0x30] sm:$0xff] (!%p138_p2)  }
   0xd   : > { %s2512_s13 = smov (!%p161_p3, %s1652_s13), 1 }
   0xe   : > { %s2090_s20 = smul.u32 96, %s2512_s13  ;;  %s1888_s11 = sshll.u32 %s2512_s13, 6 }
   0xf   : > { %s2482_s16 = scalar_lea.vmem %s2506_s3, %s1888_s11 }
  0x10   : > { %s2183_s25 = scalar_lea.vmem %s2503_s0, %s2090_s20 }
  0x11   : > { %v182_v5 = vld [vmem:[%s2183_s25] sm:$0xe]  ;;  %v183_v6 = vld [vmem:[%s2183_s25 + $0x4] sm:$0x1]  ;;  %v184_v7 = vld [vmem:[%s2183_s25 + $0x8] sm:$0xe] }
  0x12   : > { %v185_v8 = vld [vmem:[%s2183_s25 + $0xc] sm:$0x1]  ;;  %v1660_v9 = vrot.slane %v182_v5, 9  ;;  %v219_v10 = vrot.slane %v183_v6, 5  ;;  %v1661_v11 = vrot.slane %v184_v7, 9 }
  0x13   : > { %v223_v12 = vrot.slane %v185_v8, 5  ;;  %v1726_v13 = vld [vmem:[%s2183_s25 + $0x10] sm:$0xe]  ;;  %v1727_v14 = vld [vmem:[%s2183_s25 + $0x14] sm:$0x1] }
  0x14   : > { %v220_v15 = vsel %vm2185_vm2, %v1660_v9, %v219_v10  ;;  %v1728_v16 = vld [vmem:[%s2183_s25 + $0x18] sm:$0xe]  ;;  %v1729_v17 = vld [vmem:[%s2183_s25 + $0x1c] sm:$0x1]  ;;  %v1742_v18 = vrot.slane %v1726_v13, 9  ;;  %v781_v19 = vrot.slane %v1727_v14, 5 }
  0x15   : > { %v224_v20 = vsel %vm2185_vm2, %v1661_v11, %v223_v12  ;;  %v1743_v21 = vrot.slane %v1728_v16, 9  ;;  %v785_v22 = vrot.slane %v1729_v17, 5  ;;  %v186_v23 = vld [vmem:[%s2183_s25 + $0x10] sm:$0xe]  ;;  %v187_v24 = vld [vmem:[%s2183_s25 + $0x14] sm:$0x1] }
  0x16   : > { %v1670_v25 = vcombine.low %v220_v15, %v224_v20  ;;  %v782_v26 = vsel %vm2185_vm2, %v1742_v18, %v781_v19  ;;  %v188_v27 = vld [vmem:[%s2183_s25 + $0x18] sm:$0xe]  ;;  %v189_v28 = vld [vmem:[%s2183_s25 + $0x1c] sm:$0x1]  ;;  %v1662_v29 = vrot.slane %v186_v23, 9  ;;  %v227_v30 = vrot.slane %v187_v24, 5 }
  0x17   : > { %v786_v31 = vsel %vm2185_vm2, %v1743_v21, %v785_v22  ;;  %v1663_v32 = vrot.slane %v188_v27, 9  ;;  %v231_v33 = vrot.slane %v189_v28, 5  ;;  %v1730_v34 = vld [vmem:[%s2183_s25 + $0x20] sm:$0xe]  ;;  %v1731_v35 = vld [vmem:[%s2183_s25 + $0x24] sm:$0x1] }
  0x18   : > { %1936 = vmatprep.mubr.msk.bf16.mxu1 %vm270_vm3, %v1670_v25  ;;  %v1752_v36 = vcombine.low %v782_v26, %v786_v31  ;;  %v228_v37 = vsel %vm2185_vm2, %v1662_v29, %v227_v30  ;;  %v1732_v38 = vld [vmem:[%s2183_s25 + $0x28] sm:$0xe]  ;;  %v1733_v39 = vld [vmem:[%s2183_s25 + $0x2c] sm:$0x1]  ;;  %v1744_v40 = vrot.slane %v1730_v34, 9  ;;  %v789_v41 = vrot.slane %v1731_v35, 5 }
  0x19   : > { %v232_v43 = vsel %vm2185_vm2, %v1663_v32, %v231_v33  ;;  %v1745_v44 = vrot.slane %v1732_v38, 9  ;;  %v793_v45 = vrot.slane %v1733_v39, 5  ;;  %v190_v46 = vld [vmem:[%s2183_s25 + $0x20] sm:$0xe]  ;;  %v191_v47 = vld [vmem:[%s2183_s25 + $0x24] sm:$0x1] }
  0x1a   : > { %1976 = vmatprep.mubr.msk.bf16.mxu0 %vm270_vm3, %v1752_v36  ;;  %v1671_v48 = vcombine.low %v228_v37, %v232_v43  ;;  %v790_v49 = vsel %vm2185_vm2, %v1744_v40, %v789_v41  ;;  %v192_v50 = vld [vmem:[%s2183_s25 + $0x28] sm:$0xe]  ;;  %v193_v51 = vld [vmem:[%s2183_s25 + $0x2c] sm:$0x1]  ;;  %v1664_v52 = vrot.slane %v190_v46, 9  ;;  %v235_v53 = vrot.slane %v191_v47, 5 }
  0x1b   : > { %v794_v55 = vsel %vm2185_vm2, %v1745_v44, %v793_v45  ;;  %v1665_v56 = vrot.slane %v192_v50, 9  ;;  %v239_v57 = vrot.slane %v193_v51, 5  ;;  %v194_v58 = vld [vmem:[%s2183_s25 + $0x30] sm:$0xe]  ;;  %v195_v59 = vld [vmem:[%s2183_s25 + $0x34] sm:$0x1] }
  0x1c   : > { %1937 = vmatmul.mubr.msk.bf16.vlgmr.msra.gmra.mrb[0].mxu1 %vm270_vm3, %v1671_v48  ;;  %v1753_v60 = vcombine.low %v790_v49, %v794_v55  ;;  %v236_v61 = vsel %vm2185_vm2, %v1664_v52, %v235_v53  ;;  %v196_v62 = vld [vmem:[%s2183_s25 + $0x38] sm:$0xe]  ;;  %v197_v63 = vld [vmem:[%s2183_s25 + $0x3c] sm:$0x1]  ;;  %v1666_v0 = vrot.slane %v194_v58, 9  ;;  %v243_v5 = vrot.slane %v195_v59, 5 }
  0x1d   : > { %1945 = vmatpush3.bf16.msra.mxu1 %v2169_v2  ;;  %v240_v6 = vsel %vm2185_vm2, %v1665_v56, %v239_v57  ;;  %v1667_v7 = vrot.slane %v196_v62, 9  ;;  %v247_v8 = vrot.slane %v197_v63, 5  ;;  %v1761_v10 = vld [vmem:[%s2183_s25 + $0x10] sm:$0xc]  ;;  %v1762_v11 = vld [vmem:[%s2183_s25 + $0x14] sm:$0x3] }
  0x1e   : > { %1977 = vmatmul.mubr.msk.bf16.vlgmr.msra.gmra.mrb[0].mxu0 %vm270_vm3, %v1753_v60  ;;  %v1672_v12 = vcombine.low %v236_v61, %v240_v6  ;;  %v244_v2 = vsel %vm2185_vm2, %v1666_v0, %v243_v5  ;;  %v1763_v13 = vld [vmem:[%s2183_s25 + $0x18] sm:$0xc]  ;;  %v1764_v14 = vld [vmem:[%s2183_s25 + $0x1c] sm:$0x3]  ;;  %v1777_v15 = vrot.slane %v1761_v10, 10  ;;  %v951_v16 = vrot.slane %v1762_v11, 6  ;;  %1954 = vmatprep.subr.bf16.mxu1 %v2220_v42 }
  0x1f   : > { %1985 = vmatpush3.bf16.msra.mxu0 %v2178_v3  ;;  %v248_v17 = vsel %vm2185_vm2, %v1667_v7, %v247_v8  ;;  %v1778_v18 = vrot.slane %v1763_v13, 10  ;;  %v955_v19 = vrot.slane %v1764_v14, 6  ;;  %v1765_v20 = vld [vmem:[%s2183_s25 + $0x20] sm:$0xc]  ;;  %v1766_v21 = vld [vmem:[%s2183_s25 + $0x24] sm:$0x3] }
  0x20   : > { %1940 = vmatprep.mubr.msk.bf16.mxu1 %vm270_vm3, %v1672_v12  ;;  %v1673_v22 = vcombine.low %v244_v2, %v248_v17  ;;  %v952_v23 = vsel %vm2250_vm6, %v1777_v15, %v951_v16  ;;  %1994 = vmatprep.subr.bf16.mxu0 %v2234_v54  ;;  %v1767_v3 = vld [vmem:[%s2183_s25 + $0x28] sm:$0xc]  ;;  %v1768_v24 = vld [vmem:[%s2183_s25 + $0x2c] sm:$0x3]  ;;  %v1779_v25 = vrot.slane %v1765_v20, 10  ;;  %v959_v26 = vrot.slane %v1766_v21, 6 }
  0x21   : > { %v956_v27 = vsel %vm2250_vm6, %v1778_v18, %v955_v19  ;;  %v1780_v28 = vrot.slane %v1767_v3, 10  ;;  %v963_v29 = vrot.slane %v1768_v24, 6  ;;  %v2104_v31 = vld [vmem:[%s2183_s25] ss:$8 sps:$4 sm:$0xff]   ;;  %v1769_v34 = vld [vmem:[%s2183_s25 + $0x30] sm:$0xc] }
  0x22   : > { %v1787_v30 = vcombine.low %v952_v23, %v956_v27  ;;  %v960_v32 = vsel %vm2250_vm6, %v1779_v25, %v959_v26  ;;  %v1770_v35 = vld [vmem:[%s2183_s25 + $0x34] sm:$0x3]  ;;  %v1771_v36 = vld [vmem:[%s2183_s25 + $0x38] sm:$0xc]  ;;  %v1772_v37 = vld [vmem:[%s2183_s25 + $0x3c] sm:$0x3] }
  0x23   : > { %v964_v33 = vsel %vm2250_vm6, %v1780_v28, %v963_v29  ;;  %v1781_v38 = vrot.slane %v1769_v34, 10  ;;  %v967_v39 = vrot.slane %v1770_v35, 6  ;;  %v1782_v40 = vrot.slane %v1771_v36, 10  ;;  %v1773_v43 = vld [vmem:[%s2183_s25 + $0x40] sm:$0xc]  ;;  %v2296_v51 = vld [vmem:[%s2504_s1 + $0x38] sm:$0xff]  }
  0x24   : > { %1941 = vmatmul.mubr.msk.bf16.gmra.mrb[4].mxu1 %vm270_vm3, %v1673_v22  ;;  %1986 = vmatprep.mubr.msk.bf16.mxu0 %vm270_vm3, %v1787_v30  ;;  %v971_v41 = vrot.slane %v1772_v37, 6  ;;  %v1774_v44 = vld [vmem:[%s2183_s25 + $0x44] sm:$0x3]  ;;  %v1788_v45 = vcombine.low %v960_v32, %v964_v33  ;;  %v1775_v47 = vld [vmem:[%s2183_s25 + $0x48] sm:$0xc]  ;;  %v1783_v49 = vrot.slane %v1773_v43, 10 }
  0x25   : > { %1946 = vmatprep.mubr.msk.bf16.mxu1 %vm270_vm3, %v2104_v31  ;;  %v968_v46 = vsel %vm2250_vm6, %v1781_v38, %v967_v39  ;;  %v1776_v48 = vld [vmem:[%s2183_s25 + $0x4c] sm:$0x3]  ;;  %v975_v50 = vrot.slane %v1774_v44, 6  ;;  %v1784_v53 = vrot.slane %v1775_v47, 10  ;;  %v2106_v56 = vld [vmem:[%s2183_s25 + $0x10] ss:$8 sps:$4 sm:$0xff]  }
  0x26   : > { %v972_v52 = vsel %vm2250_vm6, %v1782_v40, %v971_v41  ;;  %v979_v55 = vrot.slane %v1776_v48, 6  ;;  %v2107_v58 = vld [vmem:[%s2183_s25 + $0x20] ss:$8 sps:$4 sm:$0xff]   ;;  %v2306_v59 = vld [vmem:[%s2504_s1 + $0x18] sm:$0xff]   ;;  %v452_v63 = vld [vmem:[%s2183_s25 + $0x4] sm:$0x3] }
  0x27   : > { %v1789_v57 = vcombine.low %v968_v46, %v972_v52  ;;  %v976_v60 = vsel %vm2250_vm6, %v1783_v49, %v975_v50  ;;  %v451_v62 = vld [vmem:[%s2183_s25] sm:$0xc]  ;;  %v453_v0 = vld [vmem:[%s2183_s25 + $0x8] sm:$0xc]  ;;  %v454_v5 = vld [vmem:[%s2183_s25 + $0xc] sm:$0x3] }
  0x28   : > { %v980_v61 = vsel %vm2250_vm6, %v1784_v53, %v979_v55  ;;  %v1688_v6 = vrot.slane %v451_v62, 10  ;;  %v488_v7 = vrot.slane %v452_v63, 6  ;;  %v1689_v8 = vrot.slane %v453_v0, 10  ;;  %v455_v2 = vld [vmem:[%s2183_s25 + $0x10] sm:$0xc]  ;;  %v2356_v40 = vld [vmem:[%s2504_s1 + $0x40] sm:$0xff]  }
  0x29   : > { %v1790_v10 = vcombine.low %v976_v60, %v980_v61  ;;  %v492_v11 = vrot.slane %v454_v5, 6  ;;  %v457_v13 = vld [vmem:[%s2183_s25 + $0x18] sm:$0xc]  ;;  %v458_v16 = vld [vmem:[%s2183_s25 + $0x1c] sm:$0x3]  ;;  %v1690_v17 = vrot.slane %v455_v2, 10 }
  0x2a   : > { %1987 = vmatmul.mubr.msk.bf16.vlgmr.msra.gmra.mrb[0].mxu0 %vm270_vm3, %v1788_v45  ;;  %v489_v12 = vsel %vm2250_vm6, %v1688_v6, %v488_v7  ;;  %v2108_v14 = vld [vmem:[%s2183_s25 + $0x30] ss:$8 sps:$4 sm:$0xff]   ;;  %v1691_v20 = vrot.slane %v457_v13, 10  ;;  %v500_v21 = vrot.slane %v458_v16, 6  ;;  %v459_v22 = vld [vmem:[%s2183_s25 + $0x20] sm:$0xc] }
  0x2b   : > { %1995 = vmatpush3.bf16.msra.mxu0 %v2234_v54  ;;  %1990 = vmatprep.mubr.msk.bf16.mxu0 %vm270_vm3, %v1789_v57  ;;  %v2109_v54 = vld [vmem:[%s2183_s25 + $0x20] ss:$8 sps:$4 sm:$0xff]   ;;  %v493_v15 = vsel %vm2250_vm6, %v1689_v8, %v492_v11  ;;  %v460_v23 = vld [vmem:[%s2183_s25 + $0x24] sm:$0x3]  ;;  %v2111_v3 = vld [vmem:[%s2183_s25 + $0x30] ss:$8 sps:$4 sm:$0xff]  }
  0x2c   : > { %1947 = vmatmul.mubr.msk.bf16.vlgmr.msra.gmra.mrb[0].mxu1 %vm270_vm3, %v2106_v56  ;;  %2004 = vmatprep.subr.bf16.mxu0 %v2296_v51  ;;  %v1698_v19 = vcombine.low %v489_v12, %v493_v15  ;;  %v461_v24 = vld [vmem:[%s2183_s25 + $0x28] sm:$0xc]  ;;  %v462_v25 = vld [vmem:[%s2183_s25 + $0x2c] sm:$0x3]  ;;  %v1692_v26 = vrot.slane %v459_v22, 10  ;;  %v504_v27 = vrot.slane %v460_v23, 6  ;;  %v501_v29 = vsel %vm2250_vm6, %v1691_v20, %v500_v21 }
  0x2d   : > { %1955 = vmatpush3.bf16.msra.mxu1 %v2220_v42  ;;  %1950 = vmatprep.mubr.msk.bf16.mxu1 %vm270_vm3, %v2107_v58  ;;  %v456_v42 = vld [vmem:[%s2183_s25 + $0x14] sm:$0x3]  ;;  %v2113_v30 = vld [vmem:[%s2183_s25 + $0x40] ss:$8 sps:$4 sm:$0xff]   ;;  %v1693_v31 = vrot.slane %v461_v24, 10  ;;  %v508_v32 = vrot.slane %v462_v25, 6 }
  0x2e   : > { %1964 = vmatprep.subr.bf16.mxu1 %v2306_v59  ;;  %v496_v18 = vrot.slane %v456_v42, 6  ;;  %v463_v33 = vld [vmem:[%s2183_s25 + $0x30] sm:$0xc]  ;;  %v464_v34 = vld [vmem:[%s2183_s25 + $0x34] sm:$0x3]  ;;  %v505_v35 = vsel %vm2250_vm6, %v1692_v26, %v504_v27 }
  0x2f   : > { %v465_v36 = vld [vmem:[%s2183_s25 + $0x38] sm:$0xc]  ;;  %v466_v37 = vld [vmem:[%s2183_s25 + $0x3c] sm:$0x3]  ;;  %v1694_v38 = vrot.slane %v463_v33, 10  ;;  %v512_v39 = vrot.slane %v464_v34, 6  ;;  %v509_v41 = vsel %vm2250_vm6, %v1693_v31, %v508_v32 }
  0x30   : > { %v497_v28 = vsel %vm2250_vm6, %v1690_v17, %v496_v18  ;;  %v1695_v43 = vrot.slane %v465_v36, 10  ;;  %v516_v44 = vrot.slane %v466_v37, 6  ;;  %v1815_v45 = vld [vmem:[%s2183_s25 + $0x20] sm:$0xe]  ;;  %v1816_v46 = vld [vmem:[%s2183_s25 + $0x24] sm:$0x1]  ;;  %v1700_v53 = vcombine.low %v505_v35, %v509_v41 }
  0x31   : > { %v1699_v47 = vcombine.low %v497_v28, %v501_v29  ;;  %v1817_v48 = vld [vmem:[%s2183_s25 + $0x28] sm:$0xe]  ;;  %v1818_v49 = vld [vmem:[%s2183_s25 + $0x2c] sm:$0x1]  ;;  %v1831_v50 = vrot.slane %v1815_v45, 9  ;;  %v1244_v52 = vrot.slane %v1816_v46, 5 }
  0x32   : > { %1991 = vmatmul.mubr.msk.bf16.gmra.mrb[4].mxu0 %vm270_vm3, %v1790_v10  ;;  %v1832_v55 = vrot.slane %v1817_v48, 9  ;;  %v1248_v56 = vrot.slane %v1818_v49, 5  ;;  %v1819_v57 = vld [vmem:[%s2183_s25 + $0x30] sm:$0xe]  ;;  %v1820_v58 = vld [vmem:[%s2183_s25 + $0x34] sm:$0x1] }
  0x33   : > { %1996 = vmatprep.mubr.msk.bf16.mxu0 %vm270_vm3, %v2109_v54  ;;  %v1821_v60 = vld [vmem:[%s2183_s25 + $0x38] sm:$0xe]  ;;  %v1822_v61 = vld [vmem:[%s2183_s25 + $0x3c] sm:$0x1]  ;;  %v1245_v63 = vsel %vm2185_vm2, %v1831_v50, %v1244_v52  ;;  %v517_v54 = vsel %vm2250_vm6, %v1695_v43, %v516_v44  ;;  %v1833_v5 = vrot.slane %v1819_v57, 9  ;;  %v1252_v6 = vrot.slane %v1820_v58, 5 }
  0x34   : > { %1951 = vmatmul.mubr.msk.bf16.gmra.mrb[4].mxu1 %vm270_vm3, %v2108_v14  ;;  %v2114_v62 = vld [vmem:[%s2183_s25 + $0x50] ss:$8 sps:$4 sm:$0xff]   ;;  %v1249_v0 = vsel %vm2185_vm2, %v1832_v55, %v1248_v56  ;;  %v1834_v7 = vrot.slane %v1821_v60, 9  ;;  %v1256_v8 = vrot.slane %v1822_v61, 5  ;;  %v1824_v10 = vld [vmem:[%s2183_s25 + $0x44] sm:$0x1] }
  0x35   : > { %1956 = vmatprep.mubr.msk.bf16.mxu1 %vm270_vm3, %v1698_v19  ;;  %v1841_v11 = vcombine.low %v1245_v63, %v1249_v0  ;;  %v1825_v12 = vld [vmem:[%s2183_s25 + $0x48] sm:$0xe]  ;;  %v1826_v2 = vld [vmem:[%s2183_s25 + $0x4c] sm:$0x1]  ;;  %v1260_v13 = vrot.slane %v1824_v10, 5  ;;  %v1253_v22 = vsel %vm2185_vm2, %v1833_v5, %v1252_v6 }
  0x36   : > { %v1836_v15 = vrot.slane %v1825_v12, 9  ;;  %v1264_v16 = vrot.slane %v1826_v2, 5  ;;  %v1827_v17 = vld [vmem:[%s2183_s25 + $0x50] sm:$0xe]  ;;  %v1828_v18 = vld [vmem:[%s2183_s25 + $0x54] sm:$0x1]  ;;  %v1257_v23 = vsel %vm2185_vm2, %v1834_v7, %v1256_v8 }
  0x37   : > { %v2116_v19 = vld [vmem:[%s2183_s25 + $0x10] ss:$8 sps:$4 sm:$0xff]   ;;  %v1830_v21 = vld [vmem:[%s2183_s25 + $0x5c] sm:$0x1]  ;;  %v1268_v24 = vrot.slane %v1828_v18, 5  ;;  %v1842_v35 = vcombine.low %v1253_v22, %v1257_v23 }
  0x38   : > { %v1829_v20 = vld [vmem:[%s2183_s25 + $0x58] sm:$0xe]  ;;  %v1265_v26 = vsel %vm2185_vm2, %v1836_v15, %v1264_v16  ;;  %v1272_v28 = vrot.slane %v1830_v21, 5  ;;  %v1850_v29 = vld [vmem:[%s2183_s25 + $0x20] sm:$0xc] }
  0x39   : > { %v1838_v27 = vrot.slane %v1829_v20, 9  ;;  %v1852_v31 = vld [vmem:[%s2183_s25 + $0x28] sm:$0xc]  ;;  %v1853_v32 = vld [vmem:[%s2183_s25 + $0x2c] sm:$0x3]  ;;  %v1866_v33 = vrot.slane %v1850_v29, 10 }
  0x3a   : > { %1997 = vmatmul.mubr.msk.bf16.vlgmr.msra.gmra.mrb[0].mxu0 %vm270_vm3, %v2111_v3  ;;  %v1837_v3 = vrot.slane %v1827_v17, 9  ;;  %v2117_v36 = vld [vmem:[%s2183_s25 + $0x20] ss:$8 sps:$4 sm:$0xff]   ;;  %v1867_v37 = vrot.slane %v1852_v31, 10  ;;  %v1855_v41 = vld [vmem:[%s2183_s25 + $0x34] sm:$0x3] }
  0x3b   : > { %2005 = vmatpush3.bf16.msra.mxu0 %v2296_v51  ;;  %2000 = vmatprep.mubr.msk.bf16.mxu0 %vm270_vm3, %v2113_v30  ;;  %v513_v51 = vsel %vm2250_vm6, %v1694_v38, %v512_v39  ;;  %v1851_v30 = vld [vmem:[%s2183_s25 + $0x24] sm:$0x3]  ;;  %v1418_v38 = vrot.slane %v1853_v32, 6  ;;  %v1854_v39 = vld [vmem:[%s2183_s25 + $0x30] sm:$0xc]  ;;  %v1273_v48 = vsel %vm2185_vm2, %v1838_v27, %v1272_v28  ;;  %v1422_v50 = vrot.slane %v1855_v41, 6 }
  0x3c   : > { %1957 = vmatmul.mubr.msk.bf16.vlgmr.msra.gmra.mrb[0].mxu1 %vm270_vm3, %v1699_v47  ;;  %2014 = vmatprep.subr.bf16.mxu0 %v2356_v40  ;;  %v1701_v14 = vcombine.low %v513_v51, %v517_v54  ;;  %v1414_v34 = vrot.slane %v1851_v30, 6  ;;  %v2118_v44 = vld [vmem:[%s2183_s25 + $0x30] ss:$8 sps:$4 sm:$0xff]   ;;  %v1857_v46 = vld [vmem:[%s2183_s25 + $0x3c] sm:$0x3]  ;;  %v1269_v47 = vsel %vm2185_vm2, %v1837_v3, %v1268_v24  ;;  %v1868_v49 = vrot.slane %v1854_v39, 10 }
  0x3d   : > { %1965 = vmatpush3.bf16.msra.mxu1 %v2306_v59  ;;  %1960 = vmatprep.mubr.msk.bf16.mxu1 %vm270_vm3, %v1700_v53  ;;  %v1823_v59 = vld [vmem:[%s2183_s25 + $0x40] sm:$0xe]  ;;  %v1856_v45 = vld [vmem:[%s2183_s25 + $0x38] sm:$0xc]  ;;  %v1734_v52 = vld [vmem:[%s2183_s25 + $0x30] sm:$0xe]  ;;  %v1419_v56 = vsel %vm2250_vm6, %v1867_v37, %v1418_v38  ;;  %v1844_v7 = vcombine.low %v1269_v47, %v1273_v48 }
  0x3e   : > { %2024 = vmatprep.subr.bf16.mxu1 %v2162_v1  ;;  %v1835_v42 = vrot.slane %v1823_v59, 9  ;;  %v1735_v53 = vld [vmem:[%s2183_s25 + $0x34] sm:$0x1]  ;;  %v1415_v55 = vsel %vm2250_vm6, %v1866_v33, %v1414_v34  ;;  %v1736_v57 = vld [vmem:[%s2183_s25 + $0x38] sm:$0xe]  ;;  %v1746_v60 = vrot.slane %v1734_v52, 9  ;;  %v1423_v24 = vsel %vm2250_vm6, %v1868_v49, %v1422_v50 }
  0x3f   : > { %v1737_v58 = vld [vmem:[%s2183_s25 + $0x3c] sm:$0x1]  ;;  %v797_v61 = vrot.slane %v1735_v53, 5  ;;  %v1426_v63 = vrot.slane %v1857_v46, 6  ;;  %v1747_v0 = vrot.slane %v1736_v57, 9 }
  0x40   : > { %v1261_v25 = vsel %vm2185_vm2, %v1835_v42, %v1260_v13  ;;  %v801_v51 = vrot.slane %v1737_v58, 5  ;;  %v1858_v54 = vld [vmem:[%s2183_s25 + $0x40] sm:$0xc]  ;;  %v1859_v5 = vld [vmem:[%s2183_s25 + $0x44] sm:$0x3] }
  0x41   : > { %v1843_v43 = vcombine.low %v1261_v25, %v1265_v26  ;;  %v1860_v6 = vld [vmem:[%s2183_s25 + $0x48] sm:$0xc]  ;;  %v1861_v8 = vld [vmem:[%s2183_s25 + $0x4c] sm:$0x3]  ;;  %v1738_v59 = vld [vmem:[%s2183_s25 + $0x40] sm:$0xe] }
  0x42   : > { %2001 = vmatmul.mubr.msk.bf16.gmra.mrb[4].mxu0 %vm270_vm3, %v2114_v62  ;;  %v1869_v62 = vrot.slane %v1856_v45, 10  ;;  %v1739_v10 = vld [vmem:[%s2183_s25 + $0x44] sm:$0x1]  ;;  %v1740_v12 = vld [vmem:[%s2183_s25 + $0x48] sm:$0xe]  ;;  %v1748_v42 = vrot.slane %v1738_v59, 9 }
  0x43   : > { %2006 = vmatprep.mubr.msk.bf16.mxu0 %vm270_vm3, %v1841_v11  ;;  %v1876_v11 = vcombine.low %v1415_v55, %v1419_v56  ;;  %v1741_v2 = vld [vmem:[%s2183_s25 + $0x4c] sm:$0x1]  ;;  %v805_v13 = vrot.slane %v1739_v10, 5  ;;  %v1870_v15 = vrot.slane %v1858_v54, 10  ;;  %v1749_v16 = vrot.slane %v1740_v12, 9 }
  0x44   : > { %1961 = vmatmul.mubr.msk.bf16.gmra.mrb[4].mxu1 %vm270_vm3, %v1701_v14  ;;  %v802_v14 = vsel %vm2185_vm2, %v1747_v0, %v801_v51  ;;  %v809_v17 = vrot.slane %v1741_v2, 5  ;;  %v1430_v18 = vrot.slane %v1859_v5, 6  ;;  %v2119_v21 = vld [vmem:[%s2183_s25 + $0x40] ss:$8 sps:$4 sm:$0xff]   ;;  %v1427_v25 = vsel %vm2250_vm6, %v1869_v62, %v1426_v63  ;;  %v1862_v4 = vld [vmem:[%s2183_s25 + $0x50] sm:$0xc] }
  0x45   : > { %1966 = vmatprep.mubr.msk.bf16.mxu1 %vm270_vm3, %v2116_v19  ;;  %v1434_v19 = vrot.slane %v1861_v8, 6  ;;  %v806_v20 = vsel %vm2185_vm2, %v1748_v42, %v805_v13  ;;  %v1863_v28 = vld [vmem:[%s2183_s25 + $0x54] sm:$0x3]  ;;  %v1864_v29 = vld [vmem:[%s2183_s25 + $0x58] sm:$0xc]  ;;  %v1877_v31 = vcombine.low %v1423_v24, %v1427_v25  ;;  %v1872_v33 = vrot.slane %v1862_v4, 10 }
  0x46   : > { %v810_v22 = vsel %vm2185_vm2, %v1749_v16, %v809_v17  ;;  %v1431_v26 = vsel %vm2250_vm6, %v1870_v15, %v1430_v18  ;;  %v1865_v30 = vld [vmem:[%s2183_s25 + $0x5c] sm:$0x3]  ;;  %v1438_v34 = vrot.slane %v1863_v28, 6  ;;  %v1885_v47 = vld [vmem:[%s2505_s2] ss:$0 sm:$0xff] }
  0x47   : > { %v1755_v3 = vcombine.low %v806_v20, %v810_v22 }
  0x48   : > { %v1439_v37 = vsel %vm2250_vm6, %v1872_v33, %v1438_v34 }
  0x4a   : > { %2007 = vmatmul.mubr.msk.bf16.vlgmr.msra.gmra.mrb[0].mxu0 %vm270_vm3, %v1842_v35  ;;  %v1873_v35 = vrot.slane %v1864_v29, 10 }
  0x4b   : > { %2015 = vmatpush3.bf16.msra.mxu0 %v2356_v40  ;;  %2010 = vmatprep.mubr.msk.bf16.mxu0 %vm270_vm3, %v1843_v43  ;;  %v798_v40 = vsel %vm2185_vm2, %v1746_v60, %v797_v61 }
  0x4c   : > { %1967 = vmatmul.mubr.msk.bf16.vlgmr.msra.gmra.mrb[0].mxu1 %vm270_vm3, %v2117_v36  ;;  %v1754_v23 = vcombine.low %v798_v40, %v802_v14  ;;  %v1442_v36 = vrot.slane %v1865_v30, 6 }
  0x4d   : > { %2025 = vmatpush3.bf16.msra.mxu1 %v2162_v1  ;;  %1970 = vmatprep.mubr.msk.bf16.mxu1 %vm270_vm3, %v2118_v44  ;;  %v1871_v1 = vrot.slane %v1860_v6, 10 }
  0x4e   : > { %v1443_v38 = vsel %vm2250_vm6, %v1873_v35, %v1442_v36 }
  0x4f   : > { %v1435_v27 = vsel %vm2250_vm6, %v1871_v1, %v1434_v19  ;;  %v1879_v39 = vcombine.low %v1439_v37, %v1443_v38 }
  0x50   : > { %v1878_v32 = vcombine.low %v1431_v26, %v1435_v27 }
  0x52   : > { %2011 = vmatmul.mubr.msk.bf16.gmra.mrb[4].mxu0 %vm270_vm3, %v1844_v7 }
  0x53   : > { %2016 = vmatprep.mubr.msk.bf16.mxu0 %vm270_vm3, %v1876_v11 }
  0x54   : > { %1971 = vmatmul.mubr.msk.bf16.gmra.mrb[4].mxu1 %vm270_vm3, %v2119_v21 }
  0x55   : > { %1980 = vmatprep.mubr.msk.bf16.mxu1 %vm270_vm3, %v1754_v23 }
  0x5a   : > { %2017 = vmatmul.mubr.msk.bf16.vlgmr.msra.gmra.mrb[0].mxu0 %vm270_vm3, %v1877_v31 }
  0x5b   : > { %2020 = vmatprep.mubr.msk.bf16.mxu0 %vm270_vm3, %v1878_v32 }
  0x60   : > { %1981 = vmatmul.mubr.msk.bf16.vlgmr.msra.gmra.mrb[4].mxu1 %vm270_vm3, %v1755_v3 }
  0x62   : > { %2021 = vmatmul.mubr.msk.bf16.gmra.mrb[4].mxu0 %vm270_vm3, %v1879_v39 }
 0x11f   : > { %v1968_v41 = vpop.f32.mrb[0].mxu1 }
 0x120   : > { %v708_v43 = vpop.f32.mrb[1].mxu1 }
 0x121   : > { %v1969_v44 = vpop.f32.mrb[2].mxu1 }
 0x122   : > { %v711_v45 = vpop.f32.mrb[3].mxu1 }
 0x12d   : > { %v2018_v46 = vpop.f32.mrb[0].mxu0 }
 0x12e   : > { %v2026_v48 = vadd.f32 %v2018_v46, %v1968_v41  ;;  %v1511_v49 = vpop.f32.mrb[1].mxu0 }
 0x12f   : > { %v2027_v50 = vadd.f32 %v1511_v49, %v708_v43  ;;  %v2019_v9 = vpop.f32.mrb[2].mxu0 }
 0x130   : > { %v1559_v52 = vadd.f32 %v2026_v48, %v1885_v47  ;;  %v2028_v53 = vadd.f32 %v2019_v9, %v1969_v44  ;;  %v1514_v55 = vpop.f32.mrb[3].mxu0 }
 0x131   : > { %v1557_v56 = vadd.f32 %v2027_v50, %v1885_v47  ;;  %v2029_v57 = vadd.f32 %v1514_v55, %v711_v45 }
 0x132   : > { %vm1567_vm7 = vcmp.ge.f32.partialorder %v1559_v52, 0.0  ;;  %v1575_v58 = vmul.f32 0.2, %v1559_v52  ;;  %v1560_v60 = vadd.f32 %v2028_v53, %v1885_v47 }
 0x133   : > { %vm1565_vm8 = vcmp.ge.f32.partialorder %v1557_v56, 0.0  ;;  %v1573_v61 = vmul.f32 0.2, %v1557_v56  ;;  %v1558_v62 = vadd.f32 %v2029_v57, %v1885_v47  ;;  %v1982_v63 = vpop.f32.mrb[4].mxu1 }
 0x134   : > { %v1583_v0 = vsel %vm1567_vm7, %v1559_v52, %v1575_v58  ;;  %vm1568_vm9 = vcmp.ge.f32.partialorder %v1560_v60, 0.0  ;;  %v1576_v51 = vmul.f32 0.2, %v1560_v60  ;;  %v894_v54 = vpop.f32.mrb[5].mxu1 }
 0x135   : > { %1591 = vst.msk [vmem:[%s2482_s16 + $0x10] sm:$0xff] %vm270_vm3, %v1583_v0  ;;  %v1581_v5 = vsel %vm1565_vm8, %v1557_v56, %v1573_v61  ;;  %vm1566_vm10 = vcmp.ge.f32.partialorder %v1558_v62, 0.0  ;;  %v1574_v6 = vmul.f32 0.2, %v1558_v62  ;;  %v2022_v7 = vpop.f32.mrb[4].mxu0  ;;  %v1983_v8 = vpop.f32.mrb[6].mxu1 }
 0x136   : > { %1589 = vst.msk [vmem:[%s2482_s16] sm:$0xff] %vm270_vm3, %v1581_v5  ;;  %v1584_v59 = vsel %vm1568_vm9, %v1560_v60, %v1576_v51  ;;  %v2030_v10 = vadd.f32 %v2022_v7, %v1982_v63  ;;  %v1527_v11 = vpop.f32.mrb[5].mxu0  ;;  %v897_v40 = vpop.f32.mrb[7].mxu1 }
 0x137   : > { %1592 = vst.msk [vmem:[%s2482_s16 + $0x18] sm:$0xff] %vm270_vm3, %v1584_v59  ;;  %v1582_v12 = vsel %vm1566_vm10, %v1558_v62, %v1574_v6  ;;  %v2031_v2 = vadd.f32 %v1527_v11, %v894_v54  ;;  %v2023_v42 = vpop.f32.mrb[6].mxu0 }
 0x138   : > { %1590 = vst.msk [vmem:[%s2482_s16 + $0x8] sm:$0xff] %vm270_vm3, %v1582_v12  ;;  %v1563_v13 = vadd.f32 %v2030_v10, %v1885_v47  ;;  %v2032_v14 = vadd.f32 %v2023_v42, %v1983_v8  ;;  %v1530_v15 = vpop.f32.mrb[7].mxu0 }
 0x139   : > { %v1561_v16 = vadd.f32 %v2031_v2, %v1885_v47  ;;  %v2033_v17 = vadd.f32 %v1530_v15, %v897_v40 }
 0x13a   : > { %vm1571_vm11 = vcmp.ge.f32.partialorder %v1563_v13, 0.0  ;;  %v1579_v18 = vmul.f32 0.2, %v1563_v13  ;;  %v1564_v1 = vadd.f32 %v2032_v14, %v1885_v47 }
 0x13b   : > { %vm1569_vm12 = vcmp.ge.f32.partialorder %v1561_v16, 0.0  ;;  %v1577_v19 = vmul.f32 0.2, %v1561_v16  ;;  %v1562_v20 = vadd.f32 %v2033_v17, %v1885_v47 }
 0x13c   : > { %v1587_v21 = vsel %vm1571_vm11, %v1563_v13, %v1579_v18  ;;  %vm1572_vm13 = vcmp.ge.f32.partialorder %v1564_v1, 0.0  ;;  %v1580_v22 = vmul.f32 0.2, %v1564_v1 }
 0x13d   : > { %1595 = vst.msk [vmem:[%s2482_s16 + $0x30] sm:$0xff] %vm270_vm3, %v1587_v21  ;;  %v1585_v23 = vsel %vm1569_vm12, %v1561_v16, %v1577_v19  ;;  %vm1570_vm14 = vcmp.ge.f32.partialorder %v1562_v20, 0.0  ;;  %v1578_v3 = vmul.f32 0.2, %v1562_v20 }
 0x13e   : > { %1593 = vst.msk [vmem:[%s2482_s16 + $0x20] sm:$0xff] %vm270_vm3, %v1585_v23  ;;  %v1588_v24 = vsel %vm1572_vm13, %v1564_v1, %v1580_v22 }
 0x13f   : > { %1596 = vst.msk [vmem:[%s2482_s16 + $0x38] sm:$0xff] %vm270_vm3, %v1588_v24  ;;  %v1586_v25 = vsel %vm1570_vm14, %v1562_v20, %v1578_v3 }
 0x140   : > { %1594 = vst.msk [vmem:[%s2482_s16 + $0x28] sm:$0xff] %vm270_vm3, %v1586_v25 }
 0x141 PF: > { %s13_s12 = sadd.s32 1, %s2126_s12  }
 0x142   : > { %p10_p4 = scmp.ge.s32.totalorder %s13_s12, 4  }
 0x144   :  { %12 = sbr.rel (!%p10_p4) target bundleno = 1 (0x1), region = 72 }

// kernel: _lambda_.9
= control target key start
LH: loop header
LB: loop body
LE: loop exit
PB: predicated region body
PF: predicated region fallthrough
CT: control target
= control target key end

     0   :  { %s2351_s15 = smov 0   ;;  %s2873_s0 = inlined_call_operand.vmem [shape: bf16[2,10,10,16], index: 0, kind: input, shape index: {}]   ;;  %s2874_s1 = inlined_call_operand.vmem [shape: bf16[3,3,16,16], index: 1, kind: input, shape index: {}]   ;;  %s2875_s2 = inlined_call_operand.vmem [shape: f32[1,16], index: 2, kind: input, shape index: {}]   ;;  %s2876_s3 = inlined_call_operand.vmem [shape: f32[2,64,16], index: 3, kind: input, shape index: {}]   ;;  %s2877_s4 = inlined_call_operand.vmem [shape: f32[2,64,16], index: 4, kind: output, shape index: {}]  }
   0x1 LB: > { %s1887_s16 = sadd.s32 4294967295, %s2324_s15   ;;  %p1891_p0 = scmp.ge.s32.totalorder %s2324_s15, 1  ;;  %s2324_s15 = sphi %s2351_s15, %s14_s15  }
   0x2   : > { %p172_p1 = scmp.lt.s32.totalorder %s2324_s15, 3 }
   0x4   : > { %p173_p2 = pnand %p1891_p0, %p172_p1 }
   0x5   : > { %v2297_v0 = vld [vmem:[%s2874_s1 + $0x8] sm:$0xff] (!%p173_p2)   ;;  %p203_p3 = scmp.lt.s32.totalorder (!%p173_p2), %s1887_s16, 1  ;;  %v2365_v1 = vld [vmem:[%s2874_s1 + $0x20] sm:$0xff] (!%p173_p2)   ;;  %vm237_vm0 = vsmask.f32 (!%p173_p2), 3328  ;;  %vm373_vm2 = vcmask (!%p173_p2), 130048  }
   0x6   : > { %176 = sbr.rel (%p173_p2) target bundleno = 340 (0x154), region = 36  ;;  %2132 = vmatprep.subr.bf16.mxu1 (!%p173_p2), %v2297_v0  ;;  %v2372_v2 = vld [vmem:[%s2874_s1] sm:$0xff] (!%p173_p2)   ;;  %2172 = vmatprep.subr.bf16.mxu0 (!%p173_p2), %v2365_v1  ;;  %v2381_v3 = vld [vmem:[%s2874_s1 + $0x28] sm:$0xff] (!%p173_p2)   ;;  %vm238_vm1 = vsmask.f32 (!%p173_p2), 7440  ;;  %vm578_vm4 = vcmask (!%p173_p2), 1042432  }
   0x7   : > { %2133 = vmatpush3.bf16.msra.mxu1 (!%p173_p2), %v2297_v0  ;;  %2173 = vmatpush3.bf16.msra.mxu0 (!%p173_p2), %v2365_v1  ;;  %vm2418_vm3 = vmor (!%p173_p2), %vm237_vm0, %vm238_vm1  ;;  %vm579_vm5 = vcmask (!%p173_p2), 1046532  }
   0x8   : > { %2142 = vmatprep.subr.bf16.mxu1 (!%p173_p2), %v2372_v2  ;;  %2182 = vmatprep.subr.bf16.mxu0 (!%p173_p2), %v2381_v3  ;;  %vm2528_vm6 = vmor (!%p173_p2), %vm578_vm4, %vm579_vm5 }
   0xd   : > { %s2883_s16 = smov (!%p203_p3, %s1887_s16), 1 }
   0xe   : > { %s2288_s23 = smul.u32 80, %s2883_s16  ;;  %s2085_s13 = sshll.u32 %s2883_s16, 6 }
   0xf   : > { %s2839_s20 = scalar_lea.vmem %s2876_s3, %s2085_s13  ;;  %s2846_s22 = scalar_lea.vmem %s2877_s4, %s2085_s13 }
  0x10   : > { %s2386_s28 = scalar_lea.vmem %s2873_s0, %s2288_s23 }
  0x11   : > { %v2390_v4 = vld [vmem:[%s2386_s28] sm:$0xf]  ;;  %v2393_v5 = vld [vmem:[%s2386_s28 + $0x8] sm:$0xf]  ;;  %v2396_v6 = vld [vmem:[%s2386_s28 + $0x4] sm:$0x1] }
  0x12   : > { %v2399_v7 = vld [vmem:[%s2386_s28 + $0xc] sm:$0x1]  ;;  %v241_v8 = vshrl.u32 %v2390_v4, 16  ;;  %v244_v9 = vshll.u32 %v2390_v4, 16  ;;  %v250_v10 = vshll.u32 %v2396_v6, 16  ;;  %v255_v11 = vshrl.u32 %v2393_v5, 16 }
  0x13   : > { %v258_v12 = vshll.u32 %v2393_v5, 16  ;;  %v264_v13 = vshll.u32 %v2399_v7, 16  ;;  %v1955_v14 = vld [vmem:[%s2386_s28 + $0x8] sm:$0xf]  ;;  %v2409_v19 = vld [vmem:[%s2386_s28 + $0xc] sm:$0x1] }
  0x14   : > { %v243_v15 = vrot.slane %v241_v8, 4  ;;  %v246_v16 = vrot.slane %v244_v9, 5  ;;  %v252_v17 = vrot.slane %v250_v10, 5  ;;  %v257_v18 = vrot.slane %v255_v11, 4  ;;  %v1957_v22 = vld [vmem:[%s2386_s28 + $0x10] sm:$0xf] }
  0x15   : > { %v260_v20 = vrot.slane %v258_v12, 5  ;;  %v266_v21 = vrot.slane %v264_v13, 5  ;;  %v2413_v23 = vld [vmem:[%s2386_s28 + $0x14] sm:$0x1]  ;;  %v859_v25 = vshrl.u32 %v1955_v14, 16  ;;  %v862_v26 = vshll.u32 %v1955_v14, 16 }
  0x16   : > { %v247_v24 = vor.u32 %v246_v16, %v243_v15  ;;  %v868_v27 = vshll.u32 %v2409_v19, 16  ;;  %v873_v30 = vshrl.u32 %v1957_v22, 16  ;;  %v876_v31 = vshll.u32 %v1957_v22, 16  ;;  %v2424_v33 = vld [vmem:[%s2386_s28 + $0x10] sm:$0xf] }
  0x17   : > { %v261_v29 = vor.u32 %v260_v20, %v257_v18  ;;  %v882_v32 = vshll.u32 %v2413_v23, 16  ;;  %v583_v35 = vrot.slane %v2396_v6, 5  ;;  %v861_v36 = vrot.slane %v859_v25, 4  ;;  %v2428_v38 = vld [vmem:[%s2386_s28 + $0x18] sm:$0xf] }
  0x18   : > { %v248_v34 = vrot.slane %v247_v24, 4  ;;  %v864_v37 = vrot.slane %v862_v26, 5  ;;  %v587_v40 = vrot.slane %v2399_v7, 5  ;;  %v875_v41 = vrot.slane %v873_v30, 4  ;;  %v2432_v43 = vld [vmem:[%s2386_s28 + $0x14] sm:$0x1] }
  0x19   : > { %v262_v39 = vrot.slane %v261_v29, 4  ;;  %v878_v42 = vrot.slane %v876_v31, 5  ;;  %v870_v46 = vrot.slane %v868_v27, 5  ;;  %v884_v47 = vrot.slane %v882_v32, 5  ;;  %v2439_v50 = vld [vmem:[%s2386_s28 + $0x1c] sm:$0x1] }
  0x1a   : > { %v253_v44 = vsel %vm2418_vm3, %v248_v34, %v252_v17  ;;  %v865_v45 = vor.u32 %v864_v37, %v861_v36  ;;  %v269_v51 = vshrl.u32 %v2424_v33, 16  ;;  %v272_v52 = vshll.u32 %v2424_v33, 16  ;;  %v1959_v61 = vld [vmem:[%s2386_s28 + $0x18] sm:$0xf]  ;;  %v2453_v9 = vld [vmem:[%s2386_s28 + $0x1c] sm:$0x1] }
  0x1b   : > { %v267_v48 = vsel %vm2418_vm3, %v262_v39, %v266_v21  ;;  %v879_v49 = vor.u32 %v878_v42, %v875_v41  ;;  %v278_v55 = vshll.u32 %v2432_v43, 16  ;;  %v283_v56 = vshrl.u32 %v2428_v38, 16  ;;  %v1961_v14 = vld [vmem:[%s2386_s28 + $0x20] sm:$0xf]  ;;  %v2459_v15 = vld [vmem:[%s2386_s28 + $0x24] sm:$0x1] }
  0x1c   : > { %v1899_v53 = vcombine.low %v253_v44, %v267_v48  ;;  %v866_v54 = vrot.slane %v865_v45, 4  ;;  %v271_v58 = vrot.slane %v269_v51, 4  ;;  %v274_v59 = vrot.slane %v272_v52, 5  ;;  %v2466_v31 = vld [vmem:[%s2386_s28 + $0x20] sm:$0xf] }
  0x1d   : > { %v880_v57 = vrot.slane %v879_v49, 4  ;;  %v286_v60 = vshll.u32 %v2428_v38, 16  ;;  %v1102_v63 = vrot.slane %v2409_v19, 5  ;;  %v285_v0 = vrot.slane %v283_v56, 4  ;;  %v2471_v39 = vld [vmem:[%s2386_s28 + $0x24] sm:$0x1] }
  0x1e   : > { %2134 = vmatprep.mubr.msk.bf16.mxu1 %vm373_vm2, %v1899_v53  ;;  %v871_v62 = vsel %vm2418_vm3, %v866_v54, %v870_v46  ;;  %v292_v8 = vshll.u32 %v2439_v50, 16  ;;  %v275_v11 = vor.u32 %v274_v59, %v271_v58  ;;  %v280_v12 = vrot.slane %v278_v55, 5  ;;  %v2475_v46 = vld [vmem:[%s2386_s28 + $0x28] sm:$0xf]  ;;  %v2481_v51 = vld [vmem:[%s2386_s28 + $0x2c] sm:$0x1] }
  0x1f   : > { %v885_v10 = vsel %vm2418_vm3, %v880_v57, %v884_v47  ;;  %v288_v13 = vrot.slane %v286_v60, 5  ;;  %v1106_v17 = vrot.slane %v2413_v23, 5  ;;  %v887_v20 = vshrl.u32 %v1959_v61, 16  ;;  %v2487_v57 = vld [vmem:[%s2386_s28 + $0x30] sm:$0xf] }
  0x20   : > { %v1973_v16 = vcombine.low %v871_v62, %v885_v10  ;;  %v294_v18 = vrot.slane %v292_v8, 5  ;;  %v276_v21 = vrot.slane %v275_v11, 4  ;;  %v890_v24 = vshll.u32 %v1959_v61, 16  ;;  %v2492_v58 = vld [vmem:[%s2874_s1 + $0x10] sm:$0xff]  }
  0x21   : > { %v289_v22 = vor.u32 %v288_v13, %v285_v0  ;;  %v896_v25 = vshll.u32 %v2453_v9, 16  ;;  %v889_v26 = vrot.slane %v887_v20, 4  ;;  %v901_v27 = vshrl.u32 %v1961_v14, 16  ;;  %v2497_v0 = vld [vmem:[%s2386_s28 + $0x38] sm:$0xf] }
  0x22   : > { %2174 = vmatprep.mubr.msk.bf16.mxu0 %vm373_vm2, %v1973_v16  ;;  %v904_v29 = vshll.u32 %v1961_v14, 16  ;;  %v910_v30 = vshll.u32 %v2459_v15, 16  ;;  %v281_v32 = vsel %vm2418_vm3, %v276_v21, %v280_v12  ;;  %v892_v36 = vrot.slane %v890_v24, 5  ;;  %v2502_v13 = vld [vmem:[%s2386_s28 + $0x34] sm:$0x1] }
  0x23   : > { %v290_v34 = vrot.slane %v289_v22, 4  ;;  %v898_v37 = vrot.slane %v896_v25, 5  ;;  %v903_v41 = vrot.slane %v901_v27, 4  ;;  %v1110_v45 = vrot.slane %v2453_v9, 5  ;;  %v2508_v20 = vld [vmem:[%s2386_s28 + $0x3c] sm:$0x1] }
  0x24   : > { %v906_v42 = vrot.slane %v904_v29, 5  ;;  %v912_v44 = vrot.slane %v910_v30, 5  ;;  %v893_v48 = vor.u32 %v892_v36, %v889_v26  ;;  %v1114_v49 = vrot.slane %v2459_v15, 5  ;;  %v2514_v22 = vld [vmem:[%s2874_s1 + $0x30] sm:$0xff]   ;;  %v1982_v27 = vld [vmem:[%s2386_s28 + $0x8] sm:$0xe] }
  0x25   : > { %v295_v47 = vsel %vm2418_vm3, %v290_v34, %v294_v18  ;;  %v297_v52 = vshrl.u32 %v2466_v31, 16  ;;  %v300_v55 = vshll.u32 %v2466_v31, 16  ;;  %v306_v56 = vshll.u32 %v2471_v39, 16  ;;  %v1983_v29 = vld [vmem:[%s2386_s28 + $0x10] sm:$0xe] }
  0x26   : > { %v1900_v53 = vcombine.low %v281_v32, %v295_v47  ;;  %v907_v54 = vor.u32 %v906_v42, %v903_v41  ;;  %v894_v59 = vrot.slane %v893_v48, 4  ;;  %v311_v61 = vshrl.u32 %v2475_v46, 16  ;;  %v2082_v48 = vld [vmem:[%s2875_s2] ss:$0 sm:$0xff] }
  0x27   : > { %v299_v60 = vrot.slane %v297_v52, 4  ;;  %v314_v62 = vshll.u32 %v2475_v46, 16  ;;  %v302_v10 = vrot.slane %v300_v55, 5  ;;  %v308_v11 = vrot.slane %v306_v56, 5  ;;  %v1985_v52 = vld [vmem:[%s2386_s28 + $0x20] sm:$0xe] }
  0x28   : > { %2135 = vmatmul.mubr.msk.bf16.vlgmr.msra.gmra.mrb[0].mxu1 %vm373_vm2, %v1900_v53  ;;  %v908_v8 = vrot.slane %v907_v54, 4  ;;  %v320_v12 = vshll.u32 %v2481_v51, 16  ;;  %v899_v14 = vsel %vm2418_vm3, %v894_v59, %v898_v37  ;;  %v313_v16 = vrot.slane %v311_v61, 4  ;;  %v1984_v37 = vld [vmem:[%s2386_s28 + $0x18] sm:$0xe] }
  0x29   : > { %2143 = vmatpush3.bf16.msra.mxu1 %v2372_v2  ;;  %v316_v18 = vrot.slane %v314_v62, 5  ;;  %v325_v21 = vshrl.u32 %v2487_v57, 16  ;;  %v303_v25 = vor.u32 %v302_v10, %v299_v60  ;;  %v328_v26 = vshll.u32 %v2487_v57, 16  ;;  %v1986_v59 = vld [vmem:[%s2386_s28 + $0x28] sm:$0xe] }
  0x2a   : > { %v913_v24 = vsel %vm2418_vm3, %v908_v8, %v912_v44  ;;  %v322_v2 = vrot.slane %v320_v12, 5  ;;  %2152 = vmatprep.subr.bf16.mxu1 %v2492_v58  ;;  %v334_v36 = vshll.u32 %v2502_v13, 16  ;;  %v339_v44 = vshrl.u32 %v2497_v0, 16  ;;  %v2540_v10 = vld [vmem:[%s2386_s28 + $0x2c] sm:$0x1] }
  0x2b   : > { %v1974_v30 = vcombine.low %v899_v14, %v913_v24  ;;  %v317_v32 = vor.u32 %v316_v18, %v313_v16  ;;  %v327_v34 = vrot.slane %v325_v21, 4  ;;  %v304_v41 = vrot.slane %v303_v25, 4  ;;  %v2550_v25 = vld [vmem:[%s2386_s28 + $0x34] sm:$0x1] }
  0x2c   : > { %v330_v42 = vrot.slane %v328_v26, 5  ;;  %v342_v47 = vshll.u32 %v2497_v0, 16  ;;  %v336_v54 = vrot.slane %v334_v36, 5  ;;  %v348_v55 = vshll.u32 %v2508_v20, 16  ;;  %v1987_v26 = vld [vmem:[%s2386_s28 + $0x30] sm:$0xe] }
  0x2d   : > { %2175 = vmatmul.mubr.msk.bf16.vlgmr.msra.gmra.mrb[0].mxu0 %vm373_vm2, %v1974_v30  ;;  %v318_v53 = vrot.slane %v317_v32, 4  ;;  %v1990_v56 = vrot.slane %v1982_v27, 9  ;;  %v309_v60 = vsel %vm2418_vm3, %v304_v41, %v308_v11  ;;  %v341_v62 = vrot.slane %v339_v44, 4  ;;  %v2558_v27 = vld [vmem:[%s2386_s28 + $0x3c] sm:$0x1] }
  0x2e   : > { %2183 = vmatpush3.bf16.msra.mxu0 %v2381_v3  ;;  %v331_v61 = vor.u32 %v330_v42, %v327_v34  ;;  %v344_v8 = vrot.slane %v342_v47, 5  ;;  %v350_v14 = vrot.slane %v348_v55, 5  ;;  %v1991_v3 = vrot.slane %v1983_v29, 9  ;;  %v2568_v34 = vld [vmem:[%s2386_s28 + $0x44] sm:$0x1] }
  0x2f   : > { %v323_v12 = vsel %vm2418_vm3, %v318_v53, %v322_v2  ;;  %v1103_v16 = vsel %vm2528_vm6, %v1990_v56, %v1102_v63  ;;  %2192 = vmatprep.subr.bf16.mxu0 %v2514_v22  ;;  %v1992_v24 = vrot.slane %v1984_v37, 9  ;;  %v1993_v2 = vrot.slane %v1985_v52, 9  ;;  %v1989_v44 = vld [vmem:[%s2386_s28 + $0x40] sm:$0xe]  ;;  %v555_v55 = vld [vmem:[%s2386_s28 + $0x8] sm:$0xe] }
  0x30   : > { %v1901_v11 = vcombine.low %v309_v60, %v323_v12  ;;  %v332_v18 = vrot.slane %v331_v61, 4  ;;  %v345_v21 = vor.u32 %v344_v8, %v341_v62  ;;  %v1107_v19 = vsel %vm2528_vm6, %v1991_v3, %v1106_v17  ;;  %v1988_v17 = vld [vmem:[%s2386_s28 + $0x38] sm:$0xe]  ;;  %v554_v47 = vld [vmem:[%s2386_s28] sm:$0xe] }
  0x31   : > { %v1994_v63 = vrot.slane %v1986_v59, 9  ;;  %v2000_v32 = vcombine.low %v1103_v16, %v1107_v19  ;;  %v1111_v23 = vsel %vm2528_vm6, %v1992_v24, %v1110_v45  ;;  %v1115_v36 = vsel %vm2528_vm6, %v1993_v2, %v1114_v49  ;;  %v2593_v60 = vld [vmem:[%s2874_s1 + $0x38] sm:$0xff]   ;;  %v558_v8 = vld [vmem:[%s2386_s28 + $0x20] sm:$0xe]  ;;  %v559_v3 = vld [vmem:[%s2386_s28 + $0x28] sm:$0xe] }
  0x32   : > { %2138 = vmatprep.mubr.msk.bf16.mxu1 %vm373_vm2, %v1901_v11  ;;  %v337_v29 = vsel %vm2418_vm3, %v332_v18, %v336_v54  ;;  %v346_v30 = vrot.slane %v345_v21, 4  ;;  %v1118_v37 = vrot.slane %v2540_v10, 5  ;;  %v1995_v41 = vrot.slane %v1987_v26, 9  ;;  %v557_v62 = vld [vmem:[%s2386_s28 + $0x18] sm:$0xe] }
  0x33   : > { %v1122_v42 = vrot.slane %v2550_v25, 5  ;;  %2184 = vmatprep.mubr.msk.bf16.mxu0 %vm373_vm2, %v2000_v32  ;;  %v2001_v45 = vcombine.low %v1111_v23, %v1115_v36  ;;  %v1908_v15 = vcombine.low %v2390_v4, %v2393_v5  ;;  %v1996_v54 = vrot.slane %v1988_v17, 9  ;;  %v556_v4 = vld [vmem:[%s2386_s28 + $0x10] sm:$0xe]  ;;  %v2643_v32 = vld [vmem:[%s2386_s28 + $0x38] sm:$0xe] }
  0x34   : > { %v351_v9 = vsel %vm2418_vm3, %v346_v30, %v350_v14  ;;  %v1119_v52 = vsel %vm2528_vm6, %v1994_v63, %v1118_v37  ;;  %v1126_v59 = vrot.slane %v2558_v27, 5  ;;  %v1997_v5 = vrot.slane %v1989_v44, 9  ;;  %v2030_v63 = vld [vmem:[%s2386_s28 + $0x18] sm:$0xf]  ;;  %v2646_v23 = vld [vmem:[%s2386_s28 + $0x14] sm:$0x1] }
  0x35   : > { %v1902_v49 = vcombine.low %v337_v29, %v351_v9  ;;  %v1123_v53 = vsel %vm2528_vm6, %v1995_v41, %v1122_v42  ;;  %v1130_v61 = vrot.slane %v2568_v34, 5  ;;  %v591_v12 = vrot.slane %v2432_v43, 5  ;;  %v2655_v36 = vld [vmem:[%s2386_s28 + $0x1c] sm:$0x1]  ;;  %v2032_v42 = vld [vmem:[%s2386_s28 + $0x20] sm:$0xf] }
  0x36   : > { %v2002_v56 = vcombine.low %v1119_v52, %v1123_v53  ;;  %v1917_v14 = vrot.slane %v554_v47, 9  ;;  %v1918_v16 = vrot.slane %v555_v55, 9  ;;  %v595_v11 = vrot.slane %v2439_v50, 5  ;;  %v2034_v47 = vld [vmem:[%s2386_s28 + $0x28] sm:$0xf] }
  0x37   : > { %2139 = vmatmul.mubr.msk.bf16.gmra.mrb[4].mxu1 %vm373_vm2, %v1902_v49  ;;  %v1127_v18 = vsel %vm2528_vm6, %v1996_v54, %v1126_v59  ;;  %v1131_v21 = vsel %vm2528_vm6, %v1997_v5, %v1130_v61  ;;  %v1919_v24 = vrot.slane %v556_v4, 9  ;;  %v1920_v26 = vrot.slane %v557_v62, 9  ;;  %v2676_v53 = vld [vmem:[%s2386_s28 + $0x24] sm:$0x1]  ;;  %v2687_v5 = vld [vmem:[%s2386_s28 + $0x2c] sm:$0x1] }
  0x38   : > { %2144 = vmatprep.mubr.msk.bf16.mxu1 %vm373_vm2, %v1908_v15  ;;  %v2615_v43 = vsel %vm2528_vm6, %v1917_v14, %v583_v35  ;;  %v2621_v50 = vsel %vm2528_vm6, %v1918_v16, %v587_v40  ;;  %v1921_v19 = vrot.slane %v558_v8, 9  ;;  %v1909_v6 = vcombine.low %v2424_v33, %v2428_v38  ;;  %v2630_v35 = vld [vmem:[%s2874_s1 + $0x18] sm:$0xff]   ;;  %v2634_v40 = vld [vmem:[%s2386_s28 + $0x30] sm:$0xe]  ;;  %v2309_v8 = vld [vmem:[%s2386_s28 + $0x20] ss:$8 sps:$4 sm:$0xff]  }
  0x39   : > { %2185 = vmatmul.mubr.msk.bf16.vlgmr.msra.gmra.mrb[0].mxu0 %vm373_vm2, %v2001_v45  ;;  %v599_v7 = vrot.slane %v2471_v39, 5  ;;  %v1922_v2 = vrot.slane %v559_v3, 9  ;;  %v2003_v29 = vcombine.low %v1127_v18, %v1131_v21  ;;  %v1910_v30 = vcombine.low %v2466_v31, %v2475_v46  ;;  %v2307_v38 = vld [vmem:[%s2386_s28 + $0x10] ss:$8 sps:$4 sm:$0xff]  }
  0x3a   : > { %2193 = vmatpush3.bf16.msra.mxu0 %v2514_v22  ;;  %2188 = vmatprep.mubr.msk.bf16.mxu0 %vm373_vm2, %v2002_v56  ;;  %v2028_v22 = vld [vmem:[%s2386_s28 + $0x10] sm:$0xf]  ;;  %v1911_v33 = vcombine.low %v2487_v57, %v2497_v0  ;;  %v1927_v39 = vcombine.low %v2615_v43, %v2621_v50  ;;  %v2652_v17 = vsel %vm2528_vm6, %v1919_v24, %v591_v12  ;;  %v603_v46 = vrot.slane %v2481_v51, 5 }
  0x3b   : > { %2202 = vmatprep.subr.bf16.mxu0 %v2593_v60  ;;  %v1378_v37 = vshrl.u32 %v2028_v22, 16  ;;  %v1381_v31 = vshll.u32 %v2028_v22, 16  ;;  %v1923_v57 = vrot.slane %v2634_v40, 9  ;;  %v607_v0 = vrot.slane %v2502_v13, 5  ;;  %v2698_v40 = vld [vmem:[%s2386_s28 + $0x34] sm:$0x1] }
  0x3c   : > { %v1392_v41 = vshrl.u32 %v2030_v63, 16  ;;  %v1924_v44 = vrot.slane %v2643_v32, 9  ;;  %v1387_v15 = vshll.u32 %v2646_v23, 16  ;;  %v2669_v51 = vsel %vm2528_vm6, %v1920_v26, %v595_v11  ;;  %v2311_v11 = vld [vmem:[%s2386_s28 + $0x30] ss:$8 sps:$4 sm:$0xff]  }
  0x3d   : > { %v1380_v9 = vrot.slane %v1378_v37, 4  ;;  %v1383_v45 = vrot.slane %v1381_v31, 5  ;;  %v2673_v13 = vsel %vm2528_vm6, %v1921_v19, %v599_v7  ;;  %v1395_v52 = vshll.u32 %v2030_v63, 16  ;;  %v2038_v63 = vld [vmem:[%s2386_s28 + $0x38] sm:$0xf] }
  0x3e   : > { %v1394_v49 = vrot.slane %v1392_v41, 4  ;;  %v1401_v54 = vshll.u32 %v2655_v36, 16  ;;  %v1406_v55 = vshrl.u32 %v2032_v42, 16  ;;  %v1409_v56 = vshll.u32 %v2032_v42, 16  ;;  %v2716_v37 = vld [vmem:[%s2386_s28 + $0x3c] sm:$0x1] }
  0x3f   : > { %2145 = vmatmul.mubr.msk.bf16.vlgmr.msra.gmra.mrb[0].mxu1 %vm373_vm2, %v1909_v6  ;;  %v2684_v59 = vsel %vm2528_vm6, %v1922_v2, %v603_v46  ;;  %v1397_v4 = vrot.slane %v1395_v52, 5  ;;  %v1420_v61 = vshrl.u32 %v2034_v47, 16  ;;  %v1423_v62 = vshll.u32 %v2034_v47, 16  ;;  %v2036_v6 = vld [vmem:[%s2386_s28 + $0x30] sm:$0xf] }
  0x40   : > { %2153 = vmatpush3.bf16.msra.mxu1 %v2492_v58  ;;  %2148 = vmatprep.mubr.msk.bf16.mxu1 %vm373_vm2, %v1910_v30  ;;  %v1384_v58 = vor.u32 %v1383_v45, %v1380_v9  ;;  %v1389_v12 = vrot.slane %v1387_v15, 5  ;;  %v1408_v14 = vrot.slane %v1406_v55, 4  ;;  %v1411_v16 = vrot.slane %v1409_v56, 5  ;;  %v2040_v41 = vld [vmem:[%s2386_s28 + $0x40] sm:$0xf] }
  0x41   : > { %2189 = vmatmul.mubr.msk.bf16.gmra.mrb[4].mxu0 %vm373_vm2, %v2003_v29  ;;  %2162 = vmatprep.subr.bf16.mxu1 %v2630_v35  ;;  %v1415_v3 = vshll.u32 %v2676_v53, 16  ;;  %v1398_v21 = vor.u32 %v1397_v4, %v1394_v49  ;;  %v1422_v24 = vrot.slane %v1420_v61, 4  ;;  %v1425_v43 = vrot.slane %v1423_v62, 5  ;;  %v2042_v47 = vld [vmem:[%s2386_s28 + $0x48] sm:$0xf] }
  0x42   : > { %2194 = vmatprep.mubr.msk.bf16.mxu0 %vm373_vm2, %v2307_v38  ;;  %v1385_v18 = vrot.slane %v1384_v58, 4  ;;  %v611_v50 = vrot.slane %v2508_v20, 5  ;;  %v1403_v26 = vrot.slane %v1401_v54, 5  ;;  %v1412_v19 = vor.u32 %v1411_v16, %v1408_v14  ;;  %v2711_v38 = vld [vmem:[%s2874_s1 + $0x40] sm:$0xff]   ;;  %v2740_v62 = vld [vmem:[%s2386_s28 + $0x4c] sm:$0x1] }
  0x43   : > { %v1429_v22 = vshll.u32 %v2687_v5, 16  ;;  %v1928_v7 = vcombine.low %v2652_v17, %v2669_v51  ;;  %v1399_v2 = vrot.slane %v1398_v21, 4  ;;  %v1434_v29 = vshrl.u32 %v2036_v6, 16  ;;  %v2731_v52 = vld [vmem:[%s2386_s28 + $0x44] sm:$0x1] }
  0x44   : > { %v1929_v30 = vcombine.low %v2673_v13, %v2684_v59  ;;  %v2706_v20 = vsel %vm2528_vm6, %v1923_v57, %v607_v0  ;;  %v2713_v17 = vrot.slane %v1415_v3, 5  ;;  %v1437_v31 = vshll.u32 %v2036_v6, 16  ;;  %v2312_v58 = vld [vmem:[%s2386_s28 + $0x40] ss:$8 sps:$4 sm:$0xff]  }
  0x45   : > { %v1426_v46 = vor.u32 %v1425_v43, %v1422_v24  ;;  %v1436_v57 = vrot.slane %v1434_v29, 4  ;;  %v1448_v0 = vshrl.u32 %v2038_v63, 16  ;;  %v1404_v42 = vsel %vm2418_vm3, %v1399_v2, %v1403_v26 }
  0x46   : > { %v1413_v9 = vrot.slane %v1412_v19, 4  ;;  %v1439_v45 = vrot.slane %v1437_v31, 5  ;;  %v1443_v15 = vshll.u32 %v2698_v40, 16  ;;  %v1451_v13 = vshll.u32 %v2038_v63, 16  ;;  %v2055_v19 = vld [vmem:[%s2386_s28 + $0x10] sm:$0xe] }
  0x47   : > { %2149 = vmatmul.mubr.msk.bf16.gmra.mrb[4].mxu1 %vm373_vm2, %v1911_v33  ;;  %v1390_v33 = vsel %vm2418_vm3, %v1385_v18, %v1389_v12  ;;  %v1450_v51 = vrot.slane %v1448_v0, 4  ;;  %v1457_v49 = vshll.u32 %v2716_v37, 16  ;;  %v612_v54 = vsel %vm2528_vm6, %v1924_v44, %v611_v50  ;;  %v1965_v31 = vld [vmem:[%s2386_s28 + $0x30] sm:$0xf] }
  0x48   : > { %2154 = vmatprep.mubr.msk.bf16.mxu1 %vm373_vm2, %v1927_v39  ;;  %v1431_v39 = vrot.slane %v1429_v22, 5  ;;  %v1440_v55 = vor.u32 %v1439_v45, %v1436_v57  ;;  %v1465_v56 = vshll.u32 %v2040_v41, 16  ;;  %v2046_v59 = vcombine.low %v1390_v33, %v1404_v42  ;;  %v2314_v0 = vld [vmem:[%s2386_s28 + $0x8] ss:$8 sps:$4 sm:$0xff]  }
  0x49   : > { %2195 = vmatmul.mubr.msk.bf16.vlgmr.msra.gmra.mrb[0].mxu0 %vm373_vm2, %v2309_v8  ;;  %v1427_v4 = vrot.slane %v1426_v46, 4  ;;  %v1453_v61 = vrot.slane %v1451_v13, 5  ;;  %v1476_v8 = vshrl.u32 %v2042_v47, 16  ;;  %v1445_v12 = vrot.slane %v1443_v15, 5 }
  0x4a   : > { %2203 = vmatpush3.bf16.msra.mxu0 %v2593_v60  ;;  %2198 = vmatprep.mubr.msk.bf16.mxu0 %vm373_vm2, %v2311_v11  ;;  %v1462_v60 = vshrl.u32 %v2040_v41, 16  ;;  %v1467_v16 = vrot.slane %v1465_v56, 5  ;;  %v1479_v3 = vshll.u32 %v2042_v47, 16  ;;  %v1441_v32 = vrot.slane %v1440_v55, 4 }
  0x4b   : > { %2212 = vmatprep.subr.bf16.mxu0 %v2711_v38  ;;  %v1454_v11 = vor.u32 %v1453_v61, %v1450_v51  ;;  %v1471_v44 = vshll.u32 %v2731_v52, 16  ;;  %v1478_v18 = vrot.slane %v1476_v8, 4  ;;  %v1459_v21 = vrot.slane %v1457_v49, 5 }
  0x4c   : > { %v1464_v14 = vrot.slane %v1462_v60, 4  ;;  %v1481_v24 = vrot.slane %v1479_v3, 5  ;;  %v1485_v43 = vshll.u32 %v2740_v62, 16  ;;  %v1930_v22 = vcombine.low %v2706_v20, %v612_v54  ;;  %v1963_v20 = vld [vmem:[%s2386_s28 + $0x28] sm:$0xf] }
  0x4d   : > { %v1455_v50 = vrot.slane %v1454_v11, 4  ;;  %v1621_v2 = vrot.slane %v2646_v23, 5  ;;  %v1432_v63 = vsel %vm2418_vm3, %v1427_v4, %v1431_v39  ;;  %v1446_v29 = vsel %vm2418_vm3, %v1441_v32, %v1445_v12  ;;  %v2315_v3 = vld [vmem:[%s2386_s28 + $0x18] ss:$8 sps:$4 sm:$0xff]  }
  0x4e   : > { %v1468_v26 = vor.u32 %v1467_v16, %v1464_v14  ;;  %v1482_v6 = vor.u32 %v1481_v24, %v1478_v18  ;;  %v1487_v46 = vrot.slane %v1485_v43, 5  ;;  %v2063_v23 = vrot.slane %v2055_v19, 9  ;;  %v1967_v14 = vld [vmem:[%s2386_s28 + $0x38] sm:$0xf]  ;;  %v1969_v16 = vld [vmem:[%s2386_s28 + $0x40] sm:$0xf] }
  0x4f   : > { %2155 = vmatmul.mubr.msk.bf16.vlgmr.msra.gmra.mrb[0].mxu1 %vm373_vm2, %v1928_v7  ;;  %v2056_v7 = vld [vmem:[%s2386_s28 + $0x18] sm:$0xe]  ;;  %v1460_v33 = vsel %vm2418_vm3, %v1455_v50, %v1459_v21  ;;  %v1625_v57 = vrot.slane %v2655_v36, 5  ;;  %v918_v15 = vshll.u32 %v1963_v20, 16  ;;  %v929_v47 = vshrl.u32 %v1965_v31, 16 }
  0x50   : > { %2163 = vmatpush3.bf16.msra.mxu1 %v2630_v35  ;;  %2158 = vmatprep.mubr.msk.bf16.mxu1 %vm373_vm2, %v1929_v30  ;;  %v1418_v35 = vsel %vm2418_vm3, %v1413_v9, %v2713_v17  ;;  %v1473_v30 = vrot.slane %v1471_v44, 5  ;;  %v1469_v41 = vrot.slane %v1468_v26, 4  ;;  %v1483_v17 = vrot.slane %v1482_v6, 4  ;;  %v2057_v36 = vld [vmem:[%s2386_s28 + $0x20] sm:$0xe] }
  0x51   : > { %2199 = vmatmul.mubr.msk.bf16.gmra.mrb[4].mxu0 %vm373_vm2, %v2312_v58  ;;  %2222 = vmatprep.subr.bf16.mxu1 %v2365_v1  ;;  %v2064_v42 = vrot.slane %v2056_v7, 9  ;;  %v915_v9 = vshrl.u32 %v1963_v20, 16  ;;  %v2047_v45 = vcombine.low %v1418_v35, %v1432_v63  ;;  %v2048_v39 = vcombine.low %v1446_v29, %v1460_v33  ;;  %v2060_v50 = vld [vmem:[%s2386_s28 + $0x38] sm:$0xe]  ;;  %v2316_v26 = vld [vmem:[%s2386_s28 + $0x28] ss:$8 sps:$4 sm:$0xff]  }
  0x52   : > { %2204 = vmatprep.mubr.msk.bf16.mxu0 %vm373_vm2, %v2046_v59  ;;  %v932_v13 = vshll.u32 %v1965_v31, 16  ;;  %v1622_v49 = vsel %vm2528_vm6, %v2063_v23, %v1621_v2  ;;  %v920_v58 = vrot.slane %v918_v15, 5  ;;  %v931_v54 = vrot.slane %v929_v47, 4  ;;  %v2058_v59 = vld [vmem:[%s2386_s28 + $0x28] sm:$0xe] }
  0x53   : > { %v917_v51 = vrot.slane %v915_v9, 4  ;;  %v1474_v55 = vsel %vm2418_vm3, %v1469_v41, %v1473_v30  ;;  %v1488_v60 = vsel %vm2418_vm3, %v1483_v17, %v1487_v46  ;;  %v1626_v56 = vsel %vm2528_vm6, %v2064_v42, %v1625_v57  ;;  %v2061_v41 = vld [vmem:[%s2386_s28 + $0x40] sm:$0xe]  ;;  %v2062_v17 = vld [vmem:[%s2386_s28 + $0x48] sm:$0xe] }
  0x54   : > { %v934_v4 = vrot.slane %v932_v13, 5  ;;  %v924_v8 = vshll.u32 %v2540_v10, 16  ;;  %v938_v12 = vshll.u32 %v2550_v25, 16  ;;  %v2065_v32 = vrot.slane %v2057_v36, 9  ;;  %v2059_v10 = vld [vmem:[%s2386_s28 + $0x30] sm:$0xe] }
  0x55   : > { %v921_v61 = vor.u32 %v920_v58, %v917_v51  ;;  %v1629_v11 = vrot.slane %v2676_v53, 5  ;;  %v2049_v18 = vcombine.low %v1474_v55, %v1488_v60  ;;  %v2073_v21 = vcombine.low %v1622_v49, %v1626_v56 }
  0x56   : > { %v935_v44 = vor.u32 %v934_v4, %v931_v54  ;;  %v2066_v24 = vrot.slane %v2058_v59, 9  ;;  %v1633_v43 = vrot.slane %v2687_v5, 5  ;;  %v943_v25 = vshrl.u32 %v1967_v14, 16 }
  0x57   : > { %2159 = vmatmul.mubr.msk.bf16.gmra.mrb[4].mxu1 %vm373_vm2, %v1930_v22  ;;  %v946_v19 = vshll.u32 %v1967_v14, 16  ;;  %v957_v22 = vshrl.u32 %v1969_v16, 16  ;;  %v960_v6 = vshll.u32 %v1969_v16, 16  ;;  %v926_v7 = vrot.slane %v924_v8, 5 }
  0x58   : > { %2164 = vmatprep.mubr.msk.bf16.mxu1 %vm373_vm2, %v2314_v0  ;;  %v936_v2 = vrot.slane %v935_v44, 4  ;;  %v940_v35 = vrot.slane %v938_v12, 5  ;;  %v2067_v63 = vrot.slane %v2059_v10, 9  ;;  %v1637_v53 = vrot.slane %v2698_v40, 5  ;;  %v2317_v0 = vld [vmem:[%s2386_s28 + $0x38] ss:$8 sps:$4 sm:$0xff]  }
  0x59   : > { %2205 = vmatmul.mubr.msk.bf16.vlgmr.msra.gmra.mrb[0].mxu0 %vm373_vm2, %v2047_v45  ;;  %v2068_v29 = vrot.slane %v2060_v50, 9  ;;  %v1641_v30 = vrot.slane %v2716_v37, 5  ;;  %v945_v5 = vrot.slane %v943_v25, 4  ;;  %v948_v20 = vrot.slane %v946_v19, 5  ;;  %v1798_v50 = vld [vmem:[%s2839_s20 + $0x10] sm:$0xff]  ;;  %v1796_v19 = vld [vmem:[%s2839_s20] sm:$0xff] }
  0x5a   : > { %2213 = vmatpush3.bf16.msra.mxu0 %v2711_v38  ;;  %2208 = vmatprep.mubr.msk.bf16.mxu0 %vm373_vm2, %v2048_v39  ;;  %v922_v38 = vrot.slane %v921_v61, 4  ;;  %v959_v31 = vrot.slane %v957_v22, 4  ;;  %v962_v33 = vrot.slane %v960_v6, 5  ;;  %v952_v46 = vshll.u32 %v2558_v27, 16 }
  0x5b   : > { %v941_v37 = vsel %vm2418_vm3, %v936_v2, %v940_v35  ;;  %v1634_v23 = vsel %vm2528_vm6, %v2066_v24, %v1633_v43  ;;  %v1638_v57 = vsel %vm2528_vm6, %v2067_v63, %v1637_v53  ;;  %v1642_v27 = vsel %vm2528_vm6, %v2068_v29, %v1641_v30  ;;  %v1797_v53 = vld [vmem:[%s2839_s20 + $0x8] sm:$0xff] }
  0x5c   : > { %v927_v40 = vsel %vm2418_vm3, %v922_v38, %v926_v7  ;;  %v966_v42 = vshll.u32 %v2568_v34, 16  ;;  %v949_v45 = vor.u32 %v948_v20, %v945_v5  ;;  %v963_v15 = vor.u32 %v962_v33, %v959_v31  ;;  %v1799_v7 = vld [vmem:[%s2839_s20 + $0x18] sm:$0xff] }
  0x5d   : > { %v1975_v9 = vcombine.low %v927_v40, %v941_v37  ;;  %v2075_v39 = vcombine.low %v1638_v57, %v1642_v27  ;;  %v2069_v51 = vrot.slane %v2061_v41, 9  ;;  %v1645_v13 = vrot.slane %v2731_v52, 5 }
  0x5e   : > { %v2070_v49 = vrot.slane %v2062_v17, 9  ;;  %v1649_v36 = vrot.slane %v2740_v62, 5  ;;  %v954_v58 = vrot.slane %v952_v46, 5  ;;  %v968_v54 = vrot.slane %v966_v42, 5 }
  0x5f   : > { %2165 = vmatmul.mubr.msk.bf16.vlgmr.msra.gmra.mrb[0].mxu1 %vm373_vm2, %v2315_v3  ;;  %v950_v55 = vrot.slane %v949_v45, 4  ;;  %v964_v34 = vrot.slane %v963_v15, 4  ;;  %v1646_v60 = vsel %vm2528_vm6, %v2069_v51, %v1645_v13  ;;  %v1800_v13 = vld [vmem:[%s2839_s20 + $0x20] sm:$0xff] }
  0x60   : > { %2223 = vmatpush3.bf16.msra.mxu1 %v2365_v1  ;;  %2168 = vmatprep.mubr.msk.bf16.mxu1 %vm373_vm2, %v2316_v26  ;;  %v1630_v1 = vsel %vm2528_vm6, %v2065_v32, %v1629_v11  ;;  %v1650_v52 = vsel %vm2528_vm6, %v2070_v49, %v1649_v36 }
  0x61   : > { %2209 = vmatmul.mubr.msk.bf16.gmra.mrb[4].mxu0 %vm373_vm2, %v2049_v18  ;;  %v2074_v47 = vcombine.low %v1630_v1, %v1634_v23  ;;  %v955_v62 = vsel %vm2418_vm3, %v950_v55, %v954_v58  ;;  %v969_v56 = vsel %vm2418_vm3, %v964_v34, %v968_v54  ;;  %v2076_v59 = vcombine.low %v1646_v60, %v1650_v52  ;;  %v1803_v54 = vld [vmem:[%s2839_s20 + $0x38] sm:$0xff]  ;;  %v1801_v52 = vld [vmem:[%s2839_s20 + $0x28] sm:$0xff] }
  0x62   : > { %2214 = vmatprep.mubr.msk.bf16.mxu0 %vm373_vm2, %v2073_v21  ;;  %v1976_v4 = vcombine.low %v955_v62, %v969_v56 }
  0x67   : > { %2169 = vmatmul.mubr.msk.bf16.gmra.mrb[4].mxu1 %vm373_vm2, %v2317_v0 }
  0x68   : > { %2178 = vmatprep.mubr.msk.bf16.mxu1 %vm373_vm2, %v1975_v9 }
  0x69   : > { %2215 = vmatmul.mubr.msk.bf16.vlgmr.msra.gmra.mrb[0].mxu0 %vm373_vm2, %v2074_v47  ;;  %v1802_v47 = vld [vmem:[%s2839_s20 + $0x30] sm:$0xff] }
  0x6a   : > { %2218 = vmatprep.mubr.msk.bf16.mxu0 %vm373_vm2, %v2075_v39 }
  0x71   : > { %2219 = vmatmul.mubr.msk.bf16.gmra.mrb[4].mxu0 %vm373_vm2, %v2076_v59 }
  0x73   : > { %2179 = vmatmul.mubr.msk.bf16.vlgmr.msra.gmra.mrb[4].mxu1 %vm373_vm2, %v1976_v4 }
 0x132   : > { %v2166_v61 = vpop.f32.mrb[0].mxu1 }
 0x133   : > { %v803_v8 = vpop.f32.mrb[1].mxu1 }
 0x134   : > { %v2167_v12 = vpop.f32.mrb[2].mxu1 }
 0x135   : > { %v806_v14 = vpop.f32.mrb[3].mxu1 }
 0x13c   : > { %v2216_v16 = vpop.f32.mrb[0].mxu0 }
 0x13d   : > { %v2224_v3 = vadd.f32 %v2216_v16, %v2166_v61  ;;  %v1718_v32 = vpop.f32.mrb[1].mxu0 }
 0x13e   : > { %v2225_v28 = vadd.f32 %v1718_v32, %v803_v8  ;;  %v2217_v11 = vpop.f32.mrb[2].mxu0 }
 0x13f   : > { %v1766_v44 = vadd.f32 %v2224_v3, %v2082_v48  ;;  %v2226_v18 = vadd.f32 %v2217_v11, %v2167_v12  ;;  %v1721_v21 = vpop.f32.mrb[3].mxu0 }
 0x140   : > { %v1764_v24 = vadd.f32 %v2225_v28, %v2082_v48  ;;  %v2227_v43 = vadd.f32 %v1721_v21, %v806_v14 }
 0x141   : > { %vm1774_vm7 = vcmp.ge.f32.partialorder %v1766_v44, 0.0  ;;  %v1782_v10 = vmul.f32 0.2, %v1766_v44  ;;  %v1767_v26 = vadd.f32 %v2226_v18, %v2082_v48 }
 0x142   : > { %vm1772_vm8 = vcmp.ge.f32.partialorder %v1764_v24, 0.0  ;;  %v1780_v25 = vmul.f32 0.2, %v1764_v24  ;;  %v1765_v22 = vadd.f32 %v2227_v43, %v2082_v48 }
 0x143   : > { %v1790_v6 = vsel %vm1774_vm7, %v1766_v44, %v1782_v10  ;;  %vm1775_vm9 = vcmp.ge.f32.partialorder %v1767_v26, 0.0  ;;  %v1783_v38 = vmul.f32 0.2, %v1767_v26 }
 0x144   : > { %v1806_v2 = vadd.f32 %v1798_v50, %v1790_v6  ;;  %v1788_v35 = vsel %vm1772_vm8, %v1764_v24, %v1780_v25  ;;  %vm1773_vm10 = vcmp.ge.f32.partialorder %v1765_v22, 0.0  ;;  %v1781_v63 = vmul.f32 0.2, %v1765_v22  ;;  %v2220_v29 = vpop.f32.mrb[4].mxu0 }
 0x145   : > { %v1804_v30 = vadd.f32 %v1796_v19, %v1788_v35  ;;  %v1791_v5 = vsel %vm1775_vm9, %v1767_v26, %v1783_v38  ;;  %v1734_v20 = vpop.f32.mrb[5].mxu0 }
 0x146   : > { %1814 = vst.msk [vmem:[%s2846_s22 + $0x10] sm:$0xff] %vm373_vm2, %v1806_v2  ;;  %v1807_v31 = vadd.f32 %v1799_v7, %v1791_v5  ;;  %v1789_v33 = vsel %vm1773_vm10, %v1765_v22, %v1781_v63  ;;  %v2180_v46 = vpop.f32.mrb[4].mxu1  ;;  %v2221_v40 = vpop.f32.mrb[6].mxu0 }
 0x147   : > { %1812 = vst.msk [vmem:[%s2846_s22] sm:$0xff] %vm373_vm2, %v1804_v30  ;;  %v1805_v37 = vadd.f32 %v1797_v53, %v1789_v33  ;;  %v2228_v1 = vadd.f32 %v2220_v29, %v2180_v46  ;;  %v1053_v23 = vpop.f32.mrb[5].mxu1  ;;  %v1737_v57 = vpop.f32.mrb[7].mxu0 }
 0x148   : > { %1815 = vst.msk [vmem:[%s2846_s22 + $0x18] sm:$0xff] %vm373_vm2, %v1807_v31  ;;  %v2229_v27 = vadd.f32 %v1734_v20, %v1053_v23  ;;  %v2181_v0 = vpop.f32.mrb[6].mxu1 }
 0x149   : > { %1813 = vst.msk [vmem:[%s2846_s22 + $0x8] sm:$0xff] %vm373_vm2, %v1805_v37  ;;  %v1770_v41 = vadd.f32 %v2228_v1, %v2082_v48  ;;  %v2230_v17 = vadd.f32 %v2221_v40, %v2181_v0  ;;  %v1056_v42 = vpop.f32.mrb[7].mxu1 }
 0x14a   : > { %v1768_v9 = vadd.f32 %v2229_v27, %v2082_v48  ;;  %v2231_v45 = vadd.f32 %v1737_v57, %v1056_v42 }
 0x14b   : > { %vm1778_vm11 = vcmp.ge.f32.partialorder %v1770_v41, 0.0  ;;  %v1786_v15 = vmul.f32 0.2, %v1770_v41  ;;  %v1771_v39 = vadd.f32 %v2230_v17, %v2082_v48 }
 0x14c   : > { %vm1776_vm12 = vcmp.ge.f32.partialorder %v1768_v9, 0.0  ;;  %v1784_v51 = vmul.f32 0.2, %v1768_v9  ;;  %v1769_v49 = vadd.f32 %v2231_v45, %v2082_v48 }
 0x14d   : > { %v1794_v36 = vsel %vm1778_vm11, %v1770_v41, %v1786_v15  ;;  %vm1779_vm13 = vcmp.ge.f32.partialorder %v1771_v39, 0.0  ;;  %v1787_v58 = vmul.f32 0.2, %v1771_v39 }
 0x14e   : > { %v1810_v55 = vadd.f32 %v1802_v47, %v1794_v36  ;;  %v1792_v34 = vsel %vm1776_vm12, %v1768_v9, %v1784_v51  ;;  %vm1777_vm14 = vcmp.ge.f32.partialorder %v1769_v49, 0.0  ;;  %v1785_v60 = vmul.f32 0.2, %v1769_v49 }
 0x14f   : > { %v1808_v62 = vadd.f32 %v1800_v13, %v1792_v34  ;;  %v1795_v56 = vsel %vm1779_vm13, %v1771_v39, %v1787_v58 }
 0x150   : > { %1818 = vst.msk [vmem:[%s2846_s22 + $0x30] sm:$0xff] %vm373_vm2, %v1810_v55  ;;  %v1811_v59 = vadd.f32 %v1803_v54, %v1795_v56  ;;  %v1793_v4 = vsel %vm1777_vm14, %v1769_v49, %v1785_v60 }
 0x151   : > { %1816 = vst.msk [vmem:[%s2846_s22 + $0x20] sm:$0xff] %vm373_vm2, %v1808_v62  ;;  %v1809_v61 = vadd.f32 %v1801_v52, %v1793_v4 }
 0x152   : > { %1819 = vst.msk [vmem:[%s2846_s22 + $0x38] sm:$0xff] %vm373_vm2, %v1811_v59 }
 0x153   : > { %1817 = vst.msk [vmem:[%s2846_s22 + $0x28] sm:$0xff] %vm373_vm2, %v1809_v61 }
 0x154 PF: > { %s14_s15 = sadd.s32 1, %s2324_s15  }
 0x155   : > { %p11_p4 = scmp.ge.s32.totalorder %s14_s15, 4  }
 0x157   :  { %13 = sbr.rel (!%p11_p4) target bundleno = 1 (0x1), region = 79 }

// kernel: _lambda_.11
= control target key start
LH: loop header
LB: loop body
LE: loop exit
PB: predicated region body
PF: predicated region fallthrough
CT: control target
= control target key end

     0   :  { %9 = vsyncpa [#allocation3], 0  ;;  %s3076_s0 = inlined_call_operand.vmem [shape: bf16[2,10,10,16], index: 0, kind: input, shape index: {}]   ;;  %s3077_s1 = inlined_call_operand.vmem [shape: bf16[3,3,16,16], index: 1, kind: input, shape index: {}]   ;;  %s3078_s2 = inlined_call_operand.vmem [shape: f32[1,16], index: 2, kind: input, shape index: {}]   ;;  %s3079_s3 = inlined_call_operand.vmem [shape: f32[2,64,16], index: 3, kind: input, shape index: {}]   ;;  %s3080_s4 = inlined_call_operand.hbm [shape: f32[2,64,16], index: 4, kind: output, shape index: {}]  }
   0x1   :  { %11 = vsyncpa [#allocation3 + $0x1], 0  ;;  %s2463_s15 = smov 0   ;;  %s2465_s16 = smov 0  }
   0x2   :  { %s2467_s17 = smov 0   ;;  %s2469_s18 = smov 0  }
   0x3 LB: > { %s2484_s19 = sadd.s32 4294967295, %s2433_s18   ;;  %s1906_s20 = sadd.s32 4294967294, %s2433_s18   ;;  %s2433_s18 = sphi %s2469_s18, %s3090_s18   ;;  %s2429_s17 = sphi %s2467_s17, %s3089_s17   ;;  %s2425_s16 = sphi %s2465_s16, %s3088_s16   ;;  %s2421_s15 = sphi %s2463_s15, %s3087_s15  }
   0x4   : > { %s2488_s21 = sadd.s32 1, %s2433_s18   ;;  %s118_s22 = sadd.s32 1, %s2429_s17 }
   0x5   : > { %s115_s23 = ssub.s32 %s2433_s18, %s2488_s21  ;;  %p128_p0 = scmp.ne.s32.totalorder %s2429_s17, %s2425_s16 }
   0x6   : > { %p116_p1 = scmp.eq.s32.totalorder %s115_s23, 0  ;;  %p129_p2 = scmp.eq.s32.totalorder %s2484_s19, 1 }
   0x7   : > { %p134_p3 = scmp.ne.s32.totalorder %s2425_s16, %s2421_s15  ;;  %p135_p4 = scmp.eq.s32.totalorder %s1906_s20, 1 }
   0x8   : > { %s2499_s24 = scalar_select %p116_p1, %s2429_s17, %s118_s22  }
   0x9   : > { %p2501_p5 = por %p129_p2, %p128_p0  ;;  %p2505_p6 = por %p135_p4, %p134_p3 }
   0xa   : > { %p1909_p7 = scmp.ge.s32.totalorder %s2433_s18, 1  ;;  %p175_p8 = scmp.lt.s32.totalorder %s2433_s18, 3 }
   0xc   : > { %p176_p9 = pnand %p1909_p7, %p175_p8 }
   0xd   : > { %v2350_v0 = vld [vmem:[%s3077_s1 + $0x8] sm:$0xff] (!%p176_p9)   ;;  %p206_p10 = scmp.lt.s32.totalorder (!%p176_p9), %s2484_s19, 1  ;;  %v2518_v1 = vld [vmem:[%s3077_s1 + $0x20] sm:$0xff] (!%p176_p9)   ;;  %vm235_vm0 = vsmask.f32 (!%p176_p9), 3328  ;;  %vm371_vm2 = vcmask (!%p176_p9), 130048  }
   0xe   : > { %179 = sbr.rel (%p176_p9) target bundleno = 363 (0x16b), region = 36  ;;  %2152 = vmatprep.subr.bf16.mxu1 (!%p176_p9), %v2350_v0  ;;  %v2526_v2 = vld [vmem:[%s3077_s1] sm:$0xff] (!%p176_p9)   ;;  %2192 = vmatprep.subr.bf16.mxu0 (!%p176_p9), %v2518_v1  ;;  %v2535_v3 = vld [vmem:[%s3077_s1 + $0x28] sm:$0xff] (!%p176_p9)   ;;  %vm236_vm1 = vsmask.f32 (!%p176_p9), 7440  ;;  %vm576_vm4 = vcmask (!%p176_p9), 1042432  }
   0xf   : > { %2153 = vmatpush3.bf16.msra.mxu1 (!%p176_p9), %v2350_v0  ;;  %2193 = vmatpush3.bf16.msra.mxu0 (!%p176_p9), %v2518_v1  ;;  %vm2572_vm3 = vmor (!%p176_p9), %vm235_vm0, %vm236_vm1  ;;  %vm577_vm5 = vcmask (!%p176_p9), 1046532   ;;  %s203_s11 = sand.u32 (!%p176_p9), 1, %s2425_s16   ;;  %s2106_s22 = sshll.u32 (!%p176_p9), %s2484_s19, 10 }
  0x10   : > { %2162 = vmatprep.subr.bf16.mxu1 (!%p176_p9), %v2526_v2  ;;  %2202 = vmatprep.subr.bf16.mxu0 (!%p176_p9), %v2535_v3  ;;  %vm2682_vm6 = vmor (!%p176_p9), %vm576_vm4, %vm577_vm5  ;;  %s3035_s29 = scalar_lea.sflag (!%p176_p9), [#allocation3], %s203_s11  ;;  %s2435_s6 = smov (!%p176_p9), [#allocation2]  }
  0x11   : > { %s2375_s7 = sshll.u32 (!%p176_p9), %s2435_s6, 4  ;;  %s2376_s7 = int_to_ptr.vmem [resolvable:$false] %s2375_s7 }
  0x15   : > { %s2521_s5 = scalar_select %p206_p10, %s2484_s19, 1 }
  0x16   : > { %s3023_s19 = scalar_lea.hbm %s3080_s4, %s2106_s22 }
  0x17   : > { %s2308_s8 = smul.u32 80, %s2521_s5 }
  0x19   : > { %s2540_s13 = scalar_lea.vmem %s3076_s0, %s2308_s8  ;;  %s2105_s8 = sshll.u32 %s2521_s5, 6 }
  0x1a   : > { %v2544_v4 = vld [vmem:[%s2540_s13] sm:$0xf]  ;;  %v2547_v5 = vld [vmem:[%s2540_s13 + $0x8] sm:$0xf]  ;;  %v2550_v6 = vld [vmem:[%s2540_s13 + $0x4] sm:$0x1]  ;;  %s2994_s14 = scalar_lea.vmem %s3079_s3, %s2105_s8 }
  0x1b   : > { %v2553_v7 = vld [vmem:[%s2540_s13 + $0xc] sm:$0x1]  ;;  %v239_v8 = vshrl.u32 %v2544_v4, 16  ;;  %v242_v9 = vshll.u32 %v2544_v4, 16  ;;  %v248_v10 = vshll.u32 %v2550_v6, 16  ;;  %v253_v11 = vshrl.u32 %v2547_v5, 16 }
  0x1c   : > { %v256_v12 = vshll.u32 %v2547_v5, 16  ;;  %v262_v13 = vshll.u32 %v2553_v7, 16  ;;  %v1972_v14 = vld [vmem:[%s2540_s13 + $0x8] sm:$0xf]  ;;  %v2563_v19 = vld [vmem:[%s2540_s13 + $0xc] sm:$0x1] }
  0x1d   : > { %v241_v15 = vrot.slane %v239_v8, 4  ;;  %v244_v16 = vrot.slane %v242_v9, 5  ;;  %v250_v17 = vrot.slane %v248_v10, 5  ;;  %v255_v18 = vrot.slane %v253_v11, 4  ;;  %v1974_v22 = vld [vmem:[%s2540_s13 + $0x10] sm:$0xf] }
  0x1e   : > { %v258_v20 = vrot.slane %v256_v12, 5  ;;  %v264_v21 = vrot.slane %v262_v13, 5  ;;  %v2567_v23 = vld [vmem:[%s2540_s13 + $0x14] sm:$0x1]  ;;  %v857_v25 = vshrl.u32 %v1972_v14, 16  ;;  %v860_v26 = vshll.u32 %v1972_v14, 16 }
  0x1f   : > { %v245_v24 = vor.u32 %v244_v16, %v241_v15  ;;  %v866_v27 = vshll.u32 %v2563_v19, 16  ;;  %v871_v30 = vshrl.u32 %v1974_v22, 16  ;;  %v874_v31 = vshll.u32 %v1974_v22, 16  ;;  %v2578_v33 = vld [vmem:[%s2540_s13 + $0x10] sm:$0xf]  ;;  %s1910_s5 = sshll.u32 %s203_s11, 6 }
  0x20   : > { %v259_v29 = vor.u32 %v258_v20, %v255_v18  ;;  %v880_v32 = vshll.u32 %v2567_v23, 16  ;;  %v581_v35 = vrot.slane %v2550_v6, 5  ;;  %v859_v36 = vrot.slane %v857_v25, 4  ;;  %v2582_v38 = vld [vmem:[%s2540_s13 + $0x18] sm:$0xf]  ;;  %s3002_s20 = scalar_lea.vmem [#allocation2], %s1910_s5 }
  0x21   : > { %v246_v34 = vrot.slane %v245_v24, 4  ;;  %v862_v37 = vrot.slane %v860_v26, 5  ;;  %v585_v40 = vrot.slane %v2553_v7, 5  ;;  %v873_v41 = vrot.slane %v871_v30, 4  ;;  %v2586_v43 = vld [vmem:[%s2540_s13 + $0x14] sm:$0x1] }
  0x22   : > { %v260_v39 = vrot.slane %v259_v29, 4  ;;  %v876_v42 = vrot.slane %v874_v31, 5  ;;  %v868_v46 = vrot.slane %v866_v27, 5  ;;  %v882_v47 = vrot.slane %v880_v32, 5  ;;  %v2593_v50 = vld [vmem:[%s2540_s13 + $0x1c] sm:$0x1] }
  0x23   : > { %v251_v44 = vsel %vm2572_vm3, %v246_v34, %v250_v17  ;;  %v863_v45 = vor.u32 %v862_v37, %v859_v36  ;;  %v267_v51 = vshrl.u32 %v2578_v33, 16  ;;  %v270_v52 = vshll.u32 %v2578_v33, 16  ;;  %v1976_v61 = vld [vmem:[%s2540_s13 + $0x18] sm:$0xf]  ;;  %v2607_v9 = vld [vmem:[%s2540_s13 + $0x1c] sm:$0x1] }
  0x24   : > { %v265_v48 = vsel %vm2572_vm3, %v260_v39, %v264_v21  ;;  %v877_v49 = vor.u32 %v876_v42, %v873_v41  ;;  %v276_v55 = vshll.u32 %v2586_v43, 16  ;;  %v281_v56 = vshrl.u32 %v2582_v38, 16  ;;  %v1978_v14 = vld [vmem:[%s2540_s13 + $0x20] sm:$0xf]  ;;  %v2613_v15 = vld [vmem:[%s2540_s13 + $0x24] sm:$0x1] }
  0x25   : > { %v1916_v53 = vcombine.low %v251_v44, %v265_v48  ;;  %v864_v54 = vrot.slane %v863_v45, 4  ;;  %v269_v58 = vrot.slane %v267_v51, 4  ;;  %v272_v59 = vrot.slane %v270_v52, 5  ;;  %v2620_v31 = vld [vmem:[%s2540_s13 + $0x20] sm:$0xf]  ;;  %s1832_s23 = sshll.u32 %s3002_s20, 4  ;;  %s3025_s23 = int_to_ptr.vmem [resolvable:$true] %s1832_s23 }
  0x26   : > { %v878_v57 = vrot.slane %v877_v49, 4  ;;  %v284_v60 = vshll.u32 %v2582_v38, 16  ;;  %v1100_v63 = vrot.slane %v2563_v19, 5  ;;  %v283_v0 = vrot.slane %v281_v56, 4  ;;  %v2625_v39 = vld [vmem:[%s2540_s13 + $0x24] sm:$0x1]  ;;  %p2378_p0 = scmp.lt.s32.totalorder %s3025_s23, %s2376_s7 }
  0x27   : > { %2154 = vmatprep.mubr.msk.bf16.mxu1 %vm371_vm2, %v1916_v53  ;;  %v869_v62 = vsel %vm2572_vm3, %v864_v54, %v868_v46  ;;  %v290_v8 = vshll.u32 %v2593_v50, 16  ;;  %v273_v11 = vor.u32 %v272_v59, %v269_v58  ;;  %v278_v12 = vrot.slane %v276_v55, 5  ;;  %v2629_v46 = vld [vmem:[%s2540_s13 + $0x28] sm:$0xf]  ;;  %v2635_v51 = vld [vmem:[%s2540_s13 + $0x2c] sm:$0x1] }
  0x28   : > { %v883_v10 = vsel %vm2572_vm3, %v878_v57, %v882_v47  ;;  %v286_v13 = vrot.slane %v284_v60, 5  ;;  %v1104_v17 = vrot.slane %v2567_v23, 5  ;;  %v885_v20 = vshrl.u32 %v1976_v61, 16  ;;  %v2641_v57 = vld [vmem:[%s2540_s13 + $0x30] sm:$0xf]  ;;  %s2371_s30 = scalar_lea.vmem %s3025_s23, 1024 }
  0x29   : > { %v1990_v16 = vcombine.low %v869_v62, %v883_v10  ;;  %v292_v18 = vrot.slane %v290_v8, 5  ;;  %v274_v21 = vrot.slane %v273_v11, 4  ;;  %v888_v24 = vshll.u32 %v1976_v61, 16  ;;  %v2646_v58 = vld [vmem:[%s3077_s1 + $0x10] sm:$0xff]   ;;  %p2372_p11 = scmp.ne.s32.totalorder %s3025_s23, %s2371_s30  ;;  %s2377_s8 = scalar_lea.vmem %s2376_s7, 2048 }
  0x2a   : > { %v287_v22 = vor.u32 %v286_v13, %v283_v0  ;;  %v894_v25 = vshll.u32 %v2607_v9, 16  ;;  %v887_v26 = vrot.slane %v885_v20, 4  ;;  %v899_v27 = vshrl.u32 %v1978_v14, 16  ;;  %v2651_v0 = vld [vmem:[%s2540_s13 + $0x38] sm:$0xf]  ;;  %p2379_p1 = scmp.lt.s32.totalorder %s2377_s8, %s2371_s30 }
  0x2b   : > { %2194 = vmatprep.mubr.msk.bf16.mxu0 %vm371_vm2, %v1990_v16  ;;  %v902_v29 = vshll.u32 %v1978_v14, 16  ;;  %v908_v30 = vshll.u32 %v2613_v15, 16  ;;  %v279_v32 = vsel %vm2572_vm3, %v274_v21, %v278_v12  ;;  %v890_v36 = vrot.slane %v888_v24, 5  ;;  %v2656_v13 = vld [vmem:[%s2540_s13 + $0x34] sm:$0x1]  ;;  %p2373_p12 = pnand %p2372_p11, %p2501_p5 }
  0x2c   : > { %v288_v34 = vrot.slane %v287_v22, 4  ;;  %v896_v37 = vrot.slane %v894_v25, 5  ;;  %v901_v41 = vrot.slane %v899_v27, 4  ;;  %v1108_v45 = vrot.slane %v2607_v9, 5  ;;  %v2662_v20 = vld [vmem:[%s2540_s13 + $0x3c] sm:$0x1]  ;;  %p2380_p2 = por %p2379_p1, %p2378_p0 }
  0x2d   : > { %v904_v42 = vrot.slane %v902_v29, 5  ;;  %v910_v44 = vrot.slane %v908_v30, 5  ;;  %v891_v48 = vor.u32 %v890_v36, %v887_v26  ;;  %v1112_v49 = vrot.slane %v2613_v15, 5  ;;  %v2668_v22 = vld [vmem:[%s3077_s1 + $0x30] sm:$0xff]   ;;  %v1999_v27 = vld [vmem:[%s2540_s13 + $0x8] sm:$0xe]  ;;  %p2374_p13 = pneg %p2373_p12 }
  0x2e   : > { %v293_v47 = vsel %vm2572_vm3, %v288_v34, %v292_v18  ;;  %v295_v52 = vshrl.u32 %v2620_v31, 16  ;;  %v298_v55 = vshll.u32 %v2620_v31, 16  ;;  %v304_v56 = vshll.u32 %v2625_v39, 16  ;;  %v2000_v29 = vld [vmem:[%s2540_s13 + $0x10] sm:$0xe] }
  0x2f   : > { %v1917_v53 = vcombine.low %v279_v32, %v293_v47  ;;  %v905_v54 = vor.u32 %v904_v42, %v901_v41  ;;  %v892_v59 = vrot.slane %v891_v48, 4  ;;  %v309_v61 = vshrl.u32 %v2629_v46, 16  ;;  %p2381_p3 = pnand %p2380_p2, %p2374_p13 }
  0x30   : > { %v297_v60 = vrot.slane %v295_v52, 4  ;;  %v312_v62 = vshll.u32 %v2629_v46, 16  ;;  %v300_v10 = vrot.slane %v298_v55, 5  ;;  %v306_v11 = vrot.slane %v304_v56, 5  ;;  %v2002_v52 = vld [vmem:[%s2540_s13 + $0x20] sm:$0xe] }
  0x31   : > { %2155 = vmatmul.mubr.msk.bf16.vlgmr.msra.gmra.mrb[0].mxu1 %vm371_vm2, %v1917_v53  ;;  %v906_v8 = vrot.slane %v905_v54, 4  ;;  %v318_v12 = vshll.u32 %v2635_v51, 16  ;;  %v897_v14 = vsel %vm2572_vm3, %v892_v59, %v896_v37  ;;  %v311_v16 = vrot.slane %v309_v61, 4  ;;  %v2001_v37 = vld [vmem:[%s2540_s13 + $0x18] sm:$0xe] }
  0x32   : > { %2163 = vmatpush3.bf16.msra.mxu1 %v2526_v2  ;;  %v314_v18 = vrot.slane %v312_v62, 5  ;;  %v323_v21 = vshrl.u32 %v2641_v57, 16  ;;  %v301_v25 = vor.u32 %v300_v10, %v297_v60  ;;  %v326_v26 = vshll.u32 %v2641_v57, 16  ;;  %v2003_v59 = vld [vmem:[%s2540_s13 + $0x28] sm:$0xe] }
  0x33   : > { %v911_v24 = vsel %vm2572_vm3, %v906_v8, %v910_v44  ;;  %v320_v2 = vrot.slane %v318_v12, 5  ;;  %2172 = vmatprep.subr.bf16.mxu1 %v2646_v58  ;;  %v332_v36 = vshll.u32 %v2656_v13, 16  ;;  %v337_v44 = vshrl.u32 %v2651_v0, 16  ;;  %v2694_v10 = vld [vmem:[%s2540_s13 + $0x2c] sm:$0x1] }
  0x34   : > { %v1991_v30 = vcombine.low %v897_v14, %v911_v24  ;;  %v315_v32 = vor.u32 %v314_v18, %v311_v16  ;;  %v325_v34 = vrot.slane %v323_v21, 4  ;;  %v302_v41 = vrot.slane %v301_v25, 4  ;;  %v2704_v25 = vld [vmem:[%s2540_s13 + $0x34] sm:$0x1] }
  0x35   : > { %v328_v42 = vrot.slane %v326_v26, 5  ;;  %v340_v47 = vshll.u32 %v2651_v0, 16  ;;  %v334_v54 = vrot.slane %v332_v36, 5  ;;  %v346_v55 = vshll.u32 %v2662_v20, 16  ;;  %v2004_v26 = vld [vmem:[%s2540_s13 + $0x30] sm:$0xe] }
  0x36   : > { %2195 = vmatmul.mubr.msk.bf16.vlgmr.msra.gmra.mrb[0].mxu0 %vm371_vm2, %v1991_v30  ;;  %v316_v53 = vrot.slane %v315_v32, 4  ;;  %v2007_v56 = vrot.slane %v1999_v27, 9  ;;  %v307_v60 = vsel %vm2572_vm3, %v302_v41, %v306_v11  ;;  %v339_v62 = vrot.slane %v337_v44, 4  ;;  %v2712_v27 = vld [vmem:[%s2540_s13 + $0x3c] sm:$0x1] }
  0x37   : > { %2203 = vmatpush3.bf16.msra.mxu0 %v2535_v3  ;;  %v329_v61 = vor.u32 %v328_v42, %v325_v34  ;;  %v342_v8 = vrot.slane %v340_v47, 5  ;;  %v348_v14 = vrot.slane %v346_v55, 5  ;;  %v2008_v3 = vrot.slane %v2000_v29, 9  ;;  %v2722_v34 = vld [vmem:[%s2540_s13 + $0x44] sm:$0x1] }
  0x38   : > { %v321_v12 = vsel %vm2572_vm3, %v316_v53, %v320_v2  ;;  %v1101_v16 = vsel %vm2682_vm6, %v2007_v56, %v1100_v63  ;;  %2212 = vmatprep.subr.bf16.mxu0 %v2668_v22  ;;  %v2009_v24 = vrot.slane %v2001_v37, 9  ;;  %v2010_v2 = vrot.slane %v2002_v52, 9  ;;  %v2006_v44 = vld [vmem:[%s2540_s13 + $0x40] sm:$0xe]  ;;  %v553_v55 = vld [vmem:[%s2540_s13 + $0x8] sm:$0xe] }
  0x39   : > { %v1918_v11 = vcombine.low %v307_v60, %v321_v12  ;;  %v330_v18 = vrot.slane %v329_v61, 4  ;;  %v343_v21 = vor.u32 %v342_v8, %v339_v62  ;;  %v1105_v19 = vsel %vm2682_vm6, %v2008_v3, %v1104_v17  ;;  %v2005_v17 = vld [vmem:[%s2540_s13 + $0x38] sm:$0xe]  ;;  %v552_v47 = vld [vmem:[%s2540_s13] sm:$0xe] }
  0x3a   : > { %v2011_v63 = vrot.slane %v2003_v59, 9  ;;  %v2017_v32 = vcombine.low %v1101_v16, %v1105_v19  ;;  %v1109_v23 = vsel %vm2682_vm6, %v2009_v24, %v1108_v45  ;;  %v1113_v36 = vsel %vm2682_vm6, %v2010_v2, %v1112_v49  ;;  %v2747_v60 = vld [vmem:[%s3077_s1 + $0x38] sm:$0xff]   ;;  %v556_v8 = vld [vmem:[%s2540_s13 + $0x20] sm:$0xe]  ;;  %v557_v3 = vld [vmem:[%s2540_s13 + $0x28] sm:$0xe] }
  0x3b   : > { %2158 = vmatprep.mubr.msk.bf16.mxu1 %vm371_vm2, %v1918_v11  ;;  %v335_v29 = vsel %vm2572_vm3, %v330_v18, %v334_v54  ;;  %v344_v30 = vrot.slane %v343_v21, 4  ;;  %v1116_v37 = vrot.slane %v2694_v10, 5  ;;  %v2012_v41 = vrot.slane %v2004_v26, 9  ;;  %v555_v62 = vld [vmem:[%s2540_s13 + $0x18] sm:$0xe] }
  0x3c   : > { %v1120_v42 = vrot.slane %v2704_v25, 5  ;;  %2204 = vmatprep.mubr.msk.bf16.mxu0 %vm371_vm2, %v2017_v32  ;;  %v2018_v45 = vcombine.low %v1109_v23, %v1113_v36  ;;  %v1925_v15 = vcombine.low %v2544_v4, %v2547_v5  ;;  %v2013_v54 = vrot.slane %v2005_v17, 9  ;;  %v554_v4 = vld [vmem:[%s2540_s13 + $0x10] sm:$0xe]  ;;  %v2797_v32 = vld [vmem:[%s2540_s13 + $0x38] sm:$0xe] }
  0x3d   : > { %v349_v9 = vsel %vm2572_vm3, %v344_v30, %v348_v14  ;;  %v1117_v52 = vsel %vm2682_vm6, %v2011_v63, %v1116_v37  ;;  %v1124_v59 = vrot.slane %v2712_v27, 5  ;;  %v2014_v5 = vrot.slane %v2006_v44, 9  ;;  %v2047_v63 = vld [vmem:[%s2540_s13 + $0x18] sm:$0xf]  ;;  %v2800_v23 = vld [vmem:[%s2540_s13 + $0x14] sm:$0x1] }
  0x3e   : > { %v1919_v49 = vcombine.low %v335_v29, %v349_v9  ;;  %v1121_v53 = vsel %vm2682_vm6, %v2012_v41, %v1120_v42  ;;  %v1128_v61 = vrot.slane %v2722_v34, 5  ;;  %v589_v12 = vrot.slane %v2586_v43, 5  ;;  %v2809_v36 = vld [vmem:[%s2540_s13 + $0x1c] sm:$0x1]  ;;  %v2049_v42 = vld [vmem:[%s2540_s13 + $0x20] sm:$0xf] }
  0x3f   : > { %v2019_v56 = vcombine.low %v1117_v52, %v1121_v53  ;;  %v1934_v14 = vrot.slane %v552_v47, 9  ;;  %v1935_v16 = vrot.slane %v553_v55, 9  ;;  %v593_v11 = vrot.slane %v2593_v50, 5  ;;  %v2051_v47 = vld [vmem:[%s2540_s13 + $0x28] sm:$0xf] }
  0x40   : > { %2159 = vmatmul.mubr.msk.bf16.gmra.mrb[4].mxu1 %vm371_vm2, %v1919_v49  ;;  %v1125_v18 = vsel %vm2682_vm6, %v2013_v54, %v1124_v59  ;;  %v1129_v21 = vsel %vm2682_vm6, %v2014_v5, %v1128_v61  ;;  %v1936_v24 = vrot.slane %v554_v4, 9  ;;  %v1937_v26 = vrot.slane %v555_v62, 9  ;;  %v2830_v53 = vld [vmem:[%s2540_s13 + $0x24] sm:$0x1]  ;;  %v2841_v5 = vld [vmem:[%s2540_s13 + $0x2c] sm:$0x1] }
  0x41   : > { %2164 = vmatprep.mubr.msk.bf16.mxu1 %vm371_vm2, %v1925_v15  ;;  %v2769_v43 = vsel %vm2682_vm6, %v1934_v14, %v581_v35  ;;  %v2775_v50 = vsel %vm2682_vm6, %v1935_v16, %v585_v40  ;;  %v1938_v19 = vrot.slane %v556_v8, 9  ;;  %v1926_v6 = vcombine.low %v2578_v33, %v2582_v38  ;;  %v2784_v35 = vld [vmem:[%s3077_s1 + $0x18] sm:$0xff]   ;;  %v2788_v40 = vld [vmem:[%s2540_s13 + $0x30] sm:$0xe]  ;;  %v2362_v8 = vld [vmem:[%s2540_s13 + $0x20] ss:$8 sps:$4 sm:$0xff]  }
  0x42   : > { %2205 = vmatmul.mubr.msk.bf16.vlgmr.msra.gmra.mrb[0].mxu0 %vm371_vm2, %v2018_v45  ;;  %v597_v7 = vrot.slane %v2625_v39, 5  ;;  %v1939_v2 = vrot.slane %v557_v3, 9  ;;  %v2020_v29 = vcombine.low %v1125_v18, %v1129_v21  ;;  %v1927_v30 = vcombine.low %v2620_v31, %v2629_v46  ;;  %v2360_v38 = vld [vmem:[%s2540_s13 + $0x10] ss:$8 sps:$4 sm:$0xff]  }
  0x43   : > { %2213 = vmatpush3.bf16.msra.mxu0 %v2668_v22  ;;  %2208 = vmatprep.mubr.msk.bf16.mxu0 %vm371_vm2, %v2019_v56  ;;  %v2045_v22 = vld [vmem:[%s2540_s13 + $0x10] sm:$0xf]  ;;  %v1928_v33 = vcombine.low %v2641_v57, %v2651_v0  ;;  %v1944_v39 = vcombine.low %v2769_v43, %v2775_v50  ;;  %v2806_v17 = vsel %vm2682_vm6, %v1936_v24, %v589_v12  ;;  %v601_v46 = vrot.slane %v2635_v51, 5 }
  0x44   : > { %2222 = vmatprep.subr.bf16.mxu0 %v2747_v60  ;;  %v1376_v37 = vshrl.u32 %v2045_v22, 16  ;;  %v1379_v31 = vshll.u32 %v2045_v22, 16  ;;  %v1940_v57 = vrot.slane %v2788_v40, 9  ;;  %v605_v0 = vrot.slane %v2656_v13, 5  ;;  %v2852_v40 = vld [vmem:[%s2540_s13 + $0x34] sm:$0x1] }
  0x45   : > { %v1390_v41 = vshrl.u32 %v2047_v63, 16  ;;  %v1941_v44 = vrot.slane %v2797_v32, 9  ;;  %v1385_v15 = vshll.u32 %v2800_v23, 16  ;;  %v2823_v51 = vsel %vm2682_vm6, %v1937_v26, %v593_v11  ;;  %v2364_v11 = vld [vmem:[%s2540_s13 + $0x30] ss:$8 sps:$4 sm:$0xff]  }
  0x46   : > { %v1378_v9 = vrot.slane %v1376_v37, 4  ;;  %v1381_v45 = vrot.slane %v1379_v31, 5  ;;  %v2827_v13 = vsel %vm2682_vm6, %v1938_v19, %v597_v7  ;;  %v1393_v52 = vshll.u32 %v2047_v63, 16  ;;  %v2055_v63 = vld [vmem:[%s2540_s13 + $0x38] sm:$0xf] }
  0x47   : > { %v1392_v49 = vrot.slane %v1390_v41, 4  ;;  %v1399_v54 = vshll.u32 %v2809_v36, 16  ;;  %v1404_v55 = vshrl.u32 %v2049_v42, 16  ;;  %v1407_v56 = vshll.u32 %v2049_v42, 16  ;;  %v2870_v37 = vld [vmem:[%s2540_s13 + $0x3c] sm:$0x1] }
  0x48   : > { %2165 = vmatmul.mubr.msk.bf16.vlgmr.msra.gmra.mrb[0].mxu1 %vm371_vm2, %v1926_v6  ;;  %v2838_v59 = vsel %vm2682_vm6, %v1939_v2, %v601_v46  ;;  %v1395_v4 = vrot.slane %v1393_v52, 5  ;;  %v1418_v61 = vshrl.u32 %v2051_v47, 16  ;;  %v1421_v62 = vshll.u32 %v2051_v47, 16  ;;  %v2053_v6 = vld [vmem:[%s2540_s13 + $0x30] sm:$0xf] }
  0x49   : > { %2173 = vmatpush3.bf16.msra.mxu1 %v2646_v58  ;;  %2168 = vmatprep.mubr.msk.bf16.mxu1 %vm371_vm2, %v1927_v30  ;;  %v1382_v58 = vor.u32 %v1381_v45, %v1378_v9  ;;  %v1387_v12 = vrot.slane %v1385_v15, 5  ;;  %v1406_v14 = vrot.slane %v1404_v55, 4  ;;  %v1409_v16 = vrot.slane %v1407_v56, 5  ;;  %v2057_v41 = vld [vmem:[%s2540_s13 + $0x40] sm:$0xf] }
  0x4a   : > { %2209 = vmatmul.mubr.msk.bf16.gmra.mrb[4].mxu0 %vm371_vm2, %v2020_v29  ;;  %2182 = vmatprep.subr.bf16.mxu1 %v2784_v35  ;;  %v1413_v3 = vshll.u32 %v2830_v53, 16  ;;  %v1396_v21 = vor.u32 %v1395_v4, %v1392_v49  ;;  %v1420_v24 = vrot.slane %v1418_v61, 4  ;;  %v1423_v43 = vrot.slane %v1421_v62, 5  ;;  %v2059_v47 = vld [vmem:[%s2540_s13 + $0x48] sm:$0xf] }
  0x4b   : > { %2214 = vmatprep.mubr.msk.bf16.mxu0 %vm371_vm2, %v2360_v38  ;;  %v1383_v18 = vrot.slane %v1382_v58, 4  ;;  %v609_v50 = vrot.slane %v2662_v20, 5  ;;  %v1401_v26 = vrot.slane %v1399_v54, 5  ;;  %v1410_v19 = vor.u32 %v1409_v16, %v1406_v14  ;;  %v2865_v38 = vld [vmem:[%s3077_s1 + $0x40] sm:$0xff]   ;;  %v2894_v62 = vld [vmem:[%s2540_s13 + $0x4c] sm:$0x1] }
  0x4c   : > { %v1427_v22 = vshll.u32 %v2841_v5, 16  ;;  %v1945_v7 = vcombine.low %v2806_v17, %v2823_v51  ;;  %v1397_v2 = vrot.slane %v1396_v21, 4  ;;  %v1432_v29 = vshrl.u32 %v2053_v6, 16  ;;  %v2885_v52 = vld [vmem:[%s2540_s13 + $0x44] sm:$0x1] }
  0x4d   : > { %v1946_v30 = vcombine.low %v2827_v13, %v2838_v59  ;;  %v2860_v20 = vsel %vm2682_vm6, %v1940_v57, %v605_v0  ;;  %v2867_v17 = vrot.slane %v1413_v3, 5  ;;  %v1435_v31 = vshll.u32 %v2053_v6, 16  ;;  %v2365_v58 = vld [vmem:[%s2540_s13 + $0x40] ss:$8 sps:$4 sm:$0xff]  }
  0x4e   : > { %v1424_v46 = vor.u32 %v1423_v43, %v1420_v24  ;;  %v1434_v57 = vrot.slane %v1432_v29, 4  ;;  %v1446_v0 = vshrl.u32 %v2055_v63, 16  ;;  %v1402_v42 = vsel %vm2572_vm3, %v1397_v2, %v1401_v26 }
  0x4f   : > { %v1411_v9 = vrot.slane %v1410_v19, 4  ;;  %v1437_v45 = vrot.slane %v1435_v31, 5  ;;  %v1441_v15 = vshll.u32 %v2852_v40, 16  ;;  %v1449_v13 = vshll.u32 %v2055_v63, 16  ;;  %v2072_v19 = vld [vmem:[%s2540_s13 + $0x10] sm:$0xe] }
  0x50   : > { %2169 = vmatmul.mubr.msk.bf16.gmra.mrb[4].mxu1 %vm371_vm2, %v1928_v33  ;;  %v1388_v33 = vsel %vm2572_vm3, %v1383_v18, %v1387_v12  ;;  %v1448_v51 = vrot.slane %v1446_v0, 4  ;;  %v1455_v49 = vshll.u32 %v2870_v37, 16  ;;  %v610_v54 = vsel %vm2682_vm6, %v1941_v44, %v609_v50  ;;  %v1982_v31 = vld [vmem:[%s2540_s13 + $0x30] sm:$0xf] }
  0x51   : > { %2174 = vmatprep.mubr.msk.bf16.mxu1 %vm371_vm2, %v1944_v39  ;;  %v1429_v39 = vrot.slane %v1427_v22, 5  ;;  %v1438_v55 = vor.u32 %v1437_v45, %v1434_v57  ;;  %v1463_v56 = vshll.u32 %v2057_v41, 16  ;;  %v2063_v59 = vcombine.low %v1388_v33, %v1402_v42  ;;  %v2367_v0 = vld [vmem:[%s2540_s13 + $0x8] ss:$8 sps:$4 sm:$0xff]  }
  0x52   : > { %2215 = vmatmul.mubr.msk.bf16.vlgmr.msra.gmra.mrb[0].mxu0 %vm371_vm2, %v2362_v8  ;;  %v1425_v4 = vrot.slane %v1424_v46, 4  ;;  %v1451_v61 = vrot.slane %v1449_v13, 5  ;;  %v1474_v8 = vshrl.u32 %v2059_v47, 16  ;;  %v1443_v12 = vrot.slane %v1441_v15, 5 }
  0x53   : > { %2223 = vmatpush3.bf16.msra.mxu0 %v2747_v60  ;;  %2218 = vmatprep.mubr.msk.bf16.mxu0 %vm371_vm2, %v2364_v11  ;;  %v1460_v60 = vshrl.u32 %v2057_v41, 16  ;;  %v1465_v16 = vrot.slane %v1463_v56, 5  ;;  %v1477_v3 = vshll.u32 %v2059_v47, 16  ;;  %v1439_v32 = vrot.slane %v1438_v55, 4 }
  0x54   : > { %2232 = vmatprep.subr.bf16.mxu0 %v2865_v38  ;;  %v1452_v11 = vor.u32 %v1451_v61, %v1448_v51  ;;  %v1469_v44 = vshll.u32 %v2885_v52, 16  ;;  %v1476_v18 = vrot.slane %v1474_v8, 4  ;;  %v1457_v21 = vrot.slane %v1455_v49, 5 }
  0x55   : > { %v1462_v14 = vrot.slane %v1460_v60, 4  ;;  %v1479_v24 = vrot.slane %v1477_v3, 5  ;;  %v1483_v43 = vshll.u32 %v2894_v62, 16  ;;  %v1947_v22 = vcombine.low %v2860_v20, %v610_v54  ;;  %v1980_v20 = vld [vmem:[%s2540_s13 + $0x28] sm:$0xf] }
  0x56   : > { %v1453_v50 = vrot.slane %v1452_v11, 4  ;;  %v1619_v2 = vrot.slane %v2800_v23, 5  ;;  %v1430_v63 = vsel %vm2572_vm3, %v1425_v4, %v1429_v39  ;;  %v1444_v29 = vsel %vm2572_vm3, %v1439_v32, %v1443_v12  ;;  %v2368_v3 = vld [vmem:[%s2540_s13 + $0x18] ss:$8 sps:$4 sm:$0xff]  }
  0x57   : > { %v1466_v26 = vor.u32 %v1465_v16, %v1462_v14  ;;  %v1480_v6 = vor.u32 %v1479_v24, %v1476_v18  ;;  %v1485_v46 = vrot.slane %v1483_v43, 5  ;;  %v2080_v23 = vrot.slane %v2072_v19, 9  ;;  %v1984_v14 = vld [vmem:[%s2540_s13 + $0x38] sm:$0xf]  ;;  %v1986_v16 = vld [vmem:[%s2540_s13 + $0x40] sm:$0xf] }
  0x58   : > { %2175 = vmatmul.mubr.msk.bf16.vlgmr.msra.gmra.mrb[0].mxu1 %vm371_vm2, %v1945_v7  ;;  %v2073_v7 = vld [vmem:[%s2540_s13 + $0x18] sm:$0xe]  ;;  %v1458_v33 = vsel %vm2572_vm3, %v1453_v50, %v1457_v21  ;;  %v1623_v57 = vrot.slane %v2809_v36, 5  ;;  %v916_v15 = vshll.u32 %v1980_v20, 16  ;;  %v927_v47 = vshrl.u32 %v1982_v31, 16 }
  0x59   : > { %2183 = vmatpush3.bf16.msra.mxu1 %v2784_v35  ;;  %2178 = vmatprep.mubr.msk.bf16.mxu1 %vm371_vm2, %v1946_v30  ;;  %v1416_v35 = vsel %vm2572_vm3, %v1411_v9, %v2867_v17  ;;  %v1471_v30 = vrot.slane %v1469_v44, 5  ;;  %v1467_v41 = vrot.slane %v1466_v26, 4  ;;  %v1481_v17 = vrot.slane %v1480_v6, 4  ;;  %v2074_v36 = vld [vmem:[%s2540_s13 + $0x20] sm:$0xe] }
  0x5a   : > { %2219 = vmatmul.mubr.msk.bf16.gmra.mrb[4].mxu0 %vm371_vm2, %v2365_v58  ;;  %2242 = vmatprep.subr.bf16.mxu1 %v2518_v1  ;;  %v2081_v42 = vrot.slane %v2073_v7, 9  ;;  %v913_v9 = vshrl.u32 %v1980_v20, 16  ;;  %v2064_v45 = vcombine.low %v1416_v35, %v1430_v63  ;;  %v2065_v39 = vcombine.low %v1444_v29, %v1458_v33  ;;  %v2077_v50 = vld [vmem:[%s2540_s13 + $0x38] sm:$0xe]  ;;  %v2369_v26 = vld [vmem:[%s2540_s13 + $0x28] ss:$8 sps:$4 sm:$0xff]  }
  0x5b   : > { %2224 = vmatprep.mubr.msk.bf16.mxu0 %vm371_vm2, %v2063_v59  ;;  %v930_v13 = vshll.u32 %v1982_v31, 16  ;;  %v1620_v49 = vsel %vm2682_vm6, %v2080_v23, %v1619_v2  ;;  %v918_v58 = vrot.slane %v916_v15, 5  ;;  %v929_v54 = vrot.slane %v927_v47, 4  ;;  %v2075_v59 = vld [vmem:[%s2540_s13 + $0x28] sm:$0xe] }
  0x5c   : > { %v915_v51 = vrot.slane %v913_v9, 4  ;;  %v1472_v55 = vsel %vm2572_vm3, %v1467_v41, %v1471_v30  ;;  %v1486_v60 = vsel %vm2572_vm3, %v1481_v17, %v1485_v46  ;;  %v1624_v56 = vsel %vm2682_vm6, %v2081_v42, %v1623_v57  ;;  %v2078_v41 = vld [vmem:[%s2540_s13 + $0x40] sm:$0xe]  ;;  %v2079_v17 = vld [vmem:[%s2540_s13 + $0x48] sm:$0xe] }
  0x5d   : > { %v932_v4 = vrot.slane %v930_v13, 5  ;;  %v922_v8 = vshll.u32 %v2694_v10, 16  ;;  %v936_v12 = vshll.u32 %v2704_v25, 16  ;;  %v2082_v32 = vrot.slane %v2074_v36, 9  ;;  %v2076_v10 = vld [vmem:[%s2540_s13 + $0x30] sm:$0xe] }
  0x5e   : > { %v919_v61 = vor.u32 %v918_v58, %v915_v51  ;;  %v1627_v11 = vrot.slane %v2830_v53, 5  ;;  %v2066_v18 = vcombine.low %v1472_v55, %v1486_v60  ;;  %v2090_v21 = vcombine.low %v1620_v49, %v1624_v56 }
  0x5f   : > { %v933_v44 = vor.u32 %v932_v4, %v929_v54  ;;  %v2083_v24 = vrot.slane %v2075_v59, 9  ;;  %v1631_v43 = vrot.slane %v2841_v5, 5  ;;  %v941_v25 = vshrl.u32 %v1984_v14, 16 }
  0x60   : > { %2179 = vmatmul.mubr.msk.bf16.gmra.mrb[4].mxu1 %vm371_vm2, %v1947_v22  ;;  %v944_v19 = vshll.u32 %v1984_v14, 16  ;;  %v955_v22 = vshrl.u32 %v1986_v16, 16  ;;  %v958_v6 = vshll.u32 %v1986_v16, 16  ;;  %v924_v7 = vrot.slane %v922_v8, 5  ;;  %v2099_v16 = vld [vmem:[%s3078_s2] ss:$0 sm:$0xff] }
  0x61   : > { %2184 = vmatprep.mubr.msk.bf16.mxu1 %vm371_vm2, %v2367_v0  ;;  %v934_v2 = vrot.slane %v933_v44, 4  ;;  %v938_v35 = vrot.slane %v936_v12, 5  ;;  %v2084_v63 = vrot.slane %v2076_v10, 9  ;;  %v1635_v53 = vrot.slane %v2852_v40, 5  ;;  %v2370_v0 = vld [vmem:[%s2540_s13 + $0x38] ss:$8 sps:$4 sm:$0xff]  }
  0x62   : > { %2225 = vmatmul.mubr.msk.bf16.vlgmr.msra.gmra.mrb[0].mxu0 %vm371_vm2, %v2064_v45  ;;  %v2085_v29 = vrot.slane %v2077_v50, 9  ;;  %v1639_v30 = vrot.slane %v2870_v37, 5  ;;  %v943_v5 = vrot.slane %v941_v25, 4  ;;  %v946_v20 = vrot.slane %v944_v19, 5  ;;  %v1796_v50 = vld [vmem:[%s2994_s14 + $0x10] sm:$0xff]  ;;  %v1794_v19 = vld [vmem:[%s2994_s14] sm:$0xff] }
  0x63   : > { %2233 = vmatpush3.bf16.msra.mxu0 %v2865_v38  ;;  %2228 = vmatprep.mubr.msk.bf16.mxu0 %vm371_vm2, %v2065_v39  ;;  %v920_v38 = vrot.slane %v919_v61, 4  ;;  %v957_v31 = vrot.slane %v955_v22, 4  ;;  %v960_v33 = vrot.slane %v958_v6, 5  ;;  %v950_v46 = vshll.u32 %v2712_v27, 16 }
  0x64   : > { %v939_v37 = vsel %vm2572_vm3, %v934_v2, %v938_v35  ;;  %v1632_v23 = vsel %vm2682_vm6, %v2083_v24, %v1631_v43  ;;  %v1636_v57 = vsel %vm2682_vm6, %v2084_v63, %v1635_v53  ;;  %v1640_v27 = vsel %vm2682_vm6, %v2085_v29, %v1639_v30  ;;  %v1795_v53 = vld [vmem:[%s2994_s14 + $0x8] sm:$0xff] }
  0x65   : > { %v925_v40 = vsel %vm2572_vm3, %v920_v38, %v924_v7  ;;  %v964_v42 = vshll.u32 %v2722_v34, 16  ;;  %v947_v45 = vor.u32 %v946_v20, %v943_v5  ;;  %v961_v15 = vor.u32 %v960_v33, %v957_v31  ;;  %v1797_v7 = vld [vmem:[%s2994_s14 + $0x18] sm:$0xff] }
  0x66   : > { %v1992_v9 = vcombine.low %v925_v40, %v939_v37  ;;  %v2092_v39 = vcombine.low %v1636_v57, %v1640_v27  ;;  %v2086_v51 = vrot.slane %v2078_v41, 9  ;;  %v1643_v13 = vrot.slane %v2885_v52, 5 }
  0x67   : > { %v2087_v49 = vrot.slane %v2079_v17, 9  ;;  %v1647_v36 = vrot.slane %v2894_v62, 5  ;;  %v952_v58 = vrot.slane %v950_v46, 5  ;;  %v966_v54 = vrot.slane %v964_v42, 5 }
  0x68   : > { %2185 = vmatmul.mubr.msk.bf16.vlgmr.msra.gmra.mrb[0].mxu1 %vm371_vm2, %v2368_v3  ;;  %v948_v55 = vrot.slane %v947_v45, 4  ;;  %v962_v34 = vrot.slane %v961_v15, 4  ;;  %v1644_v52 = vsel %vm2682_vm6, %v2086_v51, %v1643_v13  ;;  %v1798_v13 = vld [vmem:[%s2994_s14 + $0x20] sm:$0xff] }
  0x69   : > { %2243 = vmatpush3.bf16.msra.mxu1 %v2518_v1  ;;  %2188 = vmatprep.mubr.msk.bf16.mxu1 %vm371_vm2, %v2369_v26  ;;  %v1628_v1 = vsel %vm2682_vm6, %v2082_v32, %v1627_v11  ;;  %v1648_v62 = vsel %vm2682_vm6, %v2087_v49, %v1647_v36 }
  0x6a   : > { %2229 = vmatmul.mubr.msk.bf16.gmra.mrb[4].mxu0 %vm371_vm2, %v2066_v18  ;;  %v2091_v47 = vcombine.low %v1628_v1, %v1632_v23  ;;  %v953_v60 = vsel %vm2572_vm3, %v948_v55, %v952_v58  ;;  %v967_v56 = vsel %vm2572_vm3, %v962_v34, %v966_v54  ;;  %v2093_v59 = vcombine.low %v1644_v52, %v1648_v62  ;;  %v1801_v54 = vld [vmem:[%s2994_s14 + $0x38] sm:$0xff]  ;;  %v1799_v62 = vld [vmem:[%s2994_s14 + $0x28] sm:$0xff] }
  0x6b   : > { %2234 = vmatprep.mubr.msk.bf16.mxu0 %vm371_vm2, %v2090_v21  ;;  %v1993_v4 = vcombine.low %v953_v60, %v967_v56 }
  0x70   : > { %2189 = vmatmul.mubr.msk.bf16.gmra.mrb[4].mxu1 %vm371_vm2, %v2370_v0 }
  0x71   : > { %2198 = vmatprep.mubr.msk.bf16.mxu1 %vm371_vm2, %v1992_v9 }
  0x72   : > { %2235 = vmatmul.mubr.msk.bf16.vlgmr.msra.gmra.mrb[0].mxu0 %vm371_vm2, %v2091_v47  ;;  %v1800_v47 = vld [vmem:[%s2994_s14 + $0x30] sm:$0xff] }
  0x73   : > { %2238 = vmatprep.mubr.msk.bf16.mxu0 %vm371_vm2, %v2092_v39 }
  0x7a   : > { %2239 = vmatmul.mubr.msk.bf16.gmra.mrb[4].mxu0 %vm371_vm2, %v2093_v59 }
  0x7c   : > { %2199 = vmatmul.mubr.msk.bf16.vlgmr.msra.gmra.mrb[4].mxu1 %vm371_vm2, %v1993_v4 }
 0x13b   : > { %v2186_v61 = vpop.f32.mrb[0].mxu1 }
 0x13c   : > { %v801_v8 = vpop.f32.mrb[1].mxu1 }
 0x13d   : > { %v2187_v12 = vpop.f32.mrb[2].mxu1 }
 0x13e   : > { %v804_v14 = vpop.f32.mrb[3].mxu1 }
 0x145   : > { %v2236_v48 = vpop.f32.mrb[0].mxu0 }
 0x146   : > { %v2244_v28 = vadd.f32 %v2236_v48, %v2186_v61  ;;  %v1716_v3 = vpop.f32.mrb[1].mxu0 }
 0x147   : > { %v2245_v32 = vadd.f32 %v1716_v3, %v801_v8  ;;  %v2237_v11 = vpop.f32.mrb[2].mxu0 }
 0x148   : > { %v1764_v44 = vadd.f32 %v2244_v28, %v2099_v16  ;;  %v2246_v18 = vadd.f32 %v2237_v11, %v2187_v12  ;;  %v1719_v21 = vpop.f32.mrb[3].mxu0 }
 0x149   : > { %v1762_v24 = vadd.f32 %v2245_v32, %v2099_v16  ;;  %v2247_v43 = vadd.f32 %v1719_v21, %v804_v14 }
 0x14a   : > { %vm1772_vm7 = vcmp.ge.f32.partialorder %v1764_v44, 0.0  ;;  %v1780_v10 = vmul.f32 0.2, %v1764_v44  ;;  %v1765_v26 = vadd.f32 %v2246_v18, %v2099_v16 }
 0x14b   : > { %vm1770_vm8 = vcmp.ge.f32.partialorder %v1762_v24, 0.0  ;;  %v1778_v25 = vmul.f32 0.2, %v1762_v24  ;;  %v1763_v22 = vadd.f32 %v2247_v43, %v2099_v16 }
 0x14c   : > { %v1788_v6 = vsel %vm1772_vm7, %v1764_v44, %v1780_v10  ;;  %vm1773_vm9 = vcmp.ge.f32.partialorder %v1765_v26, 0.0  ;;  %v1781_v38 = vmul.f32 0.2, %v1765_v26 }
 0x14d   : > { %v1804_v2 = vadd.f32 %v1796_v50, %v1788_v6  ;;  %v1786_v35 = vsel %vm1770_vm8, %v1762_v24, %v1778_v25  ;;  %vm1771_vm10 = vcmp.ge.f32.partialorder %v1763_v22, 0.0  ;;  %v1779_v63 = vmul.f32 0.2, %v1763_v22  ;;  %v2240_v29 = vpop.f32.mrb[4].mxu0 }
 0x14e   : > { %v1802_v30 = vadd.f32 %v1794_v19, %v1786_v35  ;;  %v1789_v5 = vsel %vm1773_vm9, %v1765_v26, %v1781_v38  ;;  %v1732_v20 = vpop.f32.mrb[5].mxu0 }
 0x14f   : > { %1812 = vst.msk [vmem:[%s3002_s20 + $0x10] sm:$0xff] %vm371_vm2, %v1804_v2  ;;  %v1805_v31 = vadd.f32 %v1797_v7, %v1789_v5  ;;  %v1787_v33 = vsel %vm1771_vm10, %v1763_v22, %v1779_v63  ;;  %v2200_v46 = vpop.f32.mrb[4].mxu1  ;;  %v2241_v40 = vpop.f32.mrb[6].mxu0 }
 0x150   : > { %1810 = vst.msk [vmem:[%s3002_s20] sm:$0xff] %vm371_vm2, %v1802_v30  ;;  %v1803_v37 = vadd.f32 %v1795_v53, %v1787_v33  ;;  %v2248_v1 = vadd.f32 %v2240_v29, %v2200_v46  ;;  %v1051_v23 = vpop.f32.mrb[5].mxu1  ;;  %v1735_v57 = vpop.f32.mrb[7].mxu0 }
 0x151   : > { %1813 = vst.msk [vmem:[%s3002_s20 + $0x18] sm:$0xff] %vm371_vm2, %v1805_v31  ;;  %v2249_v27 = vadd.f32 %v1732_v20, %v1051_v23  ;;  %v2201_v0 = vpop.f32.mrb[6].mxu1 }
 0x152   : > { %1811 = vst.msk [vmem:[%s3002_s20 + $0x8] sm:$0xff] %vm371_vm2, %v1803_v37  ;;  %v1768_v41 = vadd.f32 %v2248_v1, %v2099_v16  ;;  %v2250_v17 = vadd.f32 %v2241_v40, %v2201_v0  ;;  %v1054_v42 = vpop.f32.mrb[7].mxu1 }
 0x153   : > { %v1766_v9 = vadd.f32 %v2249_v27, %v2099_v16  ;;  %v2251_v45 = vadd.f32 %v1735_v57, %v1054_v42 }
 0x154   : > { %vm1776_vm11 = vcmp.ge.f32.partialorder %v1768_v41, 0.0  ;;  %v1784_v15 = vmul.f32 0.2, %v1768_v41  ;;  %v1769_v39 = vadd.f32 %v2250_v17, %v2099_v16 }
 0x155   : > { %vm1774_vm12 = vcmp.ge.f32.partialorder %v1766_v9, 0.0  ;;  %v1782_v51 = vmul.f32 0.2, %v1766_v9  ;;  %v1767_v49 = vadd.f32 %v2251_v45, %v2099_v16 }
 0x156   : > { %v1792_v36 = vsel %vm1776_vm11, %v1768_v41, %v1784_v15  ;;  %vm1777_vm13 = vcmp.ge.f32.partialorder %v1769_v39, 0.0  ;;  %v1785_v58 = vmul.f32 0.2, %v1769_v39 }
 0x157   : > { %v1808_v55 = vadd.f32 %v1800_v47, %v1792_v36  ;;  %v1790_v34 = vsel %vm1774_vm12, %v1766_v9, %v1782_v51  ;;  %vm1775_vm14 = vcmp.ge.f32.partialorder %v1767_v49, 0.0  ;;  %v1783_v52 = vmul.f32 0.2, %v1767_v49 }
 0x158   : > { %v1806_v60 = vadd.f32 %v1798_v13, %v1790_v34  ;;  %v1793_v56 = vsel %vm1777_vm13, %v1769_v39, %v1785_v58 }
 0x159   : > { %1816 = vst.msk [vmem:[%s3002_s20 + $0x30] sm:$0xff] %vm371_vm2, %v1808_v55  ;;  %v1809_v59 = vadd.f32 %v1801_v54, %v1793_v56  ;;  %v1791_v4 = vsel %vm1775_vm14, %v1767_v49, %v1783_v52 }
 0x15a   : > { %1814 = vst.msk [vmem:[%s3002_s20 + $0x20] sm:$0xff] %vm371_vm2, %v1806_v60  ;;  %v1807_v61 = vadd.f32 %v1799_v62, %v1791_v4 }
 0x15b   : > { %1817 = vst.msk [vmem:[%s3002_s20 + $0x38] sm:$0xff] %vm371_vm2, %v1809_v59 }
 0x15c   : > { %1815 = vst.msk [vmem:[%s3002_s20 + $0x28] sm:$0xff] %vm371_vm2, %v1807_v61 }
 0x15d   : > { %2384 = shalt.err (!%p2381_p3)
}
 0x15e   : > { %s2385_s9 = scalar_lea.hbm %s3023_s19, 1024  ;;  %s2389_s12 = scalar_lea.hbm %s3080_s4, 2048 }
 0x15f   : > { %p2386_p4 = scmp.ne.s32.totalorder %s3023_s19, %s2385_s9  ;;  %p2390_p9 = scmp.lt.u32.totalorder %s3023_s19, %s3080_s4 }
 0x160   : > { %p2391_p10 = scmp.lt.u32.totalorder %s2389_s12, %s2385_s9  ;;  %p2393_p12 = scmp.lt.u32.totalorder %s2385_s9, %s3023_s19 }
 0x161   : > { %p2387_p7 = pnand %p2386_p4, %p2501_p5 }
 0x162   : > { %p2392_p11 = por %p2391_p10, %p2390_p9 }
 0x163   : > { %p2388_p8 = pneg %p2387_p7 }
 0x164   : > { %p2394_p13 = por %p2393_p12, %p2392_p11 }
 0x166   : > { %p2395_p0 = pnand %p2394_p13, %p2388_p8 }
 0x168   : > { %2398 = shalt.err (!%p2395_p0)
}
 0x169   : > { %s2436_s5 = smov 128   ;;  %s2437_s20 = smov 8  }
 0x16a   : > { %2309 = dma.vmem_to_hbm [thread:$0]  (%p2501_p5), %s3025_s23, 1024, %s3023_s19, %s3035_s29, %s2436_s5, %s2436_s5, %s2437_s20  }
 0x16b PF: > { %p2315_p1 = scmp.ge.s32.totalorder %s2433_s18, 2  ;;  %s1847_s22 = sand.u32 1, %s2421_s15  }
 0x16c   : > { %s1848_s27 = scalar_lea.sflag [#allocation3], %s1847_s22 }
 0x16d   : > { %p2312_p2 = pnand %p2315_p1, %p2505_p6 }
 0x16f   : > { %2416 = dma.done.wait (!%p2312_p2), %s1848_s27, 1024  }
 0x170   : > { %2418 = vsyncadd (!%p2312_p2), %s1848_s27, 4294966272  ;;  %p14_p3 = scmp.ge.s32.totalorder %s2488_s21, 4   ;;  %s3087_s15 = smov %s2425_s16 }
 0x171   : > { %s3088_s16 = smov %s2429_s17  ;;  %s3089_s17 = smov %s2499_s24 }
 0x172   : > { %s3090_s18 = smov %s2488_s21  ;;  %16 = sbr.rel (!%p14_p3) target bundleno = 3 (0x3), region = 84 }
 0x179   :  { %1853 = vsyncpa [#allocation3], 1 }
 0x17a   :  { %1855 = vsyncpa [#allocation3 + $0x1], 1 }

</bundles_post_ra>
